<compile_context>
chip_gen: v7x
topology: tpu7x:2x2x1
jax: 0.10.0
libtpu: 0.0.40
codegen_flags: <defaults>
</compile_context>

<pallas_src>
import functools

import jax
import jax.numpy as jnp
from jax.experimental import pallas as pl
from jax.experimental.pallas import tpu as pltpu

LN_EPS = 1e-5
NEG_INF = -1e9
_VMEM_LIMIT = 32 * 1024 * 1024


# ----------------------------- tile helpers ---------------------------------

def _pick_tile_sublane(n, preferred):
    """Tile for a second-minor (sublane) block dim: multiple of 8, or the full dim."""
    t = min(preferred, n)
    t = (t // 8) * 8
    while t >= 8 and n % t:
        t -= 8
    if t < 8 or n % t:
        return n
    # tiny problems: still take >=2 grid steps so pipelining / megacore is exercised
    if t == n and 16 <= n <= 64 and (n // 2) % 8 == 0:
        t = n // 2
    return t


def _pick_tile_lane(n, preferred):
    """Tile for a minor (lane) block dim: multiple of 128, or the full dim."""
    t = min(preferred, n)
    t = (t // 128) * 128
    while t >= 128 and n % t:
        t -= 128
    if t >= 128 and n % t == 0:
        return t
    return n


# ----------------------------- Pallas kernels -------------------------------

def ln_proj_kernel(x_ref, g_ref, b_ref, w_ref, wb_ref, o_ref, *, apply_ln):
    """(optional LayerNorm) + dense projection; bf16 matmul, f32 accumulate."""
    x = x_ref[...]                                   # (TM, E) f32
    if apply_ln:
        mu = jnp.mean(x, axis=-1, keepdims=True)
        xc = x - mu
        var = jnp.mean(xc * xc, axis=-1, keepdims=True)
        x = xc * jax.lax.rsqrt(var + LN_EPS) * g_ref[...] + b_ref[...]
    y = jnp.dot(x.astype(w_ref.dtype), w_ref[...],
                preferred_element_type=jnp.float32) + wb_ref[...]
    o_ref[...] = y.astype(o_ref.dtype)


def attn_proj_kernel(q_ref, k_ref, v_ref, bias_ref, wo_ref, bo_ref, res_ref, o_ref,
                     *, num_heads):
    """Softmax attention over all heads of one batch element (q-row tile), fused with
    the output projection and the residual add (lane-dense (TQ, E) output)."""
    q = q_ref[...]                                   # (TQ, H, Dh) bf16
    k = k_ref[...]                                   # (Sk, H, Dh) bf16
    v = v_ref[...]                                   # (Sk, H, Dh) bf16
    bias = bias_ref[...]                             # (TQ, Sk)   f32 additive mask
    dh = q.shape[-1]
    contract_last = (((1,), (1,)), ((), ()))         # contract Dh with Dh (no transpose)

    out = res_ref[...] + bo_ref[...]                 # residual + Wo bias, f32
    for h in range(num_heads):                       # static unroll over heads
        qh = q[:, h, :]                              # (TQ, Dh)
        kh = k[:, h, :]                              # (Sk, Dh)
        vh = v[:, h, :]                              # (Sk, Dh)
        # attention scale 1/sqrt(Dh) already folded into Wq at init
        s = jax.lax.dot_general(qh, kh, contract_last,
                                preferred_element_type=jnp.float32) + bias
        s = s - jnp.max(s, axis=-1, keepdims=True)
        p = jnp.exp(s)
        p = p * pl.reciprocal(jnp.sum(p, axis=-1, keepdims=True), approx=True)
        ctx = jnp.dot(p.astype(vh.dtype), vh,
                      preferred_element_type=jnp.float32)      # (TQ, Dh)
        wo_h = wo_ref[pl.ds(h * dh, dh), :]                     # (Dh, E) row block of Wo
        out = out + jnp.dot(ctx.astype(wo_h.dtype), wo_h,
                            preferred_element_type=jnp.float32)
    o_ref[...] = out


def ln_ffn_kernel(x_ref, g_ref, b_ref, w1_ref, b1_ref, w2_ref, b2_ref, o_ref,
                  xn_ref, acc_ref):
    """LayerNorm + Linear/ReLU/Linear + residual, tiled over the hidden (F) axis
    with a VMEM accumulator (init at f==0, write-out at the last f tile)."""
    f = pl.program_id(1)

    @pl.when(f == 0)
    def _init():
        x = x_ref[...]
        mu = jnp.mean(x, axis=-1, keepdims=True)
        xc = x - mu
        var = jnp.mean(xc * xc, axis=-1, keepdims=True)
        xn = xc * jax.lax.rsqrt(var + LN_EPS) * g_ref[...] + b_ref[...]
        xn_ref[...] = xn.astype(xn_ref.dtype)
        acc_ref[...] = jnp.zeros_like(acc_ref)

    h = jnp.dot(xn_ref[...], w1_ref[...],
                preferred_element_type=jnp.float32) + b1_ref[...]
    h = jnp.maximum(h, 0.0)                                      # ReLU
    acc_ref[...] += jnp.dot(h.astype(w2_ref.dtype), w2_ref[...],
                            preferred_element_type=jnp.float32)

    @pl.when(f == pl.num_programs(1) - 1)
    def _finalize():
        o_ref[...] = x_ref[...] + acc_ref[...] + b2_ref[...]     # fused residual


# ----------------------------- pallas_call wrappers --------------------------

def ln_project(x2d, gamma, beta, w, b, *, apply_ln, out_dtype=jnp.bfloat16,
               tile_m=256, tile_n=1536):
    M, E = x2d.shape
    N = w.shape[1]
    if gamma is None:
        gamma = jnp.ones((E,), jnp.float32)
        beta = jnp.zeros((E,), jnp.float32)
    tm = _pick_tile_sublane(M, tile_m)
    tn = _pick_tile_lane(N, tile_n)
    kern = functools.partial(ln_proj_kernel, apply_ln=apply_ln)
    return pl.pallas_call(
        kern,
        out_shape=jax.ShapeDtypeStruct((M, N), out_dtype),
        grid=(M // tm, N // tn),
        in_specs=[
            pl.BlockSpec((tm, E), lambda i, j: (i, 0)),
            pl.BlockSpec((1, E), lambda i, j: (0, 0)),
            pl.BlockSpec((1, E), lambda i, j: (0, 0)),
            pl.BlockSpec((E, tn), lambda i, j: (0, j)),
            pl.BlockSpec((1, tn), lambda i, j: (0, j)),
        ],
        out_specs=pl.BlockSpec((tm, tn), lambda i, j: (i, j)),
        compiler_params=pltpu.CompilerParams(
            dimension_semantics=("parallel", "parallel"),
            vmem_limit_bytes=_VMEM_LIMIT),
    )(x2d, gamma.reshape(1, E), beta.reshape(1, E), w, b.reshape(1, N))


def _qkv_spec(arr, sel, rows, row_is_q):
    """BlockSpec selecting q/k/v out of a (B,S,H,Dh) or packed (B,S,G,H,Dh) array."""
    H, Dh = arr.shape[-2], arr.shape[-1]
    if sel is None:                                   # plain (B, S, H, Dh)
        if row_is_q:
            return pl.BlockSpec((None, rows, H, Dh), lambda b, t: (b, t, 0, 0))
        return pl.BlockSpec((None, rows, H, Dh), lambda b, t: (b, 0, 0, 0))
    if row_is_q:                                      # packed (B, S, G, H, Dh)
        return pl.BlockSpec((None, rows, None, H, Dh),
                            lambda b, t, s=sel: (b, t, s, 0, 0))
    return pl.BlockSpec((None, rows, None, H, Dh),
                        lambda b, t, s=sel: (b, 0, s, 0, 0))


def fused_attention(q_arr, q_sel, kv_arr, k_sel, v_sel, bias, wo, bo, residual,
                    *, num_heads, tile_q=256):
    B, Sq, E = residual.shape
    Sk = kv_arr.shape[1]
    tq = _pick_tile_sublane(Sq, tile_q)
    kern = functools.partial(attn_proj_kernel, num_heads=num_heads)
    return pl.pallas_call(
        kern,
        out_shape=jax.ShapeDtypeStruct((B, Sq, E), jnp.float32),
        grid=(B, Sq // tq),
        in_specs=[
            _qkv_spec(q_arr, q_sel, tq, True),
            _qkv_spec(kv_arr, k_sel, Sk, False),
            _qkv_spec(kv_arr, v_sel, Sk, False),
            pl.BlockSpec((None, tq, Sk), lambda b, t: (b, t, 0)),
            pl.BlockSpec((E, E), lambda b, t: (0, 0)),
            pl.BlockSpec((1, E), lambda b, t: (0, 0)),
            pl.BlockSpec((None, tq, E), lambda b, t: (b, t, 0)),
        ],
        out_specs=pl.BlockSpec((None, tq, E), lambda b, t: (b, t, 0)),
        compiler_params=pltpu.CompilerParams(
            dimension_semantics=("parallel", "parallel"),
            vmem_limit_bytes=_VMEM_LIMIT),
    )(q_arr, kv_arr, kv_arr, bias, wo, bo.reshape(1, E), residual)


def ln_ffn_residual(x2d, gamma, beta, w1, b1, w2, b2, *, tile_m=256, tile_f=256):
    M, E = x2d.shape
    F = w1.shape[1]
    tm = _pick_tile_sublane(M, tile_m)
    tf = _pick_tile_lane(F, tile_f)
    return pl.pallas_call(
        ln_ffn_kernel,
        out_shape=jax.ShapeDtypeStruct((M, E), jnp.float32),
        grid=(M // tm, F // tf),
        in_specs=[
            pl.BlockSpec((tm, E), lambda i, f: (i, 0)),
            pl.BlockSpec((1, E), lambda i, f: (0, 0)),
            pl.BlockSpec((1, E), lambda i, f: (0, 0)),
            pl.BlockSpec((E, tf), lambda i, f: (0, f)),
            pl.BlockSpec((1, tf), lambda i, f: (0, f)),
            pl.BlockSpec((tf, E), lambda i, f: (f, 0)),
            pl.BlockSpec((1, E), lambda i, f: (0, 0)),
        ],
        out_specs=pl.BlockSpec((tm, E), lambda i, f: (i, 0)),
        scratch_shapes=[
            pltpu.VMEM((tm, E), jnp.bfloat16),    # normalized activations
            pltpu.VMEM((tm, E), jnp.float32),     # FFN output accumulator
        ],
        compiler_params=pltpu.CompilerParams(
            dimension_semantics=("parallel", "arbitrary"),
            vmem_limit_bytes=_VMEM_LIMIT),
    )(x2d, gamma.reshape(1, E), beta.reshape(1, E),
      w1, b1.reshape(1, F), w2, b2.reshape(1, E))


# ----------------------------- layer forward ---------------------------------

def _mask_to_bias(mask, B, Sq, Sk):
    """1/0 keep-mask -> additive bias (0 / -1e9), one (Sq, Sk) slab per batch."""
    if mask is None:
        return jnp.zeros((B, Sq, Sk), jnp.float32)
    m = jnp.broadcast_to(mask.astype(jnp.float32), (B, 1, Sq, Sk)).reshape(B, Sq, Sk)
    return (1.0 - m) * NEG_INF


def decoder_layer_forward(params, target_input, encoder_output, tgt_mask, src_mask,
                          num_heads):
    """Pre-norm decoder layer, eval mode (dropout1/2/3 = identity)."""
    B, St, E = target_input.shape
    Ss = encoder_output.shape[1]
    H = num_heads
    Dh = E // H

    tgt_bias = _mask_to_bias(tgt_mask, B, St, St)
    src_bias = _mask_to_bias(src_mask, B, St, Ss)

    x = target_input

    # ---- self-attention block: LN1 + fused QKV proj, attn + Wo + residual
    sa = params["self_attn"]
    qkv = ln_project(x.reshape(B * St, E), params["ln1_g"], params["ln1_b"],
                     sa["w_qkv"], sa["b_qkv"], apply_ln=True)
    qkv5d = qkv.reshape(B, St, 3, H, Dh)              # free reshape, no transpose
    x = fused_attention(qkv5d, 0, qkv5d, 1, 2, tgt_bias, sa["wo"], sa["bo"], x,
                        num_heads=H)

    # ---- cross-attention block: LN2 + Q proj; fused KV proj of encoder output
    ca = params["cross_attn"]
    q = ln_project(x.reshape(B * St, E), params["ln2_g"], params["ln2_b"],
                   ca["w_q"], ca["b_q"], apply_ln=True)
    q4d = q.reshape(B, St, H, Dh)
    kv = ln_project(encoder_output.reshape(B * Ss, E), None, None,
                    ca["w_kv"], ca["b_kv"], apply_ln=False)
    kv5d = kv.reshape(B, Ss, 2, H, Dh)
    x = fused_attention(q4d, None, kv5d, 0, 1, src_bias, ca["wo"], ca["bo"], x,
                        num_heads=H)

    # ---- feed-forward block: LN3 + FFN + residual (F-tiled accumulator)
    x = ln_ffn_residual(x.reshape(B * St, E), params["ln3_g"], params["ln3_b"],
                        params["ff_w1"], params["ff_b1"],
                        params["ff_w2"], params["ff_b2"]).reshape(B, St, E)
    return x


# ----------------------------- parameter init --------------------------------

def init_params(key, embed_dim, num_heads, ff_dim):
    head_dim = embed_dim // num_heads
    scale = 1.0 / (head_dim ** 0.5)

    def dense(k, shape):
        return 0.02 * jax.random.normal(k, shape, jnp.float32)

    def attn_params(k, fuse_qkv):
        ks = jax.random.split(k, 4)
        wq = dense(ks[0], (embed_dim, embed_dim)) * scale     # fold 1/sqrt(Dh) into Wq
        wk = dense(ks[1], (embed_dim, embed_dim))
        wv = dense(ks[2], (embed_dim, embed_dim))
        wo = dense(ks[3], (embed_dim, embed_dim))
        zeros = jnp.zeros((embed_dim,), jnp.float32)
        p = {"wo": wo.astype(jnp.bfloat16), "bo": zeros}
        if fuse_qkv:   # self-attention: q, k, v all project the same normed input
            p["w_qkv"] = jnp.concatenate([wq, wk, wv], axis=1).astype(jnp.bfloat16)
            p["b_qkv"] = jnp.zeros((3 * embed_dim,), jnp.float32)
        else:          # cross-attention: q from target, k/v from encoder output
            p["w_q"] = wq.astype(jnp.bfloat16)
            p["b_q"] = zeros
            p["w_kv"] = jnp.concatenate([wk, wv], axis=1).astype(jnp.bfloat16)
            p["b_kv"] = jnp.zeros((2 * embed_dim,), jnp.float32)
        return p

    k_sa, k_ca, k_ff1, k_ff2 = jax.random.split(key, 4)
    return {
        "self_attn": attn_params(k_sa, True),
        "cross_attn": attn_params(k_ca, False),
        "ln1_g": jnp.ones((embed_dim,), jnp.float32),
        "ln1_b": jnp.zeros((embed_dim,), jnp.float32),
        "ln2_g": jnp.ones((embed_dim,), jnp.float32),
        "ln2_b": jnp.zeros((embed_dim,), jnp.float32),
        "ln3_g": jnp.ones((embed_dim,), jnp.float32),
        "ln3_b": jnp.zeros((embed_dim,), jnp.float32),
        "ff_w1": dense(k_ff1, (embed_dim, ff_dim)).astype(jnp.bfloat16),
        "ff_b1": jnp.zeros((ff_dim,), jnp.float32),
        "ff_w2": dense(k_ff2, (ff_dim, embed_dim)).astype(jnp.bfloat16),
        "ff_b2": jnp.zeros((embed_dim,), jnp.float32),
    }


# ----------------------------- main -------------------------------------------

if __name__ == "__main__":
    B, TGT_S, SRC_S = 2, 16, 16
    EMBED, HEADS, FF = 128, 4, 512

    key = jax.random.PRNGKey(0)
    k_p, k_t, k_e = jax.random.split(key, 3)

    params = init_params(k_p, EMBED, HEADS, FF)
    target_input = jax.random.normal(k_t, (B, TGT_S, EMBED), jnp.float32)
    encoder_output = jax.random.normal(k_e, (B, SRC_S, EMBED), jnp.float32)

    # causal target mask [B, 1, tgt, tgt]; full source mask [B, 1, 1, src]
    causal = jnp.tril(jnp.ones((TGT_S, TGT_S), jnp.float32))
    tgt_mask = jnp.broadcast_to(causal, (B, 1, TGT_S, TGT_S))
    src_mask = jnp.ones((B, 1, 1, SRC_S), jnp.float32)

    fwd = jax.jit(functools.partial(decoder_layer_forward, num_heads=HEADS))
    out = fwd(params, target_input, encoder_output, tgt_mask, src_mask)
    out = jax.block_until_ready(out)
    assert out.shape == (B, TGT_S, EMBED)
    assert bool(jnp.all(jnp.isfinite(out)))
    print("KERNEL_OK")
</pallas_src>

<mosaic_0001>
module attributes {stable_mosaic.version = 11 : i64} {
  func.func @ln_proj_kernel(%arg0: i32, %arg1: i32, %arg2: memref<16x128xf32, #tpu.memory_space<vmem>>, %arg3: memref<1x128xf32, #tpu.memory_space<vmem>>, %arg4: memref<1x128xf32, #tpu.memory_space<vmem>>, %arg5: memref<128x384xbf16, #tpu.memory_space<vmem>>, %arg6: memref<1x384xf32, #tpu.memory_space<vmem>>, %arg7: memref<16x384xbf16, #tpu.memory_space<vmem>>) attributes {dimension_semantics = [#tpu.dimension_semantics<parallel>, #tpu.dimension_semantics<parallel>], iteration_bounds = array<i64: 2, 1>, scalar_prefetch = 0 : i64, scratch_operands = 0 : i64, tpu.core_type = #tpu.core_type<tc>, window_params = [{transform_indices = @transform_0, window_bounds = array<i64: 16, 128>}, {pipeline_mode = #tpu.pipeline_mode<synchronous>, transform_indices = @transform_1, window_bounds = array<i64: 1, 128>}, {pipeline_mode = #tpu.pipeline_mode<synchronous>, transform_indices = @transform_2, window_bounds = array<i64: 1, 128>}, {transform_indices = @transform_3, window_bounds = array<i64: 128, 384>}, {transform_indices = @transform_4, window_bounds = array<i64: 1, 384>}, {transform_indices = @transform_5, window_bounds = array<i64: 16, 384>}]} {
    %c0 = arith.constant 0 : index
    %c0_0 = arith.constant 0 : index
    %0 = vector.load %arg2[%c0, %c0_0] : memref<16x128xf32, #tpu.memory_space<vmem>>, vector<16x128xf32>
    %cst = arith.constant dense<0.000000e+00> : vector<16xf32>
    %1 = vector.multi_reduction <add>, %0, %cst [1] : vector<16x128xf32> to vector<16xf32>
    %2 = vector.shape_cast %1 : vector<16xf32> to vector<16x1xf32>
    %cst_1 = arith.constant 1.280000e+02 : f32
    %3 = vector.broadcast %cst_1 : f32 to vector<16x1xf32>
    %4 = arith.divf %2, %3 : vector<16x1xf32>
    %5 = vector.broadcast %4 : vector<16x1xf32> to vector<16x128xf32>
    %6 = arith.subf %0, %5 : vector<16x128xf32>
    %7 = arith.mulf %6, %6 : vector<16x128xf32>
    %cst_2 = arith.constant dense<0.000000e+00> : vector<16xf32>
    %8 = vector.multi_reduction <add>, %7, %cst_2 [1] : vector<16x128xf32> to vector<16xf32>
    %9 = vector.shape_cast %8 : vector<16xf32> to vector<16x1xf32>
    %cst_3 = arith.constant 1.280000e+02 : f32
    %10 = vector.broadcast %cst_3 : f32 to vector<16x1xf32>
    %11 = arith.divf %9, %10 : vector<16x1xf32>
    %cst_4 = arith.constant 9.99999974E-6 : f32
    %12 = vector.broadcast %cst_4 : f32 to vector<16x1xf32>
    %13 = arith.addf %11, %12 : vector<16x1xf32>
    %14 = math.rsqrt %13 : vector<16x1xf32>
    %15 = vector.broadcast %14 : vector<16x1xf32> to vector<16x128xf32>
    %16 = arith.mulf %6, %15 : vector<16x128xf32>
    %c0_5 = arith.constant 0 : index
    %c0_6 = arith.constant 0 : index
    %17 = vector.load %arg3[%c0_5, %c0_6] : memref<1x128xf32, #tpu.memory_space<vmem>>, vector<1x128xf32>
    %18 = vector.broadcast %17 : vector<1x128xf32> to vector<16x128xf32>
    %19 = arith.mulf %16, %18 : vector<16x128xf32>
    %c0_7 = arith.constant 0 : index
    %c0_8 = arith.constant 0 : index
    %20 = vector.load %arg4[%c0_7, %c0_8] : memref<1x128xf32, #tpu.memory_space<vmem>>, vector<1x128xf32>
    %21 = vector.broadcast %20 : vector<1x128xf32> to vector<16x128xf32>
    %22 = arith.addf %19, %21 : vector<16x128xf32>
    %23 = arith.truncf %22 : vector<16x128xf32> to vector<16x128xbf16>
    %c0_9 = arith.constant 0 : index
    %c0_10 = arith.constant 0 : index
    %24 = vector.load %arg5[%c0_9, %c0_10] : memref<128x384xbf16, #tpu.memory_space<vmem>>, vector<128x384xbf16>
    %cst_11 = arith.constant dense<0.000000e+00> : vector<16x384xf32>
    %25 = tpu.matmul %23, %24, %cst_11 {dimension_numbers = #tpu.dot_dimension_numbers<[1], [0], [0], [1], [0, 0, 1, 1], [], []>} : vector<16x128xbf16>, vector<128x384xbf16>, vector<16x384xf32> -> vector<16x384xf32>
    %c0_12 = arith.constant 0 : index
    %c0_13 = arith.constant 0 : index
    %26 = vector.load %arg6[%c0_12, %c0_13] : memref<1x384xf32, #tpu.memory_space<vmem>>, vector<1x384xf32>
    %27 = vector.broadcast %26 : vector<1x384xf32> to vector<16x384xf32>
    %28 = arith.addf %25, %27 : vector<16x384xf32>
    %29 = arith.truncf %28 : vector<16x384xf32> to vector<16x384xbf16>
    %c0_14 = arith.constant 0 : index
    %c0_15 = arith.constant 0 : index
    %30 = vector.load %arg7[%c0_14, %c0_15] : memref<16x384xbf16, #tpu.memory_space<vmem>>, vector<16x384xbf16>
    tpu.vector_store %arg7[%c0_14, %c0_15], %29 {strides = array<i32>} : memref<16x384xbf16, #tpu.memory_space<vmem>>, vector<16x384xbf16>,
    return
  }
  func.func @transform_0(%arg0: i32, %arg1: i32) -> (i32, i32) {
    %c0_i32 = arith.constant 0 : i32
    %c0_i32_0 = arith.constant 0 : i32
    return %arg0, %c0_i32 : i32, i32
  }
  func.func @transform_1(%arg0: i32, %arg1: i32) -> (i32, i32) {
    %c0_i32 = arith.constant 0 : i32
    %c0_i32_0 = arith.constant 0 : i32
    %c0_i32_1 = arith.constant 0 : i32
    return %c0_i32, %c0_i32_0 : i32, i32
  }
  func.func @transform_2(%arg0: i32, %arg1: i32) -> (i32, i32) {
    %c0_i32 = arith.constant 0 : i32
    %c0_i32_0 = arith.constant 0 : i32
    %c0_i32_1 = arith.constant 0 : i32
    return %c0_i32, %c0_i32_0 : i32, i32
  }
  func.func @transform_3(%arg0: i32, %arg1: i32) -> (i32, i32) {
    %c0_i32 = arith.constant 0 : i32
    %c0_i32_0 = arith.constant 0 : i32
    return %c0_i32, %arg1 : i32, i32
  }
  func.func @transform_4(%arg0: i32, %arg1: i32) -> (i32, i32) {
    %c0_i32 = arith.constant 0 : i32
    %c0_i32_0 = arith.constant 0 : i32
    return %c0_i32, %arg1 : i32, i32
  }
  func.func @transform_5(%arg0: i32, %arg1: i32) -> (i32, i32) {
    %c0_i32 = arith.constant 0 : i32
    return %arg0, %arg1 : i32, i32
  }
}

module attributes {stable_mosaic.version = 11 : i64} {
  func.func @ln_proj_kernel(%arg0: i32, %arg1: i32, %arg2: memref<16x128xf32, #tpu.memory_space<vmem>>, %arg3: memref<1x128xf32, #tpu.memory_space<vmem>>, %arg4: memref<1x128xf32, #tpu.memory_space<vmem>>, %arg5: memref<128x128xbf16, #tpu.memory_space<vmem>>, %arg6: memref<1x128xf32, #tpu.memory_space<vmem>>, %arg7: memref<16x128xbf16, #tpu.memory_space<vmem>>) attributes {dimension_semantics = [#tpu.dimension_semantics<parallel>, #tpu.dimension_semantics<parallel>], iteration_bounds = array<i64: 2, 1>, scalar_prefetch = 0 : i64, scratch_operands = 0 : i64, tpu.core_type = #tpu.core_type<tc>, window_params = [{transform_indices = @transform_0, window_bounds = array<i64: 16, 128>}, {pipeline_mode = #tpu.pipeline_mode<synchronous>, transform_indices = @transform_1, window_bounds = array<i64: 1, 128>}, {pipeline_mode = #tpu.pipeline_mode<synchronous>, transform_indices = @transform_2, window_bounds = array<i64: 1, 128>}, {transform_indices = @transform_3, window_bounds = array<i64: 128, 128>}, {transform_indices = @transform_4, window_bounds = array<i64: 1, 128>}, {transform_indices = @transform_5, window_bounds = array<i64: 16, 128>}]} {
    %c0 = arith.constant 0 : index
    %c0_0 = arith.constant 0 : index
    %0 = vector.load %arg2[%c0, %c0_0] : memref<16x128xf32, #tpu.memory_space<vmem>>, vector<16x128xf32>
    %cst = arith.constant dense<0.000000e+00> : vector<16xf32>
    %1 = vector.multi_reduction <add>, %0, %cst [1] : vector<16x128xf32> to vector<16xf32>
    %2 = vector.shape_cast %1 : vector<16xf32> to vector<16x1xf32>
    %cst_1 = arith.constant 1.280000e+02 : f32
    %3 = vector.broadcast %cst_1 : f32 to vector<16x1xf32>
    %4 = arith.divf %2, %3 : vector<16x1xf32>
    %5 = vector.broadcast %4 : vector<16x1xf32> to vector<16x128xf32>
    %6 = arith.subf %0, %5 : vector<16x128xf32>
    %7 = arith.mulf %6, %6 : vector<16x128xf32>
    %cst_2 = arith.constant dense<0.000000e+00> : vector<16xf32>
    %8 = vector.multi_reduction <add>, %7, %cst_2 [1] : vector<16x128xf32> to vector<16xf32>
    %9 = vector.shape_cast %8 : vector<16xf32> to vector<16x1xf32>
    %cst_3 = arith.constant 1.280000e+02 : f32
    %10 = vector.broadcast %cst_3 : f32 to vector<16x1xf32>
    %11 = arith.divf %9, %10 : vector<16x1xf32>
    %cst_4 = arith.constant 9.99999974E-6 : f32
    %12 = vector.broadcast %cst_4 : f32 to vector<16x1xf32>
    %13 = arith.addf %11, %12 : vector<16x1xf32>
    %14 = math.rsqrt %13 : vector<16x1xf32>
    %15 = vector.broadcast %14 : vector<16x1xf32> to vector<16x128xf32>
    %16 = arith.mulf %6, %15 : vector<16x128xf32>
    %c0_5 = arith.constant 0 : index
    %c0_6 = arith.constant 0 : index
    %17 = vector.load %arg3[%c0_5, %c0_6] : memref<1x128xf32, #tpu.memory_space<vmem>>, vector<1x128xf32>
    %18 = vector.broadcast %17 : vector<1x128xf32> to vector<16x128xf32>
    %19 = arith.mulf %16, %18 : vector<16x128xf32>
    %c0_7 = arith.constant 0 : index
    %c0_8 = arith.constant 0 : index
    %20 = vector.load %arg4[%c0_7, %c0_8] : memref<1x128xf32, #tpu.memory_space<vmem>>, vector<1x128xf32>
    %21 = vector.broadcast %20 : vector<1x128xf32> to vector<16x128xf32>
    %22 = arith.addf %19, %21 : vector<16x128xf32>
    %23 = arith.truncf %22 : vector<16x128xf32> to vector<16x128xbf16>
    %c0_9 = arith.constant 0 : index
    %c0_10 = arith.constant 0 : index
    %24 = vector.load %arg5[%c0_9, %c0_10] : memref<128x128xbf16, #tpu.memory_space<vmem>>, vector<128x128xbf16>
    %cst_11 = arith.constant dense<0.000000e+00> : vector<16x128xf32>
    %25 = tpu.matmul %23, %24, %cst_11 {dimension_numbers = #tpu.dot_dimension_numbers<[1], [0], [0], [1], [0, 0, 1, 1], [], []>} : vector<16x128xbf16>, vector<128x128xbf16>, vector<16x128xf32> -> vector<16x128xf32>
    %c0_12 = arith.constant 0 : index
    %c0_13 = arith.constant 0 : index
    %26 = vector.load %arg6[%c0_12, %c0_13] : memref<1x128xf32, #tpu.memory_space<vmem>>, vector<1x128xf32>
    %27 = vector.broadcast %26 : vector<1x128xf32> to vector<16x128xf32>
    %28 = arith.addf %25, %27 : vector<16x128xf32>
    %29 = arith.truncf %28 : vector<16x128xf32> to vector<16x128xbf16>
    %c0_14 = arith.constant 0 : index
    %c0_15 = arith.constant 0 : index
    %30 = vector.load %arg7[%c0_14, %c0_15] : memref<16x128xbf16, #tpu.memory_space<vmem>>, vector<16x128xbf16>
    tpu.vector_store %arg7[%c0_14, %c0_15], %29 {strides = array<i32>} : memref<16x128xbf16, #tpu.memory_space<vmem>>, vector<16x128xbf16>,
    return
  }
  func.func @transform_0(%arg0: i32, %arg1: i32) -> (i32, i32) {
    %c0_i32 = arith.constant 0 : i32
    %c0_i32_0 = arith.constant 0 : i32
    return %arg0, %c0_i32 : i32, i32
  }
  func.func @transform_1(%arg0: i32, %arg1: i32) -> (i32, i32) {
    %c0_i32 = arith.constant 0 : i32
    %c0_i32_0 = arith.constant 0 : i32
    %c0_i32_1 = arith.constant 0 : i32
    return %c0_i32, %c0_i32_0 : i32, i32
  }
  func.func @transform_2(%arg0: i32, %arg1: i32) -> (i32, i32) {
    %c0_i32 = arith.constant 0 : i32
    %c0_i32_0 = arith.constant 0 : i32
    %c0_i32_1 = arith.constant 0 : i32
    return %c0_i32, %c0_i32_0 : i32, i32
  }
  func.func @transform_3(%arg0: i32, %arg1: i32) -> (i32, i32) {
    %c0_i32 = arith.constant 0 : i32
    %c0_i32_0 = arith.constant 0 : i32
    return %c0_i32, %arg1 : i32, i32
  }
  func.func @transform_4(%arg0: i32, %arg1: i32) -> (i32, i32) {
    %c0_i32 = arith.constant 0 : i32
    %c0_i32_0 = arith.constant 0 : i32
    return %c0_i32, %arg1 : i32, i32
  }
  func.func @transform_5(%arg0: i32, %arg1: i32) -> (i32, i32) {
    %c0_i32 = arith.constant 0 : i32
    return %arg0, %arg1 : i32, i32
  }
}

module attributes {stable_mosaic.version = 11 : i64} {
  func.func @attn_proj_kernel(%arg0: i32, %arg1: i32, %arg2: memref<1x8x1x4x32xbf16, #tpu.memory_space<vmem>>, %arg3: memref<1x16x1x4x32xbf16, #tpu.memory_space<vmem>>, %arg4: memref<1x16x1x4x32xbf16, #tpu.memory_space<vmem>>, %arg5: memref<1x8x16xf32, #tpu.memory_space<vmem>>, %arg6: memref<128x128xbf16, #tpu.memory_space<vmem>>, %arg7: memref<1x128xf32, #tpu.memory_space<vmem>>, %arg8: memref<1x8x128xf32, #tpu.memory_space<vmem>>, %arg9: memref<1x8x128xf32, #tpu.memory_space<vmem>>) attributes {dimension_semantics = [#tpu.dimension_semantics<parallel>, #tpu.dimension_semantics<parallel>], iteration_bounds = array<i64: 2, 2>, scalar_prefetch = 0 : i64, scratch_operands = 0 : i64, tpu.core_type = #tpu.core_type<tc>, window_params = [{transform_indices = @transform_0, window_bounds = array<i64: 1, 8, 1, 4, 32>}, {transform_indices = @transform_1, window_bounds = array<i64: 1, 16, 1, 4, 32>}, {transform_indices = @transform_2, window_bounds = array<i64: 1, 16, 1, 4, 32>}, {transform_indices = @transform_3, window_bounds = array<i64: 1, 8, 16>}, {pipeline_mode = #tpu.pipeline_mode<synchronous>, transform_indices = @transform_4, window_bounds = array<i64: 128, 128>}, {pipeline_mode = #tpu.pipeline_mode<synchronous>, transform_indices = @transform_5, window_bounds = array<i64: 1, 128>}, {transform_indices = @transform_6, window_bounds = array<i64: 1, 8, 128>}, {transform_indices = @transform_7, window_bounds = array<i64: 1, 8, 128>}]} {
    %c0 = arith.constant 0 : index
    %c0_0 = arith.constant 0 : index
    %c0_1 = arith.constant 0 : index
    %c0_2 = arith.constant 0 : index
    %c0_3 = arith.constant 0 : index
    %0 = vector.load %arg2[%c0, %c0_0, %c0_1, %c0_2, %c0_3] : memref<1x8x1x4x32xbf16, #tpu.memory_space<vmem>>, vector<1x8x1x4x32xbf16>
    %1 = vector.shape_cast %0 : vector<1x8x1x4x32xbf16> to vector<8x4x32xbf16>
    %c0_4 = arith.constant 0 : index
    %c0_5 = arith.constant 0 : index
    %c0_6 = arith.constant 0 : index
    %c0_7 = arith.constant 0 : index
    %c0_8 = arith.constant 0 : index
    %2 = vector.load %arg3[%c0_4, %c0_5, %c0_6, %c0_7, %c0_8] : memref<1x16x1x4x32xbf16, #tpu.memory_space<vmem>>, vector<1x16x1x4x32xbf16>
    %3 = vector.shape_cast %2 : vector<1x16x1x4x32xbf16> to vector<16x4x32xbf16>
    %c0_9 = arith.constant 0 : index
    %c0_10 = arith.constant 0 : index
    %c0_11 = arith.constant 0 : index
    %c0_12 = arith.constant 0 : index
    %c0_13 = arith.constant 0 : index
    %4 = vector.load %arg4[%c0_9, %c0_10, %c0_11, %c0_12, %c0_13] : memref<1x16x1x4x32xbf16, #tpu.memory_space<vmem>>, vector<1x16x1x4x32xbf16>
    %5 = vector.shape_cast %4 : vector<1x16x1x4x32xbf16> to vector<16x4x32xbf16>
    %c0_14 = arith.constant 0 : index
    %c0_15 = arith.constant 0 : index
    %c0_16 = arith.constant 0 : index
    %6 = vector.load %arg5[%c0_14, %c0_15, %c0_16] : memref<1x8x16xf32, #tpu.memory_space<vmem>>, vector<1x8x16xf32>
    %7 = vector.shape_cast %6 : vector<1x8x16xf32> to vector<8x16xf32>
    %c0_17 = arith.constant 0 : index
    %c0_18 = arith.constant 0 : index
    %c0_19 = arith.constant 0 : index
    %8 = vector.load %arg8[%c0_17, %c0_18, %c0_19] : memref<1x8x128xf32, #tpu.memory_space<vmem>>, vector<1x8x128xf32>
    %9 = vector.shape_cast %8 : vector<1x8x128xf32> to vector<8x128xf32>
    %c0_20 = arith.constant 0 : index
    %c0_21 = arith.constant 0 : index
    %10 = vector.load %arg7[%c0_20, %c0_21] : memref<1x128xf32, #tpu.memory_space<vmem>>, vector<1x128xf32>
    %11 = vector.broadcast %10 : vector<1x128xf32> to vector<8x128xf32>
    %12 = arith.addf %9, %11 : vector<8x128xf32>
    %13 = vector.extract_strided_slice %1 {offsets = [0, 0, 0], sizes = [8, 1, 32], strides = [1, 1, 1]} : vector<8x4x32xbf16> to vector<8x1x32xbf16>
    %14 = vector.shape_cast %13 : vector<8x1x32xbf16> to vector<8x32xbf16>
    %15 = vector.extract_strided_slice %3 {offsets = [0, 0, 0], sizes = [16, 1, 32], strides = [1, 1, 1]} : vector<16x4x32xbf16> to vector<16x1x32xbf16>
    %16 = vector.shape_cast %15 : vector<16x1x32xbf16> to vector<16x32xbf16>
    %17 = vector.extract_strided_slice %5 {offsets = [0, 0, 0], sizes = [16, 1, 32], strides = [1, 1, 1]} : vector<16x4x32xbf16> to vector<16x1x32xbf16>
    %18 = vector.shape_cast %17 : vector<16x1x32xbf16> to vector<16x32xbf16>
    %cst = arith.constant dense<0.000000e+00> : vector<8x16xf32>
    %19 = tpu.matmul %14, %16, %cst {dimension_numbers = #tpu.dot_dimension_numbers<[1], [1], [0], [0], [0, 0, 1, 0], [], []>} : vector<8x32xbf16>, vector<16x32xbf16>, vector<8x16xf32> -> vector<8x16xf32>
    %20 = arith.addf %19, %7 : vector<8x16xf32>
    %cst_22 = arith.constant dense<0xFF800000> : vector<8xf32>
    %21 = vector.multi_reduction <maximumf>, %20, %cst_22 [1] : vector<8x16xf32> to vector<8xf32>
    %22 = vector.shape_cast %21 : vector<8xf32> to vector<8x1xf32>
    %23 = vector.broadcast %22 : vector<8x1xf32> to vector<8x16xf32>
    %24 = arith.subf %20, %23 : vector<8x16xf32>
    %25 = math.exp %24 : vector<8x16xf32>
    %cst_23 = arith.constant dense<0.000000e+00> : vector<8xf32>
    %26 = vector.multi_reduction <add>, %25, %cst_23 [1] : vector<8x16xf32> to vector<8xf32>
    %27 = vector.shape_cast %26 : vector<8xf32> to vector<8x1xf32>
    %28 = tpu.reciprocal %27 {approx = true} : vector<8x1xf32> -> vector<8x1xf32>
    %29 = vector.broadcast %28 : vector<8x1xf32> to vector<8x16xf32>
    %30 = arith.mulf %25, %29 : vector<8x16xf32>
    %31 = arith.truncf %30 : vector<8x16xf32> to vector<8x16xbf16>
    %cst_24 = arith.constant dense<0.000000e+00> : vector<8x32xf32>
    %32 = tpu.matmul %31, %18, %cst_24 {dimension_numbers = #tpu.dot_dimension_numbers<[1], [0], [0], [1], [0, 0, 1, 1], [], []>} : vector<8x16xbf16>, vector<16x32xbf16>, vector<8x32xf32> -> vector<8x32xf32>
    %c0_25 = arith.constant 0 : index
    %c0_26 = arith.constant 0 : index
    %33 = vector.load %arg6[%c0_25, %c0_26] : memref<128x128xbf16, #tpu.memory_space<vmem>>, vector<32x128xbf16>
    %34 = arith.truncf %32 : vector<8x32xf32> to vector<8x32xbf16>
    %cst_27 = arith.constant dense<0.000000e+00> : vector<8x128xf32>
    %35 = tpu.matmul %34, %33, %cst_27 {dimension_numbers = #tpu.dot_dimension_numbers<[1], [0], [0], [1], [0, 0, 1, 1], [], []>} : vector<8x32xbf16>, vector<32x128xbf16>, vector<8x128xf32> -> vector<8x128xf32>
    %36 = arith.addf %12, %35 : vector<8x128xf32>
    %37 = vector.extract_strided_slice %1 {offsets = [0, 1, 0], sizes = [8, 1, 32], strides = [1, 1, 1]} : vector<8x4x32xbf16> to vector<8x1x32xbf16>
    %38 = vector.shape_cast %37 : vector<8x1x32xbf16> to vector<8x32xbf16>
    %39 = vector.extract_strided_slice %3 {offsets = [0, 1, 0], sizes = [16, 1, 32], strides = [1, 1, 1]} : vector<16x4x32xbf16> to vector<16x1x32xbf16>
    %40 = vector.shape_cast %39 : vector<16x1x32xbf16> to vector<16x32xbf16>
    %41 = vector.extract_strided_slice %5 {offsets = [0, 1, 0], sizes = [16, 1, 32], strides = [1, 1, 1]} : vector<16x4x32xbf16> to vector<16x1x32xbf16>
    %42 = vector.shape_cast %41 : vector<16x1x32xbf16> to vector<16x32xbf16>
    %cst_28 = arith.constant dense<0.000000e+00> : vector<8x16xf32>
    %43 = tpu.matmul %38, %40, %cst_28 {dimension_numbers = #tpu.dot_dimension_numbers<[1], [1], [0], [0], [0, 0, 1, 0], [], []>} : vector<8x32xbf16>, vector<16x32xbf16>, vector<8x16xf32> -> vector<8x16xf32>
    %44 = arith.addf %43, %7 : vector<8x16xf32>
    %cst_29 = arith.constant dense<0xFF800000> : vector<8xf32>
    %45 = vector.multi_reduction <maximumf>, %44, %cst_29 [1] : vector<8x16xf32> to vector<8xf32>
    %46 = vector.shape_cast %45 : vector<8xf32> to vector<8x1xf32>
    %47 = vector.broadcast %46 : vector<8x1xf32> to vector<8x16xf32>
    %48 = arith.subf %44, %47 : vector<8x16xf32>
    %49 = math.exp %48 : vector<8x16xf32>
    %cst_30 = arith.constant dense<0.000000e+00> : vector<8xf32>
    %50 = vector.multi_reduction <add>, %49, %cst_30 [1] : vector<8x16xf32> to vector<8xf32>
    %51 = vector.shape_cast %50 : vector<8xf32> to vector<8x1xf32>
    %52 = tpu.reciprocal %51 {approx = true} : vector<8x1xf32> -> vector<8x1xf32>
    %53 = vector.broadcast %52 : vector<8x1xf32> to vector<8x16xf32>
    %54 = arith.mulf %49, %53 : vector<8x16xf32>
    %55 = arith.truncf %54 : vector<8x16xf32> to vector<8x16xbf16>
    %cst_31 = arith.constant dense<0.000000e+00> : vector<8x32xf32>
    %56 = tpu.matmul %55, %42, %cst_31 {dimension_numbers = #tpu.dot_dimension_numbers<[1], [0], [0], [1], [0, 0, 1, 1], [], []>} : vector<8x16xbf16>, vector<16x32xbf16>, vector<8x32xf32> -> vector<8x32xf32>
    %c32 = arith.constant 32 : index
    %c0_32 = arith.constant 0 : index
    %57 = vector.load %arg6[%c32, %c0_32] : memref<128x128xbf16, #tpu.memory_space<vmem>>, vector<32x128xbf16>
    %58 = arith.truncf %56 : vector<8x32xf32> to vector<8x32xbf16>
    %cst_33 = arith.constant dense<0.000000e+00> : vector<8x128xf32>
    %59 = tpu.matmul %58, %57, %cst_33 {dimension_numbers = #tpu.dot_dimension_numbers<[1], [0], [0], [1], [0, 0, 1, 1], [], []>} : vector<8x32xbf16>, vector<32x128xbf16>, vector<8x128xf32> -> vector<8x128xf32>
    %60 = arith.addf %36, %59 : vector<8x128xf32>
    %61 = vector.extract_strided_slice %1 {offsets = [0, 2, 0], sizes = [8, 1, 32], strides = [1, 1, 1]} : vector<8x4x32xbf16> to vector<8x1x32xbf16>
    %62 = vector.shape_cast %61 : vector<8x1x32xbf16> to vector<8x32xbf16>
    %63 = vector.extract_strided_slice %3 {offsets = [0, 2, 0], sizes = [16, 1, 32], strides = [1, 1, 1]} : vector<16x4x32xbf16> to vector<16x1x32xbf16>
    %64 = vector.shape_cast %63 : vector<16x1x32xbf16> to vector<16x32xbf16>
    %65 = vector.extract_strided_slice %5 {offsets = [0, 2, 0], sizes = [16, 1, 32], strides = [1, 1, 1]} : vector<16x4x32xbf16> to vector<16x1x32xbf16>
    %66 = vector.shape_cast %65 : vector<16x1x32xbf16> to vector<16x32xbf16>
    %cst_34 = arith.constant dense<0.000000e+00> : vector<8x16xf32>
    %67 = tpu.matmul %62, %64, %cst_34 {dimension_numbers = #tpu.dot_dimension_numbers<[1], [1], [0], [0], [0, 0, 1, 0], [], []>} : vector<8x32xbf16>, vector<16x32xbf16>, vector<8x16xf32> -> vector<8x16xf32>
    %68 = arith.addf %67, %7 : vector<8x16xf32>
    %cst_35 = arith.constant dense<0xFF800000> : vector<8xf32>
    %69 = vector.multi_reduction <maximumf>, %68, %cst_35 [1] : vector<8x16xf32> to vector<8xf32>
    %70 = vector.shape_cast %69 : vector<8xf32> to vector<8x1xf32>
    %71 = vector.broadcast %70 : vector<8x1xf32> to vector<8x16xf32>
    %72 = arith.subf %68, %71 : vector<8x16xf32>
    %73 = math.exp %72 : vector<8x16xf32>
    %cst_36 = arith.constant dense<0.000000e+00> : vector<8xf32>
    %74 = vector.multi_reduction <add>, %73, %cst_36 [1] : vector<8x16xf32> to vector<8xf32>
    %75 = vector.shape_cast %74 : vector<8xf32> to vector<8x1xf32>
    %76 = tpu.reciprocal %75 {approx = true} : vector<8x1xf32> -> vector<8x1xf32>
    %77 = vector.broadcast %76 : vector<8x1xf32> to vector<8x16xf32>
    %78 = arith.mulf %73, %77 : vector<8x16xf32>
    %79 = arith.truncf %78 : vector<8x16xf32> to vector<8x16xbf16>
    %cst_37 = arith.constant dense<0.000000e+00> : vector<8x32xf32>
    %80 = tpu.matmul %79, %66, %cst_37 {dimension_numbers = #tpu.dot_dimension_numbers<[1], [0], [0], [1], [0, 0, 1, 1], [], []>} : vector<8x16xbf16>, vector<16x32xbf16>, vector<8x32xf32> -> vector<8x32xf32>
    %c64 = arith.constant 64 : index
    %c0_38 = arith.constant 0 : index
    %81 = vector.load %arg6[%c64, %c0_38] : memref<128x128xbf16, #tpu.memory_space<vmem>>, vector<32x128xbf16>
    %82 = arith.truncf %80 : vector<8x32xf32> to vector<8x32xbf16>
    %cst_39 = arith.constant dense<0.000000e+00> : vector<8x128xf32>
    %83 = tpu.matmul %82, %81, %cst_39 {dimension_numbers = #tpu.dot_dimension_numbers<[1], [0], [0], [1], [0, 0, 1, 1], [], []>} : vector<8x32xbf16>, vector<32x128xbf16>, vector<8x128xf32> -> vector<8x128xf32>
    %84 = arith.addf %60, %83 : vector<8x128xf32>
    %85 = vector.extract_strided_slice %1 {offsets = [0, 3, 0], sizes = [8, 1, 32], strides = [1, 1, 1]} : vector<8x4x32xbf16> to vector<8x1x32xbf16>
    %86 = vector.shape_cast %85 : vector<8x1x32xbf16> to vector<8x32xbf16>
    %87 = vector.extract_strided_slice %3 {offsets = [0, 3, 0], sizes = [16, 1, 32], strides = [1, 1, 1]} : vector<16x4x32xbf16> to vector<16x1x32xbf16>
    %88 = vector.shape_cast %87 : vector<16x1x32xbf16> to vector<16x32xbf16>
    %89 = vector.extract_strided_slice %5 {offsets = [0, 3, 0], sizes = [16, 1, 32], strides = [1, 1, 1]} : vector<16x4x32xbf16> to vector<16x1x32xbf16>
    %90 = vector.shape_cast %89 : vector<16x1x32xbf16> to vector<16x32xbf16>
    %cst_40 = arith.constant dense<0.000000e+00> : vector<8x16xf32>
    %91 = tpu.matmul %86, %88, %cst_40 {dimension_numbers = #tpu.dot_dimension_numbers<[1], [1], [0], [0], [0, 0, 1, 0], [], []>} : vector<8x32xbf16>, vector<16x32xbf16>, vector<8x16xf32> -> vector<8x16xf32>
    %92 = arith.addf %91, %7 : vector<8x16xf32>
    %cst_41 = arith.constant dense<0xFF800000> : vector<8xf32>
    %93 = vector.multi_reduction <maximumf>, %92, %cst_41 [1] : vector<8x16xf32> to vector<8xf32>
    %94 = vector.shape_cast %93 : vector<8xf32> to vector<8x1xf32>
    %95 = vector.broadcast %94 : vector<8x1xf32> to vector<8x16xf32>
    %96 = arith.subf %92, %95 : vector<8x16xf32>
    %97 = math.exp %96 : vector<8x16xf32>
    %cst_42 = arith.constant dense<0.000000e+00> : vector<8xf32>
    %98 = vector.multi_reduction <add>, %97, %cst_42 [1] : vector<8x16xf32> to vector<8xf32>
    %99 = vector.shape_cast %98 : vector<8xf32> to vector<8x1xf32>
    %100 = tpu.reciprocal %99 {approx = true} : vector<8x1xf32> -> vector<8x1xf32>
    %101 = vector.broadcast %100 : vector<8x1xf32> to vector<8x16xf32>
    %102 = arith.mulf %97, %101 : vector<8x16xf32>
    %103 = arith.truncf %102 : vector<8x16xf32> to vector<8x16xbf16>
    %cst_43 = arith.constant dense<0.000000e+00> : vector<8x32xf32>
    %104 = tpu.matmul %103, %90, %cst_43 {dimension_numbers = #tpu.dot_dimension_numbers<[1], [0], [0], [1], [0, 0, 1, 1], [], []>} : vector<8x16xbf16>, vector<16x32xbf16>, vector<8x32xf32> -> vector<8x32xf32>
    %c96 = arith.constant 96 : index
    %c0_44 = arith.constant 0 : index
    %105 = vector.load %arg6[%c96, %c0_44] : memref<128x128xbf16, #tpu.memory_space<vmem>>, vector<32x128xbf16>
    %106 = arith.truncf %104 : vector<8x32xf32> to vector<8x32xbf16>
    %cst_45 = arith.constant dense<0.000000e+00> : vector<8x128xf32>
    %107 = tpu.matmul %106, %105, %cst_45 {dimension_numbers = #tpu.dot_dimension_numbers<[1], [0], [0], [1], [0, 0, 1, 1], [], []>} : vector<8x32xbf16>, vector<32x128xbf16>, vector<8x128xf32> -> vector<8x128xf32>
    %108 = arith.addf %84, %107 : vector<8x128xf32>
    %c0_46 = arith.constant 0 : index
    %c0_47 = arith.constant 0 : index
    %c0_48 = arith.constant 0 : index
    %109 = vector.load %arg9[%c0_46, %c0_47, %c0_48] : memref<1x8x128xf32, #tpu.memory_space<vmem>>, vector<1x8x128xf32>
    %110 = vector.shape_cast %109 : vector<1x8x128xf32> to vector<8x128xf32>
    %111 = vector.shape_cast %108 : vector<8x128xf32> to vector<1x8x128xf32>
    tpu.vector_store %arg9[%c0_46, %c0_47, %c0_48], %111 {strides = array<i32>} : memref<1x8x128xf32, #tpu.memory_space<vmem>>, vector<1x8x128xf32>,
    return
  }
  func.func @transform_0(%arg0: i32, %arg1: i32) -> (i32, i32, i32, i32, i32) {
    %c0_i32 = arith.constant 0 : i32
    %c0_i32_0 = arith.constant 0 : i32
    %c0_i32_1 = arith.constant 0 : i32
    %c0_i32_2 = arith.constant 0 : i32
    return %arg0, %arg1, %c0_i32, %c0_i32_0, %c0_i32_1 : i32, i32, i32, i32, i32
  }
  func.func @transform_1(%arg0: i32, %arg1: i32) -> (i32, i32, i32, i32, i32) {
    %c0_i32 = arith.constant 0 : i32
    %c1_i32 = arith.constant 1 : i32
    %c0_i32_0 = arith.constant 0 : i32
    %c0_i32_1 = arith.constant 0 : i32
    %c0_i32_2 = arith.constant 0 : i32
    return %arg0, %c0_i32, %c1_i32, %c0_i32_0, %c0_i32_1 : i32, i32, i32, i32, i32
  }
  func.func @transform_2(%arg0: i32, %arg1: i32) -> (i32, i32, i32, i32, i32) {
    %c0_i32 = arith.constant 0 : i32
    %c2_i32 = arith.constant 2 : i32
    %c0_i32_0 = arith.constant 0 : i32
    %c0_i32_1 = arith.constant 0 : i32
    %c0_i32_2 = arith.constant 0 : i32
    return %arg0, %c0_i32, %c2_i32, %c0_i32_0, %c0_i32_1 : i32, i32, i32, i32, i32
  }
  func.func @transform_3(%arg0: i32, %arg1: i32) -> (i32, i32, i32) {
    %c0_i32 = arith.constant 0 : i32
    %c0_i32_0 = arith.constant 0 : i32
    return %arg0, %arg1, %c0_i32 : i32, i32, i32
  }
  func.func @transform_4(%arg0: i32, %arg1: i32) -> (i32, i32) {
    %c0_i32 = arith.constant 0 : i32
    %c0_i32_0 = arith.constant 0 : i32
    %c0_i32_1 = arith.constant 0 : i32
    return %c0_i32, %c0_i32_0 : i32, i32
  }
  func.func @transform_5(%arg0: i32, %arg1: i32) -> (i32, i32) {
    %c0_i32 = arith.constant 0 : i32
    %c0_i32_0 = arith.constant 0 : i32
    %c0_i32_1 = arith.constant 0 : i32
    return %c0_i32, %c0_i32_0 : i32, i32
  }
  func.func @transform_6(%arg0: i32, %arg1: i32) -> (i32, i32, i32) {
    %c0_i32 = arith.constant 0 : i32
    %c0_i32_0 = arith.constant 0 : i32
    return %arg0, %arg1, %c0_i32 : i32, i32, i32
  }
  func.func @transform_7(%arg0: i32, %arg1: i32) -> (i32, i32, i32) {
    %c0_i32 = arith.constant 0 : i32
    %c0_i32_0 = arith.constant 0 : i32
    return %arg0, %arg1, %c0_i32 : i32, i32, i32
  }
}

module attributes {stable_mosaic.version = 11 : i64} {
  func.func @ln_proj_kernel(%arg0: i32, %arg1: i32, %arg2: memref<16x128xf32, #tpu.memory_space<vmem>>, %arg3: memref<1x128xf32, #tpu.memory_space<vmem>>, %arg4: memref<1x128xf32, #tpu.memory_space<vmem>>, %arg5: memref<128x256xbf16, #tpu.memory_space<vmem>>, %arg6: memref<1x256xf32, #tpu.memory_space<vmem>>, %arg7: memref<16x256xbf16, #tpu.memory_space<vmem>>) attributes {dimension_semantics = [#tpu.dimension_semantics<parallel>, #tpu.dimension_semantics<parallel>], iteration_bounds = array<i64: 2, 1>, scalar_prefetch = 0 : i64, scratch_operands = 0 : i64, tpu.core_type = #tpu.core_type<tc>, window_params = [{transform_indices = @transform_0, window_bounds = array<i64: 16, 128>}, {pipeline_mode = #tpu.pipeline_mode<synchronous>, transform_indices = @transform_1, window_bounds = array<i64: 1, 128>}, {pipeline_mode = #tpu.pipeline_mode<synchronous>, transform_indices = @transform_2, window_bounds = array<i64: 1, 128>}, {transform_indices = @transform_3, window_bounds = array<i64: 128, 256>}, {transform_indices = @transform_4, window_bounds = array<i64: 1, 256>}, {transform_indices = @transform_5, window_bounds = array<i64: 16, 256>}]} {
    %c0 = arith.constant 0 : index
    %c0_0 = arith.constant 0 : index
    %0 = vector.load %arg2[%c0, %c0_0] : memref<16x128xf32, #tpu.memory_space<vmem>>, vector<16x128xf32>
    %1 = arith.truncf %0 : vector<16x128xf32> to vector<16x128xbf16>
    %c0_1 = arith.constant 0 : index
    %c0_2 = arith.constant 0 : index
    %2 = vector.load %arg5[%c0_1, %c0_2] : memref<128x256xbf16, #tpu.memory_space<vmem>>, vector<128x256xbf16>
    %cst = arith.constant dense<0.000000e+00> : vector<16x256xf32>
    %3 = tpu.matmul %1, %2, %cst {dimension_numbers = #tpu.dot_dimension_numbers<[1], [0], [0], [1], [0, 0, 1, 1], [], []>} : vector<16x128xbf16>, vector<128x256xbf16>, vector<16x256xf32> -> vector<16x256xf32>
    %c0_3 = arith.constant 0 : index
    %c0_4 = arith.constant 0 : index
    %4 = vector.load %arg6[%c0_3, %c0_4] : memref<1x256xf32, #tpu.memory_space<vmem>>, vector<1x256xf32>
    %5 = vector.broadcast %4 : vector<1x256xf32> to vector<16x256xf32>
    %6 = arith.addf %3, %5 : vector<16x256xf32>
    %7 = arith.truncf %6 : vector<16x256xf32> to vector<16x256xbf16>
    %c0_5 = arith.constant 0 : index
    %c0_6 = arith.constant 0 : index
    %8 = vector.load %arg7[%c0_5, %c0_6] : memref<16x256xbf16, #tpu.memory_space<vmem>>, vector<16x256xbf16>
    tpu.vector_store %arg7[%c0_5, %c0_6], %7 {strides = array<i32>} : memref<16x256xbf16, #tpu.memory_space<vmem>>, vector<16x256xbf16>,
    return
  }
  func.func @transform_0(%arg0: i32, %arg1: i32) -> (i32, i32) {
    %c0_i32 = arith.constant 0 : i32
    %c0_i32_0 = arith.constant 0 : i32
    return %arg0, %c0_i32 : i32, i32
  }
  func.func @transform_1(%arg0: i32, %arg1: i32) -> (i32, i32) {
    %c0_i32 = arith.constant 0 : i32
    %c0_i32_0 = arith.constant 0 : i32
    %c0_i32_1 = arith.constant 0 : i32
    return %c0_i32, %c0_i32_0 : i32, i32
  }
  func.func @transform_2(%arg0: i32, %arg1: i32) -> (i32, i32) {
    %c0_i32 = arith.constant 0 : i32
    %c0_i32_0 = arith.constant 0 : i32
    %c0_i32_1 = arith.constant 0 : i32
    return %c0_i32, %c0_i32_0 : i32, i32
  }
  func.func @transform_3(%arg0: i32, %arg1: i32) -> (i32, i32) {
    %c0_i32 = arith.constant 0 : i32
    %c0_i32_0 = arith.constant 0 : i32
    return %c0_i32, %arg1 : i32, i32
  }
  func.func @transform_4(%arg0: i32, %arg1: i32) -> (i32, i32) {
    %c0_i32 = arith.constant 0 : i32
    %c0_i32_0 = arith.constant 0 : i32
    return %c0_i32, %arg1 : i32, i32
  }
  func.func @transform_5(%arg0: i32, %arg1: i32) -> (i32, i32) {
    %c0_i32 = arith.constant 0 : i32
    return %arg0, %arg1 : i32, i32
  }
}

module attributes {stable_mosaic.version = 11 : i64} {
  func.func @attn_proj_kernel(%arg0: i32, %arg1: i32, %arg2: memref<1x8x4x32xbf16, #tpu.memory_space<vmem>>, %arg3: memref<1x16x1x4x32xbf16, #tpu.memory_space<vmem>>, %arg4: memref<1x16x1x4x32xbf16, #tpu.memory_space<vmem>>, %arg5: memref<1x8x16xf32, #tpu.memory_space<vmem>>, %arg6: memref<128x128xbf16, #tpu.memory_space<vmem>>, %arg7: memref<1x128xf32, #tpu.memory_space<vmem>>, %arg8: memref<1x8x128xf32, #tpu.memory_space<vmem>>, %arg9: memref<1x8x128xf32, #tpu.memory_space<vmem>>) attributes {dimension_semantics = [#tpu.dimension_semantics<parallel>, #tpu.dimension_semantics<parallel>], iteration_bounds = array<i64: 2, 2>, scalar_prefetch = 0 : i64, scratch_operands = 0 : i64, tpu.core_type = #tpu.core_type<tc>, window_params = [{transform_indices = @transform_0, window_bounds = array<i64: 1, 8, 4, 32>}, {transform_indices = @transform_1, window_bounds = array<i64: 1, 16, 1, 4, 32>}, {transform_indices = @transform_2, window_bounds = array<i64: 1, 16, 1, 4, 32>}, {transform_indices = @transform_3, window_bounds = array<i64: 1, 8, 16>}, {pipeline_mode = #tpu.pipeline_mode<synchronous>, transform_indices = @transform_4, window_bounds = array<i64: 128, 128>}, {pipeline_mode = #tpu.pipeline_mode<synchronous>, transform_indices = @transform_5, window_bounds = array<i64: 1, 128>}, {transform_indices = @transform_6, window_bounds = array<i64: 1, 8, 128>}, {transform_indices = @transform_7, window_bounds = array<i64: 1, 8, 128>}]} {
    %c0 = arith.constant 0 : index
    %c0_0 = arith.constant 0 : index
    %c0_1 = arith.constant 0 : index
    %c0_2 = arith.constant 0 : index
    %0 = vector.load %arg2[%c0, %c0_0, %c0_1, %c0_2] : memref<1x8x4x32xbf16, #tpu.memory_space<vmem>>, vector<1x8x4x32xbf16>
    %1 = vector.shape_cast %0 : vector<1x8x4x32xbf16> to vector<8x4x32xbf16>
    %c0_3 = arith.constant 0 : index
    %c0_4 = arith.constant 0 : index
    %c0_5 = arith.constant 0 : index
    %c0_6 = arith.constant 0 : index
    %c0_7 = arith.constant 0 : index
    %2 = vector.load %arg3[%c0_3, %c0_4, %c0_5, %c0_6, %c0_7] : memref<1x16x1x4x32xbf16, #tpu.memory_space<vmem>>, vector<1x16x1x4x32xbf16>
    %3 = vector.shape_cast %2 : vector<1x16x1x4x32xbf16> to vector<16x4x32xbf16>
    %c0_8 = arith.constant 0 : index
    %c0_9 = arith.constant 0 : index
    %c0_10 = arith.constant 0 : index
    %c0_11 = arith.constant 0 : index
    %c0_12 = arith.constant 0 : index
    %4 = vector.load %arg4[%c0_8, %c0_9, %c0_10, %c0_11, %c0_12] : memref<1x16x1x4x32xbf16, #tpu.memory_space<vmem>>, vector<1x16x1x4x32xbf16>
    %5 = vector.shape_cast %4 : vector<1x16x1x4x32xbf16> to vector<16x4x32xbf16>
    %c0_13 = arith.constant 0 : index
    %c0_14 = arith.constant 0 : index
    %c0_15 = arith.constant 0 : index
    %6 = vector.load %arg5[%c0_13, %c0_14, %c0_15] : memref<1x8x16xf32, #tpu.memory_space<vmem>>, vector<1x8x16xf32>
    %7 = vector.shape_cast %6 : vector<1x8x16xf32> to vector<8x16xf32>
    %c0_16 = arith.constant 0 : index
    %c0_17 = arith.constant 0 : index
    %c0_18 = arith.constant 0 : index
    %8 = vector.load %arg8[%c0_16, %c0_17, %c0_18] : memref<1x8x128xf32, #tpu.memory_space<vmem>>, vector<1x8x128xf32>
    %9 = vector.shape_cast %8 : vector<1x8x128xf32> to vector<8x128xf32>
    %c0_19 = arith.constant 0 : index
    %c0_20 = arith.constant 0 : index
    %10 = vector.load %arg7[%c0_19, %c0_20] : memref<1x128xf32, #tpu.memory_space<vmem>>, vector<1x128xf32>
    %11 = vector.broadcast %10 : vector<1x128xf32> to vector<8x128xf32>
    %12 = arith.addf %9, %11 : vector<8x128xf32>
    %13 = vector.extract_strided_slice %1 {offsets = [0, 0, 0], sizes = [8, 1, 32], strides = [1, 1, 1]} : vector<8x4x32xbf16> to vector<8x1x32xbf16>
    %14 = vector.shape_cast %13 : vector<8x1x32xbf16> to vector<8x32xbf16>
    %15 = vector.extract_strided_slice %3 {offsets = [0, 0, 0], sizes = [16, 1, 32], strides = [1, 1, 1]} : vector<16x4x32xbf16> to vector<16x1x32xbf16>
    %16 = vector.shape_cast %15 : vector<16x1x32xbf16> to vector<16x32xbf16>
    %17 = vector.extract_strided_slice %5 {offsets = [0, 0, 0], sizes = [16, 1, 32], strides = [1, 1, 1]} : vector<16x4x32xbf16> to vector<16x1x32xbf16>
    %18 = vector.shape_cast %17 : vector<16x1x32xbf16> to vector<16x32xbf16>
    %cst = arith.constant dense<0.000000e+00> : vector<8x16xf32>
    %19 = tpu.matmul %14, %16, %cst {dimension_numbers = #tpu.dot_dimension_numbers<[1], [1], [0], [0], [0, 0, 1, 0], [], []>} : vector<8x32xbf16>, vector<16x32xbf16>, vector<8x16xf32> -> vector<8x16xf32>
    %20 = arith.addf %19, %7 : vector<8x16xf32>
    %cst_21 = arith.constant dense<0xFF800000> : vector<8xf32>
    %21 = vector.multi_reduction <maximumf>, %20, %cst_21 [1] : vector<8x16xf32> to vector<8xf32>
    %22 = vector.shape_cast %21 : vector<8xf32> to vector<8x1xf32>
    %23 = vector.broadcast %22 : vector<8x1xf32> to vector<8x16xf32>
    %24 = arith.subf %20, %23 : vector<8x16xf32>
    %25 = math.exp %24 : vector<8x16xf32>
    %cst_22 = arith.constant dense<0.000000e+00> : vector<8xf32>
    %26 = vector.multi_reduction <add>, %25, %cst_22 [1] : vector<8x16xf32> to vector<8xf32>
    %27 = vector.shape_cast %26 : vector<8xf32> to vector<8x1xf32>
    %28 = tpu.reciprocal %27 {approx = true} : vector<8x1xf32> -> vector<8x1xf32>
    %29 = vector.broadcast %28 : vector<8x1xf32> to vector<8x16xf32>
    %30 = arith.mulf %25, %29 : vector<8x16xf32>
    %31 = arith.truncf %30 : vector<8x16xf32> to vector<8x16xbf16>
    %cst_23 = arith.constant dense<0.000000e+00> : vector<8x32xf32>
    %32 = tpu.matmul %31, %18, %cst_23 {dimension_numbers = #tpu.dot_dimension_numbers<[1], [0], [0], [1], [0, 0, 1, 1], [], []>} : vector<8x16xbf16>, vector<16x32xbf16>, vector<8x32xf32> -> vector<8x32xf32>
    %c0_24 = arith.constant 0 : index
    %c0_25 = arith.constant 0 : index
    %33 = vector.load %arg6[%c0_24, %c0_25] : memref<128x128xbf16, #tpu.memory_space<vmem>>, vector<32x128xbf16>
    %34 = arith.truncf %32 : vector<8x32xf32> to vector<8x32xbf16>
    %cst_26 = arith.constant dense<0.000000e+00> : vector<8x128xf32>
    %35 = tpu.matmul %34, %33, %cst_26 {dimension_numbers = #tpu.dot_dimension_numbers<[1], [0], [0], [1], [0, 0, 1, 1], [], []>} : vector<8x32xbf16>, vector<32x128xbf16>, vector<8x128xf32> -> vector<8x128xf32>
    %36 = arith.addf %12, %35 : vector<8x128xf32>
    %37 = vector.extract_strided_slice %1 {offsets = [0, 1, 0], sizes = [8, 1, 32], strides = [1, 1, 1]} : vector<8x4x32xbf16> to vector<8x1x32xbf16>
    %38 = vector.shape_cast %37 : vector<8x1x32xbf16> to vector<8x32xbf16>
    %39 = vector.extract_strided_slice %3 {offsets = [0, 1, 0], sizes = [16, 1, 32], strides = [1, 1, 1]} : vector<16x4x32xbf16> to vector<16x1x32xbf16>
    %40 = vector.shape_cast %39 : vector<16x1x32xbf16> to vector<16x32xbf16>
    %41 = vector.extract_strided_slice %5 {offsets = [0, 1, 0], sizes = [16, 1, 32], strides = [1, 1, 1]} : vector<16x4x32xbf16> to vector<16x1x32xbf16>
    %42 = vector.shape_cast %41 : vector<16x1x32xbf16> to vector<16x32xbf16>
    %cst_27 = arith.constant dense<0.000000e+00> : vector<8x16xf32>
    %43 = tpu.matmul %38, %40, %cst_27 {dimension_numbers = #tpu.dot_dimension_numbers<[1], [1], [0], [0], [0, 0, 1, 0], [], []>} : vector<8x32xbf16>, vector<16x32xbf16>, vector<8x16xf32> -> vector<8x16xf32>
    %44 = arith.addf %43, %7 : vector<8x16xf32>
    %cst_28 = arith.constant dense<0xFF800000> : vector<8xf32>
    %45 = vector.multi_reduction <maximumf>, %44, %cst_28 [1] : vector<8x16xf32> to vector<8xf32>
    %46 = vector.shape_cast %45 : vector<8xf32> to vector<8x1xf32>
    %47 = vector.broadcast %46 : vector<8x1xf32> to vector<8x16xf32>
    %48 = arith.subf %44, %47 : vector<8x16xf32>
    %49 = math.exp %48 : vector<8x16xf32>
    %cst_29 = arith.constant dense<0.000000e+00> : vector<8xf32>
    %50 = vector.multi_reduction <add>, %49, %cst_29 [1] : vector<8x16xf32> to vector<8xf32>
    %51 = vector.shape_cast %50 : vector<8xf32> to vector<8x1xf32>
    %52 = tpu.reciprocal %51 {approx = true} : vector<8x1xf32> -> vector<8x1xf32>
    %53 = vector.broadcast %52 : vector<8x1xf32> to vector<8x16xf32>
    %54 = arith.mulf %49, %53 : vector<8x16xf32>
    %55 = arith.truncf %54 : vector<8x16xf32> to vector<8x16xbf16>
    %cst_30 = arith.constant dense<0.000000e+00> : vector<8x32xf32>
    %56 = tpu.matmul %55, %42, %cst_30 {dimension_numbers = #tpu.dot_dimension_numbers<[1], [0], [0], [1], [0, 0, 1, 1], [], []>} : vector<8x16xbf16>, vector<16x32xbf16>, vector<8x32xf32> -> vector<8x32xf32>
    %c32 = arith.constant 32 : index
    %c0_31 = arith.constant 0 : index
    %57 = vector.load %arg6[%c32, %c0_31] : memref<128x128xbf16, #tpu.memory_space<vmem>>, vector<32x128xbf16>
    %58 = arith.truncf %56 : vector<8x32xf32> to vector<8x32xbf16>
    %cst_32 = arith.constant dense<0.000000e+00> : vector<8x128xf32>
    %59 = tpu.matmul %58, %57, %cst_32 {dimension_numbers = #tpu.dot_dimension_numbers<[1], [0], [0], [1], [0, 0, 1, 1], [], []>} : vector<8x32xbf16>, vector<32x128xbf16>, vector<8x128xf32> -> vector<8x128xf32>
    %60 = arith.addf %36, %59 : vector<8x128xf32>
    %61 = vector.extract_strided_slice %1 {offsets = [0, 2, 0], sizes = [8, 1, 32], strides = [1, 1, 1]} : vector<8x4x32xbf16> to vector<8x1x32xbf16>
    %62 = vector.shape_cast %61 : vector<8x1x32xbf16> to vector<8x32xbf16>
    %63 = vector.extract_strided_slice %3 {offsets = [0, 2, 0], sizes = [16, 1, 32], strides = [1, 1, 1]} : vector<16x4x32xbf16> to vector<16x1x32xbf16>
    %64 = vector.shape_cast %63 : vector<16x1x32xbf16> to vector<16x32xbf16>
    %65 = vector.extract_strided_slice %5 {offsets = [0, 2, 0], sizes = [16, 1, 32], strides = [1, 1, 1]} : vector<16x4x32xbf16> to vector<16x1x32xbf16>
    %66 = vector.shape_cast %65 : vector<16x1x32xbf16> to vector<16x32xbf16>
    %cst_33 = arith.constant dense<0.000000e+00> : vector<8x16xf32>
    %67 = tpu.matmul %62, %64, %cst_33 {dimension_numbers = #tpu.dot_dimension_numbers<[1], [1], [0], [0], [0, 0, 1, 0], [], []>} : vector<8x32xbf16>, vector<16x32xbf16>, vector<8x16xf32> -> vector<8x16xf32>
    %68 = arith.addf %67, %7 : vector<8x16xf32>
    %cst_34 = arith.constant dense<0xFF800000> : vector<8xf32>
    %69 = vector.multi_reduction <maximumf>, %68, %cst_34 [1] : vector<8x16xf32> to vector<8xf32>
    %70 = vector.shape_cast %69 : vector<8xf32> to vector<8x1xf32>
    %71 = vector.broadcast %70 : vector<8x1xf32> to vector<8x16xf32>
    %72 = arith.subf %68, %71 : vector<8x16xf32>
    %73 = math.exp %72 : vector<8x16xf32>
    %cst_35 = arith.constant dense<0.000000e+00> : vector<8xf32>
    %74 = vector.multi_reduction <add>, %73, %cst_35 [1] : vector<8x16xf32> to vector<8xf32>
    %75 = vector.shape_cast %74 : vector<8xf32> to vector<8x1xf32>
    %76 = tpu.reciprocal %75 {approx = true} : vector<8x1xf32> -> vector<8x1xf32>
    %77 = vector.broadcast %76 : vector<8x1xf32> to vector<8x16xf32>
    %78 = arith.mulf %73, %77 : vector<8x16xf32>
    %79 = arith.truncf %78 : vector<8x16xf32> to vector<8x16xbf16>
    %cst_36 = arith.constant dense<0.000000e+00> : vector<8x32xf32>
    %80 = tpu.matmul %79, %66, %cst_36 {dimension_numbers = #tpu.dot_dimension_numbers<[1], [0], [0], [1], [0, 0, 1, 1], [], []>} : vector<8x16xbf16>, vector<16x32xbf16>, vector<8x32xf32> -> vector<8x32xf32>
    %c64 = arith.constant 64 : index
    %c0_37 = arith.constant 0 : index
    %81 = vector.load %arg6[%c64, %c0_37] : memref<128x128xbf16, #tpu.memory_space<vmem>>, vector<32x128xbf16>
    %82 = arith.truncf %80 : vector<8x32xf32> to vector<8x32xbf16>
    %cst_38 = arith.constant dense<0.000000e+00> : vector<8x128xf32>
    %83 = tpu.matmul %82, %81, %cst_38 {dimension_numbers = #tpu.dot_dimension_numbers<[1], [0], [0], [1], [0, 0, 1, 1], [], []>} : vector<8x32xbf16>, vector<32x128xbf16>, vector<8x128xf32> -> vector<8x128xf32>
    %84 = arith.addf %60, %83 : vector<8x128xf32>
    %85 = vector.extract_strided_slice %1 {offsets = [0, 3, 0], sizes = [8, 1, 32], strides = [1, 1, 1]} : vector<8x4x32xbf16> to vector<8x1x32xbf16>
    %86 = vector.shape_cast %85 : vector<8x1x32xbf16> to vector<8x32xbf16>
    %87 = vector.extract_strided_slice %3 {offsets = [0, 3, 0], sizes = [16, 1, 32], strides = [1, 1, 1]} : vector<16x4x32xbf16> to vector<16x1x32xbf16>
    %88 = vector.shape_cast %87 : vector<16x1x32xbf16> to vector<16x32xbf16>
    %89 = vector.extract_strided_slice %5 {offsets = [0, 3, 0], sizes = [16, 1, 32], strides = [1, 1, 1]} : vector<16x4x32xbf16> to vector<16x1x32xbf16>
    %90 = vector.shape_cast %89 : vector<16x1x32xbf16> to vector<16x32xbf16>
    %cst_39 = arith.constant dense<0.000000e+00> : vector<8x16xf32>
    %91 = tpu.matmul %86, %88, %cst_39 {dimension_numbers = #tpu.dot_dimension_numbers<[1], [1], [0], [0], [0, 0, 1, 0], [], []>} : vector<8x32xbf16>, vector<16x32xbf16>, vector<8x16xf32> -> vector<8x16xf32>
    %92 = arith.addf %91, %7 : vector<8x16xf32>
    %cst_40 = arith.constant dense<0xFF800000> : vector<8xf32>
    %93 = vector.multi_reduction <maximumf>, %92, %cst_40 [1] : vector<8x16xf32> to vector<8xf32>
    %94 = vector.shape_cast %93 : vector<8xf32> to vector<8x1xf32>
    %95 = vector.broadcast %94 : vector<8x1xf32> to vector<8x16xf32>
    %96 = arith.subf %92, %95 : vector<8x16xf32>
    %97 = math.exp %96 : vector<8x16xf32>
    %cst_41 = arith.constant dense<0.000000e+00> : vector<8xf32>
    %98 = vector.multi_reduction <add>, %97, %cst_41 [1] : vector<8x16xf32> to vector<8xf32>
    %99 = vector.shape_cast %98 : vector<8xf32> to vector<8x1xf32>
    %100 = tpu.reciprocal %99 {approx = true} : vector<8x1xf32> -> vector<8x1xf32>
    %101 = vector.broadcast %100 : vector<8x1xf32> to vector<8x16xf32>
    %102 = arith.mulf %97, %101 : vector<8x16xf32>
    %103 = arith.truncf %102 : vector<8x16xf32> to vector<8x16xbf16>
    %cst_42 = arith.constant dense<0.000000e+00> : vector<8x32xf32>
    %104 = tpu.matmul %103, %90, %cst_42 {dimension_numbers = #tpu.dot_dimension_numbers<[1], [0], [0], [1], [0, 0, 1, 1], [], []>} : vector<8x16xbf16>, vector<16x32xbf16>, vector<8x32xf32> -> vector<8x32xf32>
    %c96 = arith.constant 96 : index
    %c0_43 = arith.constant 0 : index
    %105 = vector.load %arg6[%c96, %c0_43] : memref<128x128xbf16, #tpu.memory_space<vmem>>, vector<32x128xbf16>
    %106 = arith.truncf %104 : vector<8x32xf32> to vector<8x32xbf16>
    %cst_44 = arith.constant dense<0.000000e+00> : vector<8x128xf32>
    %107 = tpu.matmul %106, %105, %cst_44 {dimension_numbers = #tpu.dot_dimension_numbers<[1], [0], [0], [1], [0, 0, 1, 1], [], []>} : vector<8x32xbf16>, vector<32x128xbf16>, vector<8x128xf32> -> vector<8x128xf32>
    %108 = arith.addf %84, %107 : vector<8x128xf32>
    %c0_45 = arith.constant 0 : index
    %c0_46 = arith.constant 0 : index
    %c0_47 = arith.constant 0 : index
    %109 = vector.load %arg9[%c0_45, %c0_46, %c0_47] : memref<1x8x128xf32, #tpu.memory_space<vmem>>, vector<1x8x128xf32>
    %110 = vector.shape_cast %109 : vector<1x8x128xf32> to vector<8x128xf32>
    %111 = vector.shape_cast %108 : vector<8x128xf32> to vector<1x8x128xf32>
    tpu.vector_store %arg9[%c0_45, %c0_46, %c0_47], %111 {strides = array<i32>} : memref<1x8x128xf32, #tpu.memory_space<vmem>>, vector<1x8x128xf32>,
    return
  }
  func.func @transform_0(%arg0: i32, %arg1: i32) -> (i32, i32, i32, i32) {
    %c0_i32 = arith.constant 0 : i32
    %c0_i32_0 = arith.constant 0 : i32
    %c0_i32_1 = arith.constant 0 : i32
    return %arg0, %arg1, %c0_i32, %c0_i32_0 : i32, i32, i32, i32
  }
  func.func @transform_1(%arg0: i32, %arg1: i32) -> (i32, i32, i32, i32, i32) {
    %c0_i32 = arith.constant 0 : i32
    %c0_i32_0 = arith.constant 0 : i32
    %c0_i32_1 = arith.constant 0 : i32
    %c0_i32_2 = arith.constant 0 : i32
    %c0_i32_3 = arith.constant 0 : i32
    return %arg0, %c0_i32, %c0_i32_0, %c0_i32_1, %c0_i32_2 : i32, i32, i32, i32, i32
  }
  func.func @transform_2(%arg0: i32, %arg1: i32) -> (i32, i32, i32, i32, i32) {
    %c0_i32 = arith.constant 0 : i32
    %c1_i32 = arith.constant 1 : i32
    %c0_i32_0 = arith.constant 0 : i32
    %c0_i32_1 = arith.constant 0 : i32
    %c0_i32_2 = arith.constant 0 : i32
    return %arg0, %c0_i32, %c1_i32, %c0_i32_0, %c0_i32_1 : i32, i32, i32, i32, i32
  }
  func.func @transform_3(%arg0: i32, %arg1: i32) -> (i32, i32, i32) {
    %c0_i32 = arith.constant 0 : i32
    %c0_i32_0 = arith.constant 0 : i32
    return %arg0, %arg1, %c0_i32 : i32, i32, i32
  }
  func.func @transform_4(%arg0: i32, %arg1: i32) -> (i32, i32) {
    %c0_i32 = arith.constant 0 : i32
    %c0_i32_0 = arith.constant 0 : i32
    %c0_i32_1 = arith.constant 0 : i32
    return %c0_i32, %c0_i32_0 : i32, i32
  }
  func.func @transform_5(%arg0: i32, %arg1: i32) -> (i32, i32) {
    %c0_i32 = arith.constant 0 : i32
    %c0_i32_0 = arith.constant 0 : i32
    %c0_i32_1 = arith.constant 0 : i32
    return %c0_i32, %c0_i32_0 : i32, i32
  }
  func.func @transform_6(%arg0: i32, %arg1: i32) -> (i32, i32, i32) {
    %c0_i32 = arith.constant 0 : i32
    %c0_i32_0 = arith.constant 0 : i32
    return %arg0, %arg1, %c0_i32 : i32, i32, i32
  }
  func.func @transform_7(%arg0: i32, %arg1: i32) -> (i32, i32, i32) {
    %c0_i32 = arith.constant 0 : i32
    %c0_i32_0 = arith.constant 0 : i32
    return %arg0, %arg1, %c0_i32 : i32, i32, i32
  }
}

module attributes {stable_mosaic.version = 11 : i64} {
  func.func @ln_ffn_kernel(%arg0: i32, %arg1: i32, %arg2: memref<16x128xf32, #tpu.memory_space<vmem>>, %arg3: memref<1x128xf32, #tpu.memory_space<vmem>>, %arg4: memref<1x128xf32, #tpu.memory_space<vmem>>, %arg5: memref<128x256xbf16, #tpu.memory_space<vmem>>, %arg6: memref<1x256xf32, #tpu.memory_space<vmem>>, %arg7: memref<256x128xbf16, #tpu.memory_space<vmem>>, %arg8: memref<1x128xf32, #tpu.memory_space<vmem>>, %arg9: memref<16x128xf32, #tpu.memory_space<vmem>>, %arg10: memref<16x128xbf16, #tpu.memory_space<vmem>>, %arg11: memref<16x128xf32, #tpu.memory_space<vmem>>) attributes {dimension_semantics = [#tpu.dimension_semantics<parallel>, #tpu.dimension_semantics<arbitrary>], iteration_bounds = array<i64: 2, 2>, scalar_prefetch = 0 : i64, scratch_operands = 2 : i64, tpu.core_type = #tpu.core_type<tc>, window_params = [{transform_indices = @transform_0, window_bounds = array<i64: 16, 128>}, {pipeline_mode = #tpu.pipeline_mode<synchronous>, transform_indices = @transform_1, window_bounds = array<i64: 1, 128>}, {pipeline_mode = #tpu.pipeline_mode<synchronous>, transform_indices = @transform_2, window_bounds = array<i64: 1, 128>}, {transform_indices = @transform_3, window_bounds = array<i64: 128, 256>}, {transform_indices = @transform_4, window_bounds = array<i64: 1, 256>}, {transform_indices = @transform_5, window_bounds = array<i64: 256, 128>}, {pipeline_mode = #tpu.pipeline_mode<synchronous>, transform_indices = @transform_6, window_bounds = array<i64: 1, 128>}, {transform_indices = @transform_7, window_bounds = array<i64: 16, 128>}]} {
    %c0_i32 = arith.constant 0 : i32
    %0 = arith.cmpi eq, %arg1, %c0_i32 : i32
    %1 = arith.extui %0 : i1 to i32
    %c0_i32_0 = arith.constant 0 : i32
    %2 = arith.cmpi ne, %1, %c0_i32_0 : i32
    scf.if %2 {
      %c0_15 = arith.constant 0 : index
      %c0_16 = arith.constant 0 : index
      %20 = vector.load %arg2[%c0_15, %c0_16] : memref<16x128xf32, #tpu.memory_space<vmem>>, vector<16x128xf32>
      %cst_17 = arith.constant dense<0.000000e+00> : vector<16xf32>
      %21 = vector.multi_reduction <add>, %20, %cst_17 [1] : vector<16x128xf32> to vector<16xf32>
      %22 = vector.shape_cast %21 : vector<16xf32> to vector<16x1xf32>
      %cst_18 = arith.constant 1.280000e+02 : f32
      %23 = vector.broadcast %cst_18 : f32 to vector<16x1xf32>
      %24 = arith.divf %22, %23 : vector<16x1xf32>
      %25 = vector.broadcast %24 : vector<16x1xf32> to vector<16x128xf32>
      %26 = arith.subf %20, %25 : vector<16x128xf32>
      %27 = arith.mulf %26, %26 : vector<16x128xf32>
      %cst_19 = arith.constant dense<0.000000e+00> : vector<16xf32>
      %28 = vector.multi_reduction <add>, %27, %cst_19 [1] : vector<16x128xf32> to vector<16xf32>
      %29 = vector.shape_cast %28 : vector<16xf32> to vector<16x1xf32>
      %cst_20 = arith.constant 1.280000e+02 : f32
      %30 = vector.broadcast %cst_20 : f32 to vector<16x1xf32>
      %31 = arith.divf %29, %30 : vector<16x1xf32>
      %cst_21 = arith.constant 9.99999974E-6 : f32
      %32 = vector.broadcast %cst_21 : f32 to vector<16x1xf32>
      %33 = arith.addf %31, %32 : vector<16x1xf32>
      %34 = math.rsqrt %33 : vector<16x1xf32>
      %35 = vector.broadcast %34 : vector<16x1xf32> to vector<16x128xf32>
      %36 = arith.mulf %26, %35 : vector<16x128xf32>
      %c0_22 = arith.constant 0 : index
      %c0_23 = arith.constant 0 : index
      %37 = vector.load %arg3[%c0_22, %c0_23] : memref<1x128xf32, #tpu.memory_space<vmem>>, vector<1x128xf32>
      %38 = vector.broadcast %37 : vector<1x128xf32> to vector<16x128xf32>
      %39 = arith.mulf %36, %38 : vector<16x128xf32>
      %c0_24 = arith.constant 0 : index
      %c0_25 = arith.constant 0 : index
      %40 = vector.load %arg4[%c0_24, %c0_25] : memref<1x128xf32, #tpu.memory_space<vmem>>, vector<1x128xf32>
      %41 = vector.broadcast %40 : vector<1x128xf32> to vector<16x128xf32>
      %42 = arith.addf %39, %41 : vector<16x128xf32>
      %43 = arith.truncf %42 : vector<16x128xf32> to vector<16x128xbf16>
      %c0_26 = arith.constant 0 : index
      %c0_27 = arith.constant 0 : index
      %44 = vector.load %arg10[%c0_26, %c0_27] : memref<16x128xbf16, #tpu.memory_space<vmem>>, vector<16x128xbf16>
      tpu.vector_store %arg10[%c0_26, %c0_27], %43 {strides = array<i32>} : memref<16x128xbf16, #tpu.memory_space<vmem>>, vector<16x128xbf16>,
      %cst_28 = arith.constant 0.000000e+00 : f32
      %45 = vector.broadcast %cst_28 : f32 to vector<16x128xf32>
      %c0_29 = arith.constant 0 : index
      %c0_30 = arith.constant 0 : index
      %46 = vector.load %arg11[%c0_29, %c0_30] : memref<16x128xf32, #tpu.memory_space<vmem>>, vector<16x128xf32>
      tpu.vector_store %arg11[%c0_29, %c0_30], %45 {strides = array<i32>} : memref<16x128xf32, #tpu.memory_space<vmem>>, vector<16x128xf32>,
    } else {
    }
    %c0 = arith.constant 0 : index
    %c0_1 = arith.constant 0 : index
    %3 = vector.load %arg10[%c0, %c0_1] : memref<16x128xbf16, #tpu.memory_space<vmem>>, vector<16x128xbf16>
    %c0_2 = arith.constant 0 : index
    %c0_3 = arith.constant 0 : index
    %4 = vector.load %arg5[%c0_2, %c0_3] : memref<128x256xbf16, #tpu.memory_space<vmem>>, vector<128x256xbf16>
    %cst = arith.constant dense<0.000000e+00> : vector<16x256xf32>
    %5 = tpu.matmul %3, %4, %cst {dimension_numbers = #tpu.dot_dimension_numbers<[1], [0], [0], [1], [0, 0, 1, 1], [], []>} : vector<16x128xbf16>, vector<128x256xbf16>, vector<16x256xf32> -> vector<16x256xf32>
    %c0_4 = arith.constant 0 : index
    %c0_5 = arith.constant 0 : index
    %6 = vector.load %arg6[%c0_4, %c0_5] : memref<1x256xf32, #tpu.memory_space<vmem>>, vector<1x256xf32>
    %7 = vector.broadcast %6 : vector<1x256xf32> to vector<16x256xf32>
    %8 = arith.addf %5, %7 : vector<16x256xf32>
    %cst_6 = arith.constant 0.000000e+00 : f32
    %9 = vector.broadcast %cst_6 : f32 to vector<16x256xf32>
    %10 = arith.maximumf %8, %9 : vector<16x256xf32>
    %c0_7 = arith.constant 0 : index
    %c0_8 = arith.constant 0 : index
    %11 = vector.load %arg11[%c0_7, %c0_8] : memref<16x128xf32, #tpu.memory_space<vmem>>, vector<16x128xf32>
    %12 = arith.truncf %10 : vector<16x256xf32> to vector<16x256xbf16>
    %c0_9 = arith.constant 0 : index
    %c0_10 = arith.constant 0 : index
    %13 = vector.load %arg7[%c0_9, %c0_10] : memref<256x128xbf16, #tpu.memory_space<vmem>>, vector<256x128xbf16>
    %cst_11 = arith.constant dense<0.000000e+00> : vector<16x128xf32>
    %14 = tpu.matmul %12, %13, %cst_11 {dimension_numbers = #tpu.dot_dimension_numbers<[1], [0], [0], [1], [0, 0, 1, 1], [], []>} : vector<16x256xbf16>, vector<256x128xbf16>, vector<16x128xf32> -> vector<16x128xf32>
    %15 = arith.addf %11, %14 : vector<16x128xf32>
    %c0_12 = arith.constant 0 : index
    %c0_13 = arith.constant 0 : index
    %16 = vector.load %arg11[%c0_12, %c0_13] : memref<16x128xf32, #tpu.memory_space<vmem>>, vector<16x128xf32>
    tpu.vector_store %arg11[%c0_12, %c0_13], %15 {strides = array<i32>} : memref<16x128xf32, #tpu.memory_space<vmem>>, vector<16x128xf32>,
    %c1_i32 = arith.constant 1 : i32
    %17 = arith.cmpi eq, %arg1, %c1_i32 : i32
    %18 = arith.extui %17 : i1 to i32
    %c0_i32_14 = arith.constant 0 : i32
    %19 = arith.cmpi ne, %18, %c0_i32_14 : i32
    scf.if %19 {
      %c0_15 = arith.constant 0 : index
      %c0_16 = arith.constant 0 : index
      %20 = vector.load %arg2[%c0_15, %c0_16] : memref<16x128xf32, #tpu.memory_space<vmem>>, vector<16x128xf32>
      %c0_17 = arith.constant 0 : index
      %c0_18 = arith.constant 0 : index
      %21 = vector.load %arg11[%c0_17, %c0_18] : memref<16x128xf32, #tpu.memory_space<vmem>>, vector<16x128xf32>
      %22 = arith.addf %20, %21 : vector<16x128xf32>
      %c0_19 = arith.constant 0 : index
      %c0_20 = arith.constant 0 : index
      %23 = vector.load %arg8[%c0_19, %c0_20] : memref<1x128xf32, #tpu.memory_space<vmem>>, vector<1x128xf32>
      %24 = vector.broadcast %23 : vector<1x128xf32> to vector<16x128xf32>
      %25 = arith.addf %22, %24 : vector<16x128xf32>
      %c0_21 = arith.constant 0 : index
      %c0_22 = arith.constant 0 : index
      %26 = vector.load %arg9[%c0_21, %c0_22] : memref<16x128xf32, #tpu.memory_space<vmem>>, vector<16x128xf32>
      tpu.vector_store %arg9[%c0_21, %c0_22], %25 {strides = array<i32>} : memref<16x128xf32, #tpu.memory_space<vmem>>, vector<16x128xf32>,
    } else {
    }
    return
  }
  func.func @transform_0(%arg0: i32, %arg1: i32) -> (i32, i32) {
    %c0_i32 = arith.constant 0 : i32
    %c0_i32_0 = arith.constant 0 : i32
    return %arg0, %c0_i32 : i32, i32
  }
  func.func @transform_1(%arg0: i32, %arg1: i32) -> (i32, i32) {
    %c0_i32 = arith.constant 0 : i32
    %c0_i32_0 = arith.constant 0 : i32
    %c0_i32_1 = arith.constant 0 : i32
    return %c0_i32, %c0_i32_0 : i32, i32
  }
  func.func @transform_2(%arg0: i32, %arg1: i32) -> (i32, i32) {
    %c0_i32 = arith.constant 0 : i32
    %c0_i32_0 = arith.constant 0 : i32
    %c0_i32_1 = arith.constant 0 : i32
    return %c0_i32, %c0_i32_0 : i32, i32
  }
  func.func @transform_3(%arg0: i32, %arg1: i32) -> (i32, i32) {
    %c0_i32 = arith.constant 0 : i32
    %c0_i32_0 = arith.constant 0 : i32
    return %c0_i32, %arg1 : i32, i32
  }
  func.func @transform_4(%arg0: i32, %arg1: i32) -> (i32, i32) {
    %c0_i32 = arith.constant 0 : i32
    %c0_i32_0 = arith.constant 0 : i32
    return %c0_i32, %arg1 : i32, i32
  }
  func.func @transform_5(%arg0: i32, %arg1: i32) -> (i32, i32) {
    %c0_i32 = arith.constant 0 : i32
    %c0_i32_0 = arith.constant 0 : i32
    return %arg1, %c0_i32 : i32, i32
  }
  func.func @transform_6(%arg0: i32, %arg1: i32) -> (i32, i32) {
    %c0_i32 = arith.constant 0 : i32
    %c0_i32_0 = arith.constant 0 : i32
    %c0_i32_1 = arith.constant 0 : i32
    return %c0_i32, %c0_i32_0 : i32, i32
  }
  func.func @transform_7(%arg0: i32, %arg1: i32) -> (i32, i32) {
    %c0_i32 = arith.constant 0 : i32
    %c0_i32_0 = arith.constant 0 : i32
    return %arg0, %c0_i32 : i32, i32
  }
}

</mosaic_0001>

<bundles_post_ra>
// kernel: decoder_layer_forward.6
= control target key start
LH: loop header
LB: loop body
LE: loop exit
PB: predicated region body
PF: predicated region fallthrough
CT: control target
= control target key end

     0   :  { %10 = vsyncpa [#allocation3], 0  ;;  %s982_s18 = smov 0   ;;  %s984_s19 = smov 0   ;;  %s1089_s0 = inlined_call_operand.vmem [shape: f32[32,128], index: 0, kind: input, shape index: {}]   ;;  %s1090_s1 = inlined_call_operand.vmem [shape: f32[1,128], index: 1, kind: input, shape index: {}]   ;;  %s1091_s2 = inlined_call_operand.vmem [shape: f32[1,128], index: 2, kind: input, shape index: {}]   ;;  %s1092_s3 = inlined_call_operand.hbm [shape: bf16[128,384], index: 3, kind: input, shape index: {}]   ;;  %s1093_s4 = inlined_call_operand.vmem [shape: f32[1,384], index: 4, kind: input, shape index: {}]   ;;  %s1094_s5 = inlined_call_operand.vmem [shape: bf16[32,384], index: 5, kind: output, shape index: {}]  }
   0x1   :  { %s986_s20 = smov 0  }
   0x2 LB: > { %s736_s21 = sadd.s32 4294967295, %s944_s20   ;;  %s28_s22 = sadd.s32 1, %s940_s19  ;;  %s944_s20 = sphi %s986_s20, %s16_s20   ;;  %s940_s19 = sphi %s984_s19, %s1104_s19   ;;  %s936_s18 = sphi %s982_s18, %s1103_s18  }
   0x3   : > { %p30_p0 = scmp.ge.s32.totalorder %s28_s22, 2  ;;  %p738_p1 = scmp.ge.s32.totalorder %s944_s20, 1 }
   0x4   : > { %p181_p2 = scmp.lt.s32.totalorder %s944_s20, 3  ;;  %p1007_p4 = scmp.eq.s32.totalorder %s736_s21, 0 }
   0x5   : > { %s1106_s22 = smov (%p30_p0, %s28_s22), 0  ;;  %s946_s25 = smov [#allocation2]  }
   0x6   : > { %p1003_p3 = pnand %p738_p1, %p181_p2  ;;  %s202_s26 = sshll.u32 %s946_s25, 4  ;;  %s203_s26 = int_to_ptr.vmem [resolvable:$true] %s202_s26 }
   0x7   : > { %s1099_s24 = scalar_select %p1007_p4, 1, 0 }
   0x8   : > { %s1098_s23 = scalar_select %p1003_p3, 1, 0 }
   0x9   : > { %p818_p5 = pneg %p1003_p3  ;;  %s890_s30 = scalar_lea.hbm %s1092_s3, 3072 }
   0xa   : > { %p891_p7 = scmp.ne.s32.totalorder %s1092_s3, %s890_s30  ;;  %p897_p11 = scmp.lt.u32.totalorder %s890_s30, %s1092_s3 }
   0xb   : > { %p1015_p6 = pnand %p1007_p4, %p818_p5 }
   0xd   : > { %p892_p8 = pneg %p1015_p6 }
   0xf   : > { %p893_p9 = pnand %p892_p8, %p891_p7 }
  0x11   : > { %p894_p10 = pneg %p893_p9 }
  0x13   : > { %p899_p12 = pnand %p897_p11, %p894_p10 }
  0x15   : > { %902 = shalt.err (!%p899_p12)
}
  0x16   : > { %s903_s10 = scalar_lea.vmem %s203_s26, 3072  ;;  %p911_p2 = scmp.lt.s32.totalorder %s203_s26, %s203_s26 }
  0x17   : > { %p904_p13 = scmp.ne.s32.totalorder %s203_s26, %s903_s10  ;;  %p912_p5 = scmp.lt.s32.totalorder %s903_s10, %s903_s10 }
  0x19   : > { %p906_p0 = pnand %p904_p13, %p892_p8  ;;  %p913_p4 = por %p912_p5, %p911_p2 }
  0x1b   : > { %p907_p1 = pneg %p906_p0 }
  0x1d   : > { %p914_p3 = pnand %p913_p4, %p907_p1 }
  0x1f   : > { %917 = shalt.err (!%p914_p3)
}
  0x20   : > { %s947_s11 = smov 192   ;;  %s948_s12 = smov 12  }
  0x21   : > { %821 = dma.hbm_to_vmem [thread:$0]  (!%p1015_p6), %s1092_s3, 3072, %s203_s26, [#allocation3], %s947_s11, %s947_s11, %s948_s12  }
  0x22   : > { %p1101_p7 = scmp.ne.s32.totalorder %s1098_s23, 0 }
  0x23   : > { %p1102_p9 = scmp.ne.s32.totalorder (!%p1101_p7), %s1099_s24, 0 }
  0x24   : > { %235 = sbr.rel (%p1101_p7) target bundleno = 588 (0x24c), region = 40 }
  0x2b   : > { %931 = dma.done.wait (%p1102_p9), [#allocation3], 3072  }
  0x2c   : > { %933 = vsyncadd (%p1102_p9), [#allocation3], 4294964224  ;;  %s744_s15 = sshll.u32 %s936_s18, 1  ;;  %v854_v2 = vld [vmem:[#allocation2 + $0x4] ss:$12 sps:$4 sm:$0xff]   ;;  %v949_v4 = vmov 0.0   ;;  %v375_v53 = vlaneseq }
  0x2d   : > { %p273_p3 = scmp.lt.s32.totalorder %s744_s15, 3  ;;  %v856_v3 = vld [vmem:[#allocation2] ss:$12 sps:$4 sm:$0xff]   ;;  %793 = vmatprep.subr.bf16.mxu1 %v949_v4  ;;  %v857_v5 = vld [vmem:[#allocation2 + $0x8] ss:$12 sps:$4 sm:$0xff]   ;;  %518 = vmatprep.subr.bf16.mxu0 %v854_v2  ;;  %v950_v30 = vmov 0  }
  0x2e   : > { %v858_v6 = vld [vmem:[#allocation2 + $0x1c] ss:$12 sps:$4 sm:$0xff]   ;;  %519 = vmatpush1.bf16.msra.mxu0 %v856_v3  ;;  %794 = vmatpush3.bf16.msra.mxu1 %v857_v5  ;;  %v860_v15 = vld [vmem:[#allocation2 + $0x18] ss:$12 sps:$4 sm:$0xff]   ;;  %v861_v16 = vld [vmem:[#allocation2 + $0x20] ss:$12 sps:$4 sm:$0xff]  }
  0x2f   : > { %s1108_s15 = smov (!%p273_p3, %s744_s15), 3  ;;  %520 = vmatprep.subr.bf16.mxu0 %v858_v6  ;;  %795 = vmatprep.subr.bf16.mxu1 %v949_v4  ;;  %v862_v17 = vld [vmem:[#allocation2 + $0x34] ss:$12 sps:$4 sm:$0xff]   ;;  %v864_v18 = vld [vmem:[#allocation2 + $0x30] ss:$12 sps:$4 sm:$0xff]   ;;  %vm951_vm0 = vmmov 0  }
  0x30   : > { %s745_s16 = sshll.u32 %s1108_s15, 3  ;;  %v865_v19 = vld [vmem:[#allocation2 + $0x38] ss:$12 sps:$4 sm:$0xff]   ;;  %v868_v21 = vld [vmem:[#allocation2 + $0x48] ss:$12 sps:$4 sm:$0xff]   ;;  %550 = vmatprep.mubr.bf16.mxu0 %v950_v30  ;;  %809 = vmatprep.mubr.msk.bf16.mxu1 %vm951_vm0, %v949_v4  ;;  %v376_v54 = vshrl.u32 %v375_v53, 7 }
  0x31   : > { %s276_s25 = scalar_lea.vmem %s1089_s0, %s745_s16  ;;  %v866_v20 = vld [vmem:[#allocation2 + $0x4c] ss:$12 sps:$4 sm:$0xff]   ;;  %v869_v22 = vld [vmem:[#allocation2 + $0x50] ss:$12 sps:$4 sm:$0xff]   ;;  %v873_v25 = vld [vmem:[#allocation2 + $0x68] ss:$12 sps:$4 sm:$0xff]  }
  0x32   : > { %v297_v0 = vld [vmem:[%s276_s25] sm:$0xff]  ;;  %v298_v1 = vld [vmem:[%s276_s25 + $0x8] sm:$0xff]  ;;  %521 = vmatpush1.bf16.msra.mxu0 %v860_v15  ;;  %796 = vmatpush3.bf16.msra.mxu1 %v861_v16  ;;  %v880_v31 = vld [vmem:[#allocation2 + $0x90] ss:$12 sps:$4 sm:$0xff]   ;;  %v377_v55 = vsub.s32 0, %v376_v54  ;;  %v385_v56 = vsub.s32 2, %v376_v54 }
  0x33   : > { %299 = vadd.xlane.f32.xlu0 %v297_v0  ;;  %797 = vmatprep.subr.bf16.mxu1 %v949_v4  ;;  %v870_v23 = vld [vmem:[#allocation2 + $0x64] ss:$12 sps:$4 sm:$0xff]   ;;  %v872_v24 = vld [vmem:[#allocation2 + $0x60] ss:$12 sps:$4 sm:$0xff]   ;;  %v874_v26 = vld [vmem:[#allocation2 + $0x7c] ss:$12 sps:$4 sm:$0xff]  }
  0x34   : > { %522 = vmatprep.subr.bf16.mxu0 %v862_v17  ;;  %v876_v27 = vld [vmem:[#allocation2 + $0x78] ss:$12 sps:$4 sm:$0xff]   ;;  %v877_v28 = vld [vmem:[#allocation2 + $0x80] ss:$12 sps:$4 sm:$0xff]   ;;  %v884_v34 = vld [vmem:[#allocation2 + $0xa8] ss:$12 sps:$4 sm:$0xff]  }
  0x35   : > { %v878_v29 = vld [vmem:[#allocation2 + $0x94] ss:$12 sps:$4 sm:$0xff]   ;;  %v881_v32 = vld [vmem:[#allocation2 + $0x98] ss:$12 sps:$4 sm:$0xff]   ;;  %v885_v35 = vld [vmem:[#allocation2 + $0xb0] ss:$12 sps:$4 sm:$0xff]  }
  0x36   : > { %523 = vmatpush1.bf16.msra.mxu0 %v864_v18  ;;  %798 = vmatpush3.bf16.msra.mxu1 %v865_v19  ;;  %v882_v33 = vld [vmem:[#allocation2 + $0xac] ss:$12 sps:$4 sm:$0xff]   ;;  %v748_v44 = vld [vmem:[%s1090_s1] ss:$0 sm:$0xff]  ;;  %v381_v58 = vsub.s32 1, %v376_v54  ;;  %s813_s29 = smul.u32 12, %s1108_s15 }
  0x37   : > { %301 = vadd.xlane.f32.xlu0 %v298_v1  ;;  %799 = vmatprep.subr.bf16.mxu1 %v949_v4  ;;  %v749_v48 = vld [vmem:[%s1091_s2] ss:$0 sm:$0xff] }
  0x38   : > { %524 = vmatprep.subr.bf16.mxu0 %v866_v20  ;;  %v373_v57 = vld [vmem:[%s1093_s4] sm:$0x7]  ;;  %s293_s7 = scalar_lea.vmem %s1094_s5, %s813_s29 }
  0x39   : > { %v378_v59 = vrot.slane %v373_v57, %v377_v55  ;;  %v386_v60 = vrot.slane %v373_v57, %v385_v56  ;;  %v382_v61 = vrot.slane %v373_v57, %v381_v58 }
  0x3a   : > { %525 = vmatpush1.bf16.msra.mxu0 %v868_v21  ;;  %800 = vmatpush3.bf16.msra.mxu1 %v869_v22 }
  0x3b   : > { %801 = vmatprep.subr.bf16.mxu1 %v949_v4  ;;  %526 = vmatprep.subr.bf16.mxu0 %v870_v23 }
  0x3e   : > { %527 = vmatpush1.bf16.msra.mxu0 %v872_v24  ;;  %802 = vmatpush3.bf16.msra.mxu1 %v873_v25 }
  0x3f   : > { %528 = vmatprep.subr.bf16.mxu0 %v874_v26  ;;  %803 = vmatprep.subr.bf16.mxu1 %v949_v4 }
  0x42   : > { %529 = vmatpush1.bf16.msra.mxu0 %v876_v27  ;;  %804 = vmatpush3.bf16.msra.mxu1 %v877_v28 }
  0x43   : > { %530 = vmatprep.subr.bf16.mxu0 %v878_v29  ;;  %805 = vmatprep.subr.bf16.mxu1 %v949_v4 }
  0x46   : > { %531 = vmatpush1.bf16.msra.mxu0 %v880_v31  ;;  %806 = vmatpush3.bf16.msra.mxu1 %v881_v32 }
  0x47   : > { %532 = vmatprep.subr.bf16.mxu0 %v882_v33  ;;  %807 = vmatprep.subr.bf16.mxu1 %v949_v4 }
  0x4a   : > { %533 = vmatpush1.bf16.msra.mxu0 %v884_v34  ;;  %808 = vmatpush3.bf16.msra.mxu1 %v885_v35 }
  0xc0   : > { %v300_v7 = vpop.xlane.xlu0 %299 }
  0xc1   : > { %v304_v8 = vmul.f32 0.0078125, %v300_v7 }
  0xc3   : > { %v1050_v9 = vsub.f32 %v297_v0, %v304_v8 }
  0xc4   : > { %v302_v10 = vpop.xlane.xlu0 %301 }
  0xc5   : > { %v305_v11 = vmul.f32 0.0078125, %v302_v10  ;;  %v308_v12 = vmul.f32 %v1050_v9, %v1050_v9 }
  0xc7   : > { %v1054_v13 = vsub.f32 %v298_v1, %v305_v11  ;;  %310 = vadd.xlane.f32.xlu1 %v308_v12 }
  0xc9   : > { %v309_v14 = vmul.f32 %v1054_v13, %v1054_v13 }
  0xcb   : > { %312 = vadd.xlane.f32.xlu1 %v309_v14 }
 0x154   : > { %v311_v36 = vpop.xlane.xlu1 %310 }
 0x155   : > { %v314_v37 = vmul.f32 0.0078125, %v311_v36 }
 0x157   : > { %v316_v38 = vadd.f32 1e-05, %v314_v37 }
 0x158   : > { %v313_v39 = vpop.xlane.xlu1 %312 }
 0x159   : > { %886 = vrsqrt.f32 %v316_v38  ;;  %v315_v40 = vmul.f32 0.0078125, %v313_v39 }
 0x15b   : > { %v317_v41 = vadd.f32 1e-05, %v315_v40 }
 0x15d   : > { %888 = vrsqrt.f32 %v317_v41 }
 0x163   : > { %v887_v42 = vpop.eup %886 }
 0x164   : > { %v320_v43 = vmul.f32 %v887_v42, %v1050_v9 }
 0x166   : > { %v329_v47 = vmul.f32 %v748_v44, %v320_v43 }
 0x167   : > { %v889_v45 = vpop.eup %888 }
 0x168   : > { %v321_v46 = vmul.f32 %v889_v45, %v1054_v13  ;;  %v338_v50 = vadd.f32 %v749_v48, %v329_v47 }
 0x16a   : > { %v330_v49 = vmul.f32 %v748_v44, %v321_v46 }
 0x16c   : > { %v339_v51 = vadd.f32 %v749_v48, %v330_v49 }
 0x16e   : > { %v340_v52 = vpack.c.bf16 %v339_v51, %v338_v50 }
 0x170   : > { %551 = vmatmul.mubr.bf16.vlgmr.msra.gmra.mrb[0].mxu0 %v340_v52  ;;  %810 = vmatmul.mubr.bf16.vlgmr.msra.gmra.mrb[0].mxu1 %v340_v52 }
 0x243   : > { %v552_v62 = vpop.f32.mrb[0].mxu0  ;;  %v595_v63 = vpop.f32.mrb[0].mxu1 }
 0x244   : > { %v553_v0 = vadd.f32 %v552_v62, %v378_v59  ;;  %v596_v1 = vadd.f32 %v595_v63, %v386_v60  ;;  %v554_v2 = vpop.f32.mrb[1].mxu0  ;;  %v811_v3 = vpop.f32.mrb[1].mxu1 }
 0x245   : > { %v555_v4 = vadd.f32 %v554_v2, %v382_v61  ;;  %v556_v5 = vpop.f32.mrb[2].mxu0  ;;  %v598_v6 = vpop.f32.mrb[2].mxu1 }
 0x246   : > { %v781_v7 = vpack.c.bf16 %v596_v1, %v596_v1  ;;  %v557_v8 = vadd.f32 %v556_v5, %v378_v59  ;;  %v599_v9 = vadd.f32 %v598_v6, %v386_v60  ;;  %v558_v10 = vpop.f32.mrb[3].mxu0  ;;  %v812_v11 = vpop.f32.mrb[3].mxu1 }
 0x247   : > { %v780_v12 = vpack.c.bf16 %v555_v4, %v553_v0  ;;  %v559_v13 = vadd.f32 %v558_v10, %v382_v61 }
 0x248   : > { %623 = vst [vmem:[%s293_s7 + $0x8] sm:$0xf] %v781_v7  ;;  %v783_v14 = vpack.c.bf16 %v599_v9, %v599_v9 }
 0x249   : > { %622 = vst [vmem:[%s293_s7] sm:$0xff] %v780_v12  ;;  %v782_v15 = vpack.c.bf16 %v559_v13, %v557_v8 }
 0x24a   : > { %625 = vst [vmem:[%s293_s7 + $0x14] sm:$0xf] %v783_v14 }
 0x24b   : > { %624 = vst [vmem:[%s293_s7 + $0xc] sm:$0xff] %v782_v15 }
 0x24c PF: > { %s16_s20 = sadd.s32 1, %s944_s20   ;;  %s1103_s18 = smov %s940_s19 }
 0x24d   : > { %p13_p4 = scmp.ge.s32.totalorder %s16_s20, 4   ;;  %s1104_s19 = smov %s1106_s22 }
 0x24f   :  { %15 = sbr.rel (!%p13_p4) target bundleno = 2 (0x2), region = 79 }
 0x256   :  { %659 = vsyncpa [#allocation3], 1 }
 0x257   :  { %661 = vsyncpa [#allocation3 + $0x1], 1 }

// kernel: decoder_layer_forward.9
= control target key start
LH: loop header
LB: loop body
LE: loop exit
PB: predicated region body
PF: predicated region fallthrough
CT: control target
= control target key end

     0   :  { %s713_s18 = smov 0   ;;  %s715_s19 = smov 0   ;;  %s803_s0 = inlined_call_operand.vmem [shape: f32[32,128], index: 0, kind: input, shape index: {}]   ;;  %s804_s1 = inlined_call_operand.vmem [shape: f32[1,128], index: 1, kind: input, shape index: {}]   ;;  %s805_s2 = inlined_call_operand.vmem [shape: f32[1,128], index: 2, kind: input, shape index: {}]   ;;  %s806_s3 = inlined_call_operand.vmem [shape: bf16[128,256], index: 3, kind: input, shape index: {}]   ;;  %s807_s4 = inlined_call_operand.vmem [shape: f32[1,256], index: 4, kind: input, shape index: {}]   ;;  %s808_s5 = inlined_call_operand.vmem [shape: bf16[32,256], index: 5, kind: output, shape index: {}]  }
   0x1   :  { %s717_s20 = smov 0  }
   0x2 LB: > { %s27_s1 = sadd.s32 1, %s676_s19  ;;  %p580_p0 = scmp.ge.s32.totalorder %s680_s20, 1  ;;  %s680_s20 = sphi %s717_s20, %s15_s20   ;;  %s676_s19 = sphi %s715_s19, %s810_s19   ;;  %s672_s18 = sphi %s713_s18, %s809_s18  }
   0x3   : > { %p29_p1 = scmp.ge.s32.totalorder %s27_s1, 2  ;;  %p223_p2 = scmp.lt.s32.totalorder %s680_s20, 3 }
   0x5   : > { %s812_s1 = smov (%p29_p1, %s27_s1), 0  ;;  %p224_p3 = pnand %p580_p0, %p223_p2 }
   0x6   : > { %v634_v0 = vld [vmem:[%s806_s3 + $0x4] ss:$8 sps:$4 sm:$0xff] (!%p224_p3)   ;;  %v636_v1 = vld [vmem:[%s806_s3] ss:$8 sps:$4 sm:$0xff] (!%p224_p3)   ;;  %v682_v2 = vmov (!%p224_p3), 0   ;;  %s581_s9 = sshll.u32 (!%p224_p3), %s672_s18, 1  ;;  %v316_v20 = vlaneseq (!%p224_p3) }
   0x7   : > { %227 = sbr.rel (%p224_p3) target bundleno = 259 (0x103), region = 40  ;;  %438 = vmatprep.mubr.bf16.mxu0 (!%p224_p3), %v682_v2  ;;  %406 = vmatprep.subr.bf16.mxu0 (!%p224_p3), %v634_v0  ;;  %v637_v3 = vld [vmem:[%s806_s3 + $0x14] ss:$8 sps:$4 sm:$0xff] (!%p224_p3)   ;;  %v639_v4 = vld [vmem:[%s806_s3 + $0x10] ss:$8 sps:$4 sm:$0xff] (!%p224_p3)   ;;  %p266_p4 = scmp.lt.s32.totalorder (!%p224_p3), %s581_s9, 3 }
   0x8   : > { %407 = vmatpush1.bf16.msra.mxu0 (!%p224_p3), %v636_v1  ;;  %v640_v5 = vld [vmem:[%s806_s3 + $0x24] ss:$8 sps:$4 sm:$0xff] (!%p224_p3)   ;;  %v642_v6 = vld [vmem:[%s806_s3 + $0x20] ss:$8 sps:$4 sm:$0xff] (!%p224_p3)   ;;  %v643_v7 = vld [vmem:[%s806_s3 + $0x34] ss:$8 sps:$4 sm:$0xff] (!%p224_p3)  }
   0x9   : > { %408 = vmatprep.subr.bf16.mxu0 (!%p224_p3), %v637_v3  ;;  %v645_v8 = vld [vmem:[%s806_s3 + $0x30] ss:$8 sps:$4 sm:$0xff] (!%p224_p3)   ;;  %v646_v9 = vld [vmem:[%s806_s3 + $0x44] ss:$8 sps:$4 sm:$0xff] (!%p224_p3)   ;;  %v648_v10 = vld [vmem:[%s806_s3 + $0x40] ss:$8 sps:$4 sm:$0xff] (!%p224_p3)  }
   0xa   : > { %v649_v11 = vld [vmem:[%s806_s3 + $0x54] ss:$8 sps:$4 sm:$0xff] (!%p224_p3)   ;;  %v651_v12 = vld [vmem:[%s806_s3 + $0x50] ss:$8 sps:$4 sm:$0xff] (!%p224_p3)   ;;  %v652_v13 = vld [vmem:[%s806_s3 + $0x64] ss:$8 sps:$4 sm:$0xff] (!%p224_p3)  }
   0xb   : > { %v654_v14 = vld [vmem:[%s806_s3 + $0x60] ss:$8 sps:$4 sm:$0xff] (!%p224_p3)   ;;  %v655_v15 = vld [vmem:[%s806_s3 + $0x74] ss:$8 sps:$4 sm:$0xff] (!%p224_p3)   ;;  %v657_v16 = vld [vmem:[%s806_s3 + $0x70] ss:$8 sps:$4 sm:$0xff] (!%p224_p3)  }
   0xc   : > { %409 = vmatpush1.bf16.msra.mxu0 (!%p224_p3), %v639_v4  ;;  %v317_v21 = vshrl.u32 (!%p224_p3), %v316_v20, 7  ;;  %v314_v23 = vld [vmem:[%s807_s4] sm:$0x3] (!%p224_p3) }
   0xd   : > { %410 = vmatprep.subr.bf16.mxu0 (!%p224_p3), %v640_v5 }
   0xe   : > { %s814_s9 = smov (!%p266_p4, %s581_s9), 3  ;;  %v318_v22 = vsub.s32 0, %v317_v21  ;;  %v322_v24 = vsub.s32 1, %v317_v21 }
   0xf   : > { %s582_s23 = sshll.u32 %s814_s9, 3 }
  0x10   : > { %411 = vmatpush1.bf16.msra.mxu0 %v642_v6  ;;  %s269_s30 = scalar_lea.vmem %s803_s0, %s582_s23  ;;  %v319_v25 = vrot.slane %v314_v23, %v318_v22  ;;  %v323_v26 = vrot.slane %v314_v23, %v322_v24  ;;  %s291_s12 = scalar_lea.vmem %s808_s5, %s582_s23 }
  0x11   : > { %412 = vmatprep.subr.bf16.mxu0 %v643_v7  ;;  %v295_v17 = vld [vmem:[%s269_s30] sm:$0xff]  ;;  %v296_v18 = vld [vmem:[%s269_s30 + $0x8] sm:$0xff] }
  0x12   : > { %v297_v19 = vpack.c.bf16 %v296_v18, %v295_v17 }
  0x14   : > { %413 = vmatpush1.bf16.msra.mxu0 %v645_v8 }
  0x15   : > { %414 = vmatprep.subr.bf16.mxu0 %v646_v9 }
  0x18   : > { %415 = vmatpush1.bf16.msra.mxu0 %v648_v10 }
  0x19   : > { %416 = vmatprep.subr.bf16.mxu0 %v649_v11 }
  0x1c   : > { %417 = vmatpush1.bf16.msra.mxu0 %v651_v12 }
  0x1d   : > { %418 = vmatprep.subr.bf16.mxu0 %v652_v13 }
  0x20   : > { %419 = vmatpush1.bf16.msra.mxu0 %v654_v14 }
  0x21   : > { %420 = vmatprep.subr.bf16.mxu0 %v655_v15 }
  0x24   : > { %421 = vmatpush1.bf16.msra.mxu0 %v657_v16 }
  0x27   : > { %439 = vmatmul.mubr.bf16.vlgmr.msra.gmra.mrb[0].mxu0 %v297_v19 }
  0xfa   : > { %v440_v27 = vpop.f32.mrb[0].mxu0 }
  0xfb   : > { %v441_v28 = vadd.f32 %v440_v27, %v319_v25  ;;  %v442_v29 = vpop.f32.mrb[1].mxu0 }
  0xfc   : > { %v443_v30 = vadd.f32 %v442_v29, %v323_v26  ;;  %v444_v31 = vpop.f32.mrb[2].mxu0 }
  0xfd   : > { %v445_v32 = vadd.f32 %v444_v31, %v319_v25  ;;  %v446_v33 = vpop.f32.mrb[3].mxu0 }
  0xfe   : > { %v607_v34 = vpack.c.bf16 %v443_v30, %v441_v28  ;;  %v447_v35 = vadd.f32 %v446_v33, %v323_v26 }
 0x100   : > { %461 = vst [vmem:[%s291_s12] sm:$0xff] %v607_v34  ;;  %v608_v36 = vpack.c.bf16 %v447_v35, %v445_v32 }
 0x102   : > { %462 = vst [vmem:[%s291_s12 + $0x8] sm:$0xff] %v608_v36 }
 0x103 PF: > { %s15_s20 = sadd.s32 1, %s680_s20   ;;  %s809_s18 = smov %s676_s19 }
 0x104   : > { %p12_p5 = scmp.ge.s32.totalorder %s15_s20, 4   ;;  %s810_s19 = smov %s812_s1 }
 0x106   :  { %14 = sbr.rel (!%p12_p5) target bundleno = 2 (0x2), region = 76 }

// kernel: decoder_layer_forward.8
= control target key start
LH: loop header
LB: loop body
LE: loop exit
PB: predicated region body
PF: predicated region fallthrough
CT: control target
= control target key end

     0   :  { %s704_s18 = smov 0   ;;  %s706_s19 = smov 0   ;;  %s774_s0 = inlined_call_operand.vmem [shape: f32[32,128], index: 0, kind: input, shape index: {}]   ;;  %s775_s1 = inlined_call_operand.vmem [shape: f32[1,128], index: 1, kind: input, shape index: {}]   ;;  %s776_s2 = inlined_call_operand.vmem [shape: f32[1,128], index: 2, kind: input, shape index: {}]   ;;  %s777_s3 = inlined_call_operand.vmem [shape: bf16[128,128], index: 3, kind: input, shape index: {}]   ;;  %s778_s4 = inlined_call_operand.vmem [shape: f32[1,128], index: 4, kind: input, shape index: {}]   ;;  %s779_s5 = inlined_call_operand.vmem [shape: bf16[32,128], index: 5, kind: output, shape index: {}]  }
   0x1   :  { %s708_s20 = smov 0  }
   0x2 LB: > { %s27_s21 = sadd.s32 1, %s666_s19  ;;  %p554_p0 = scmp.ge.s32.totalorder %s670_s20, 1  ;;  %s670_s20 = sphi %s708_s20, %s15_s20   ;;  %s666_s19 = sphi %s706_s19, %s781_s19   ;;  %s662_s18 = sphi %s704_s18, %s780_s18  }
   0x3   : > { %p29_p1 = scmp.ge.s32.totalorder %s27_s21, 2  ;;  %p219_p2 = scmp.lt.s32.totalorder %s670_s20, 3 }
   0x5   : > { %s783_s21 = smov (%p29_p1, %s27_s21), 0  ;;  %p220_p3 = pnand %p554_p0, %p219_p2 }
   0x6   : > { %s555_s22 = sshll.u32 (!%p220_p3), %s662_s18, 1  ;;  %v636_v2 = vld [vmem:[%s777_s3] sm:$0xff] (!%p220_p3)   ;;  %v672_v3 = vmov (!%p220_p3), 0.0   ;;  %v637_v12 = vld [vmem:[%s777_s3 + $0x8] sm:$0xff] (!%p220_p3)   ;;  %v638_v13 = vld [vmem:[%s777_s3 + $0x10] sm:$0xff] (!%p220_p3)   ;;  %vm673_vm0 = vmmov (!%p220_p3), 0  }
   0x7   : > { %223 = sbr.rel (%p220_p3) target bundleno = 554 (0x22a), region = 40  ;;  %p258_p4 = scmp.lt.s32.totalorder (!%p220_p3), %s555_s22, 3  ;;  %590 = vmatprep.subr.bf16.mxu0 (!%p220_p3), %v672_v3  ;;  %v639_v14 = vld [vmem:[%s777_s3 + $0x18] sm:$0xff] (!%p220_p3)   ;;  %v640_v15 = vld [vmem:[%s777_s3 + $0x20] sm:$0xff] (!%p220_p3)   ;;  %606 = vmatprep.mubr.msk.bf16.mxu0 (!%p220_p3), %vm673_vm0, %v672_v3  ;;  %v641_v16 = vld [vmem:[%s777_s3 + $0x28] sm:$0xff] (!%p220_p3)  }
   0x8   : > { %591 = vmatpush3.bf16.msra.mxu0 (!%p220_p3), %v636_v2  ;;  %v642_v17 = vld [vmem:[%s777_s3 + $0x30] sm:$0xff] (!%p220_p3)   ;;  %v643_v18 = vld [vmem:[%s777_s3 + $0x38] sm:$0xff] (!%p220_p3)   ;;  %v559_v27 = vld [vmem:[%s775_s1] ss:$0 sm:$0xff] (!%p220_p3) }
   0x9   : > { %592 = vmatprep.subr.bf16.mxu0 (!%p220_p3), %v672_v3  ;;  %v560_v31 = vld [vmem:[%s776_s2] ss:$0 sm:$0xff] (!%p220_p3) }
   0xa   : > { %v561_v36 = vld [vmem:[%s778_s4] ss:$0 sm:$0xff] (!%p220_p3) }
   0xc   : > { %593 = vmatpush3.bf16.msra.mxu0 (!%p220_p3), %v637_v12 }
   0xd   : > { %594 = vmatprep.subr.bf16.mxu0 (!%p220_p3), %v672_v3 }
   0xe   : > { %s785_s22 = smov (!%p258_p4, %s555_s22), 3 }
   0xf   : > { %s556_s23 = sshll.u32 %s785_s22, 3  ;;  %s558_s28 = sshll.u32 %s785_s22, 2 }
  0x10   : > { %s261_s26 = scalar_lea.vmem %s774_s0, %s556_s23  ;;  %595 = vmatpush3.bf16.msra.mxu0 %v638_v13  ;;  %s277_s6 = scalar_lea.vmem %s779_s5, %s558_s28 }
  0x11   : > { %v280_v0 = vld [vmem:[%s261_s26] sm:$0xff]  ;;  %v281_v1 = vld [vmem:[%s261_s26 + $0x8] sm:$0xff]  ;;  %596 = vmatprep.subr.bf16.mxu0 %v672_v3 }
  0x12   : > { %282 = vadd.xlane.f32.xlu0 %v280_v0 }
  0x14   : > { %597 = vmatpush3.bf16.msra.mxu0 %v639_v14 }
  0x15   : > { %598 = vmatprep.subr.bf16.mxu0 %v672_v3 }
  0x16   : > { %284 = vadd.xlane.f32.xlu0 %v281_v1 }
  0x18   : > { %599 = vmatpush3.bf16.msra.mxu0 %v640_v15 }
  0x19   : > { %600 = vmatprep.subr.bf16.mxu0 %v672_v3 }
  0x1c   : > { %601 = vmatpush3.bf16.msra.mxu0 %v641_v16 }
  0x1d   : > { %602 = vmatprep.subr.bf16.mxu0 %v672_v3 }
  0x20   : > { %603 = vmatpush3.bf16.msra.mxu0 %v642_v17 }
  0x21   : > { %604 = vmatprep.subr.bf16.mxu0 %v672_v3 }
  0x24   : > { %605 = vmatpush3.bf16.msra.mxu0 %v643_v18 }
  0x9f   : > { %v283_v4 = vpop.xlane.xlu0 %282 }
  0xa0   : > { %v287_v5 = vmul.f32 0.0078125, %v283_v4 }
  0xa2   : > { %v289_v6 = vsub.f32 %v280_v0, %v287_v5 }
  0xa3   : > { %v285_v7 = vpop.xlane.xlu0 %284 }
  0xa4   : > { %v288_v8 = vmul.f32 0.0078125, %v285_v7  ;;  %v291_v9 = vmul.f32 %v289_v6, %v289_v6 }
  0xa6   : > { %v290_v10 = vsub.f32 %v281_v1, %v288_v8  ;;  %293 = vadd.xlane.f32.xlu1 %v291_v9 }
  0xa8   : > { %v292_v11 = vmul.f32 %v290_v10, %v290_v10 }
  0xaa   : > { %295 = vadd.xlane.f32.xlu1 %v292_v11 }
 0x133   : > { %v294_v19 = vpop.xlane.xlu1 %293 }
 0x134   : > { %v297_v20 = vmul.f32 0.0078125, %v294_v19 }
 0x136   : > { %v299_v21 = vadd.f32 1e-05, %v297_v20 }
 0x137   : > { %v296_v22 = vpop.xlane.xlu1 %295 }
 0x138   : > { %644 = vrsqrt.f32 %v299_v21  ;;  %v298_v23 = vmul.f32 0.0078125, %v296_v22 }
 0x13a   : > { %v300_v24 = vadd.f32 1e-05, %v298_v23 }
 0x13c   : > { %646 = vrsqrt.f32 %v300_v24 }
 0x142   : > { %v645_v25 = vpop.eup %644 }
 0x143   : > { %v303_v26 = vmul.f32 %v645_v25, %v289_v6 }
 0x145   : > { %v312_v30 = vmul.f32 %v559_v27, %v303_v26 }
 0x146   : > { %v647_v28 = vpop.eup %646 }
 0x147   : > { %v304_v29 = vmul.f32 %v647_v28, %v290_v10  ;;  %v321_v33 = vadd.f32 %v560_v31, %v312_v30 }
 0x149   : > { %v313_v32 = vmul.f32 %v559_v27, %v304_v29 }
 0x14b   : > { %v322_v34 = vadd.f32 %v560_v31, %v313_v32 }
 0x14d   : > { %v323_v35 = vpack.c.bf16 %v322_v34, %v321_v33 }
 0x14f   : > { %607 = vmatmul.mubr.bf16.vlgmr.msra.gmra.mrb[0].mxu0 %v323_v35 }
 0x222   : > { %v429_v37 = vpop.f32.mrb[0].mxu0 }
 0x223   : > { %v608_v38 = vpop.f32.mrb[1].mxu0  ;;  %v430_v40 = vadd.f32 %v561_v36, %v429_v37 }
 0x224   : > { %v432_v39 = vpop.f32.mrb[2].mxu0 }
 0x225   : > { %v433_v41 = vadd.f32 %v561_v36, %v432_v39  ;;  %v609_v42 = vpop.f32.mrb[3].mxu0 }
 0x227   : > { %v579_v43 = vpack.c.bf16 %v433_v41, %v430_v40 }
 0x229   : > { %580 = vst [vmem:[%s277_s6] sm:$0xff] %v579_v43  }
 0x22a PF: > { %s15_s20 = sadd.s32 1, %s670_s20   ;;  %s780_s18 = smov %s666_s19 }
 0x22b   : > { %p12_p5 = scmp.ge.s32.totalorder %s15_s20, 4   ;;  %s781_s19 = smov %s783_s21 }
 0x22d   :  { %14 = sbr.rel (!%p12_p5) target bundleno = 2 (0x2), region = 76 }

// kernel: decoder_layer_forward.7
= control target key start
LH: loop header
LB: loop body
LE: loop exit
PB: predicated region body
PF: predicated region fallthrough
CT: control target
= control target key end

     0   :  { %s2665_s24 = smov 0   ;;  %s2667_s25 = smov 0   ;;  %s3379_s0 = inlined_call_operand.vmem [shape: bf16[2,16,3,4,32], index: 0, kind: input, shape index: {}, may-alias: {0,1,2}]   ;;  %s3380_s1 = inlined_call_operand.vmem [shape: bf16[2,16,3,4,32], index: 1, kind: input, shape index: {}, may-alias: {0,1,2}]   ;;  %s3381_s2 = inlined_call_operand.vmem [shape: bf16[2,16,3,4,32], index: 2, kind: input, shape index: {}, may-alias: {0,1,2}]   ;;  %s3382_s3 = inlined_call_operand.vmem [shape: f32[2,16,16], index: 3, kind: input, shape index: {}]   ;;  %s3383_s4 = inlined_call_operand.vmem [shape: bf16[128,128], index: 4, kind: input, shape index: {}]   ;;  %s3384_s5 = inlined_call_operand.vmem [shape: f32[1,128], index: 5, kind: input, shape index: {}]   ;;  %s3385_s6 = inlined_call_operand.vmem [shape: f32[2,16,128], index: 6, kind: input, shape index: {}]   ;;  %s3386_s7 = inlined_call_operand.vmem [shape: f32[2,16,128], index: 7, kind: output, shape index: {}]  }
   0x1   :  { %s2669_s26 = smov 0   ;;  %s2671_s27 = smov 0  }
   0x2   :  { %s2673_s28 = smov 0   ;;  %s2675_s29 = smov 0  }
   0x3   :  { %s2677_s30 = smov 0   ;;  %s2679_s8 = smov 0  }
   0x4   :  { %s2681_s9 = smov 0  }
   0x5 LB: > { %s26_s10 = sadd.s32 1, %s2613_s30  ;;  %s29_s11 = sadd.s32 1, %s2617_s8  ;;  %s2621_s9 = sphi %s2681_s9, %s17_s9   ;;  %s2617_s8 = sphi %s2679_s8, %s3411_s8   ;;  %s2613_s30 = sphi %s2677_s30, %s3410_s30   ;;  %s2609_s29 = sphi %s2675_s29, %s3409_s29   ;;  %s2605_s28 = sphi %s2673_s28, %s3408_s28   ;;  %s2601_s27 = sphi %s2671_s27, %s3407_s27   ;;  %s2597_s26 = sphi %s2669_s26, %s3406_s26   ;;  %s2593_s25 = sphi %s2667_s25, %s3405_s25   ;;  %s2589_s24 = sphi %s2665_s24, %s3404_s24  }
   0x6   : > { %p27_p0 = scmp.ge.s32.totalorder %s26_s10, 2  ;;  %p45_p1 = scmp.ne.s32.totalorder %s2601_s27, %s2597_s26 }
   0x7   : > { %p46_p2 = scmp.eq.s32.totalorder %s2621_s9, 0  ;;  %p71_p5 = scmp.ne.s32.totalorder %s2593_s25, %s2589_s24 }
   0x8   : > { %s3413_s10 = smov (%p27_p0, %s26_s10), 0  ;;  %s3415_s11 = smov (!%p27_p0, %s29_s11), %s2617_s8 }
   0x9   : > { %3393 = sst [smem:[#allocation5_spill]] %s3413_s10  ;;  %p2718_p3 = por %p46_p2, %p45_p1 }
   0xa   : > { %p31_p4 = scmp.ge.s32.totalorder %s3415_s11, 2  ;;  %s34_s13 = ssub.s32 %s2613_s30, %s3413_s10 }
   0xb   : > { %s38_s14 = sadd.s32 1, %s2601_s27  ;;  %p2729_p6 = por %p71_p5, %p46_p2 }
   0xc   : > { %s3417_s11 = smov (%p31_p4, %s3415_s11), 0  ;;  %s64_s17 = sadd.s32 1, %s2593_s25 }
   0xd   : > { %3395 = sst [smem:[#allocation6_spill]] %s3417_s11  ;;  %s33_s16 = ssub.s32 %s2617_s8, %s3417_s11 }
   0xe   : > { %s35_s18 = sor.u32 %s34_s13, %s33_s16  ;;  %p62_p7 = scmp.eq.s32.totalorder %s33_s16, 0 }
   0xf   : > { %p36_p8 = scmp.eq.s32.totalorder %s35_s18, 0  ;;  %p2216_p9 = scmp.ge.s32.totalorder %s2621_s9, 4 }
  0x10   : > { %s2737_s19 = scalar_select %p62_p7, %s2593_s25, %s64_s17  }
  0x11   : > { %s2740_s20 = scalar_select %p36_p8, %s2601_s27, %s38_s14  }
  0x12   : > { %255 = sbr.rel (%p2216_p9) target bundleno = 68 (0x44), region = 24 }
  0x19   : > { %258 = sbr.rel (!%p2718_p3) target bundleno = 38 (0x26), region = 28  ;;  %s260_s21 = sand.u32 (%p2718_p3), 1, %s2601_s27  }
  0x1a   : > { %s2451_s22 = smul.u32 (%p2718_p3), 24, %s2613_s30  ;;  %s2217_s23 = sshll.u32 (%p2718_p3), %s260_s21, 4 }
  0x1b   : > { %s2452_s11 = smul.u32 (%p2718_p3), 48, %s2617_s8  ;;  %s262_s10 = scalar_lea.vmem (%p2718_p3), [#allocation2], %s2217_s23 }
  0x1d   : > { %s266_s13 = sadd.s32 (%p2718_p3), %s2452_s11, %s2451_s22 }
  0x1e   : > { %s2220_s16 = sshll.u32 (%p2718_p3), %s266_s13, 1 }
  0x1f   : > { %s268_s14 = scalar_lea.vmem (%p2718_p3), %s3379_s0, %s2220_s16 }
  0x20   : > { %v284_v0 = vld [vmem:[%s268_s14] sm:$0x3]  ;;  %v286_v1 = vld [vmem:[%s268_s14 + $0x6] sm:$0x3]  ;;  %v288_v2 = vld [vmem:[%s268_s14 + $0xc] sm:$0x3] }
  0x21   : > { %285 = vst [vmem:[%s262_s10] sm:$0x3] %v284_v0  ;;  %287 = vst [vmem:[%s262_s10 + $0x2] sm:$0x3] %v286_v1  ;;  %v290_v3 = vld [vmem:[%s268_s14 + $0x12] sm:$0x3] }
  0x22   : > { %289 = vst [vmem:[%s262_s10 + $0x4] sm:$0x3] %v288_v2  ;;  %v292_v4 = vld [vmem:[%s268_s14 + $0x18] sm:$0x3]  ;;  %v294_v5 = vld [vmem:[%s268_s14 + $0x1e] sm:$0x3] }
  0x23   : > { %291 = vst [vmem:[%s262_s10 + $0x6] sm:$0x3] %v290_v3  ;;  %293 = vst [vmem:[%s262_s10 + $0x8] sm:$0x3] %v292_v4  ;;  %v296_v6 = vld [vmem:[%s268_s14 + $0x24] sm:$0x3] }
  0x24   : > { %295 = vst [vmem:[%s262_s10 + $0xa] sm:$0x3] %v294_v5  ;;  %v298_v7 = vld [vmem:[%s268_s14 + $0x2a] sm:$0x3]  ;;  %297 = vst [vmem:[%s262_s10 + $0xc] sm:$0x3] %v296_v6 }
  0x25   : > { %299 = vst [vmem:[%s262_s10 + $0xe] sm:$0x3] %v298_v7 }
  0x26 PF: > { %338 = sbr.rel (!%p2729_p6) target bundleno = 53 (0x35), region = 69  ;;  %s340_s11 = sand.u32 (%p2729_p6), 1, %s2593_s25  }
  0x27   : > { %s2222_s12 = smul.u32 (%p2729_p6), 96, %s2617_s8  ;;  %s2221_s21 = sshll.u32 (%p2729_p6), %s340_s11, 5 }
  0x28   : > { %s342_s10 = scalar_lea.vmem (%p2729_p6), [#allocation3], %s2221_s21 }
  0x29   : > { %s2758_s13 = scalar_lea.vmem (%p2729_p6), %s3380_s1, %s2222_s12 }
  0x2a   : > { %v2223_v8 = vld [vmem:[%s2758_s13 + $0x2] sm:$0x3] (%p2729_p6)  ;;  %v2224_v9 = vld [vmem:[%s2758_s13 + $0x8] sm:$0x3] (%p2729_p6)  ;;  %v2225_v10 = vld [vmem:[%s2758_s13 + $0xe] sm:$0x3] (%p2729_p6) }
  0x2b   : > { %363 = vst [vmem:[%s342_s10] sm:$0x3] (%p2729_p6), %v2223_v8  ;;  %365 = vst [vmem:[%s342_s10 + $0x2] sm:$0x3] (%p2729_p6), %v2224_v9  ;;  %v2226_v11 = vld [vmem:[%s2758_s13 + $0x14] sm:$0x3] (%p2729_p6) }
  0x2c   : > { %367 = vst [vmem:[%s342_s10 + $0x4] sm:$0x3] (%p2729_p6), %v2225_v10  ;;  %v2227_v12 = vld [vmem:[%s2758_s13 + $0x1a] sm:$0x3] (%p2729_p6)  ;;  %v2228_v13 = vld [vmem:[%s2758_s13 + $0x20] sm:$0x3] (%p2729_p6) }
  0x2d   : > { %369 = vst [vmem:[%s342_s10 + $0x6] sm:$0x3] %v2226_v11  ;;  %371 = vst [vmem:[%s342_s10 + $0x8] sm:$0x3] %v2227_v12  ;;  %v2229_v14 = vld [vmem:[%s2758_s13 + $0x26] sm:$0x3] }
  0x2e   : > { %373 = vst [vmem:[%s342_s10 + $0xa] sm:$0x3] %v2228_v13  ;;  %v2230_v15 = vld [vmem:[%s2758_s13 + $0x2c] sm:$0x3]  ;;  %v2231_v16 = vld [vmem:[%s2758_s13 + $0x32] sm:$0x3] }
  0x2f   : > { %375 = vst [vmem:[%s342_s10 + $0xc] sm:$0x3] %v2229_v14  ;;  %377 = vst [vmem:[%s342_s10 + $0xe] sm:$0x3] %v2230_v15  ;;  %v2232_v17 = vld [vmem:[%s2758_s13 + $0x38] sm:$0x3] }
  0x30   : > { %379 = vst [vmem:[%s342_s10 + $0x10] sm:$0x3] %v2231_v16  ;;  %v2233_v18 = vld [vmem:[%s2758_s13 + $0x3e] sm:$0x3]  ;;  %v2234_v19 = vld [vmem:[%s2758_s13 + $0x44] sm:$0x3] }
  0x31   : > { %381 = vst [vmem:[%s342_s10 + $0x12] sm:$0x3] %v2232_v17  ;;  %383 = vst [vmem:[%s342_s10 + $0x14] sm:$0x3] %v2233_v18  ;;  %v2235_v20 = vld [vmem:[%s2758_s13 + $0x4a] sm:$0x3] }
  0x32   : > { %385 = vst [vmem:[%s342_s10 + $0x16] sm:$0x3] %v2234_v19  ;;  %v2236_v21 = vld [vmem:[%s2758_s13 + $0x50] sm:$0x3]  ;;  %v2237_v22 = vld [vmem:[%s2758_s13 + $0x56] sm:$0x3] }
  0x33   : > { %387 = vst [vmem:[%s342_s10 + $0x18] sm:$0x3] %v2235_v20  ;;  %389 = vst [vmem:[%s342_s10 + $0x1a] sm:$0x3] %v2236_v21  ;;  %v2238_v23 = vld [vmem:[%s2758_s13 + $0x5c] sm:$0x3] }
  0x34   : > { %391 = vst [vmem:[%s342_s10 + $0x1c] sm:$0x3] %v2237_v22  ;;  %393 = vst [vmem:[%s342_s10 + $0x1e] sm:$0x3] %v2238_v23 }
  0x35 PF: > { %448 = sbr.rel (!%p2729_p6) target bundleno = 68 (0x44), region = 110  ;;  %s450_s16 = sand.u32 (%p2729_p6), 1, %s2593_s25  }
  0x36   : > { %s2240_s18 = smul.u32 (%p2729_p6), 96, %s2617_s8  ;;  %s2239_s17 = sshll.u32 (%p2729_p6), %s450_s16, 5 }
  0x37   : > { %s452_s15 = scalar_lea.vmem (%p2729_p6), [#allocation4], %s2239_s17 }
  0x38   : > { %s2783_s12 = scalar_lea.vmem (%p2729_p6), %s3381_s2, %s2240_s18 }
  0x39   : > { %v2241_v24 = vld [vmem:[%s2783_s12 + $0x4] sm:$0x3] (%p2729_p6)  ;;  %v2242_v25 = vld [vmem:[%s2783_s12 + $0xa] sm:$0x3] (%p2729_p6)  ;;  %v2243_v26 = vld [vmem:[%s2783_s12 + $0x10] sm:$0x3] (%p2729_p6) }
  0x3a   : > { %473 = vst [vmem:[%s452_s15] sm:$0x3] (%p2729_p6), %v2241_v24  ;;  %475 = vst [vmem:[%s452_s15 + $0x2] sm:$0x3] (%p2729_p6), %v2242_v25  ;;  %v2244_v27 = vld [vmem:[%s2783_s12 + $0x16] sm:$0x3] (%p2729_p6) }
  0x3b   : > { %477 = vst [vmem:[%s452_s15 + $0x4] sm:$0x3] (%p2729_p6), %v2243_v26  ;;  %v2245_v28 = vld [vmem:[%s2783_s12 + $0x1c] sm:$0x3] (%p2729_p6)  ;;  %v2246_v29 = vld [vmem:[%s2783_s12 + $0x22] sm:$0x3] (%p2729_p6) }
  0x3c   : > { %479 = vst [vmem:[%s452_s15 + $0x6] sm:$0x3] %v2244_v27  ;;  %481 = vst [vmem:[%s452_s15 + $0x8] sm:$0x3] %v2245_v28  ;;  %v2247_v30 = vld [vmem:[%s2783_s12 + $0x28] sm:$0x3] }
  0x3d   : > { %483 = vst [vmem:[%s452_s15 + $0xa] sm:$0x3] %v2246_v29  ;;  %v2248_v31 = vld [vmem:[%s2783_s12 + $0x2e] sm:$0x3]  ;;  %v2249_v32 = vld [vmem:[%s2783_s12 + $0x34] sm:$0x3] }
  0x3e   : > { %485 = vst [vmem:[%s452_s15 + $0xc] sm:$0x3] %v2247_v30  ;;  %487 = vst [vmem:[%s452_s15 + $0xe] sm:$0x3] %v2248_v31  ;;  %v2250_v33 = vld [vmem:[%s2783_s12 + $0x3a] sm:$0x3] }
  0x3f   : > { %489 = vst [vmem:[%s452_s15 + $0x10] sm:$0x3] %v2249_v32  ;;  %v2251_v34 = vld [vmem:[%s2783_s12 + $0x40] sm:$0x3]  ;;  %v2252_v35 = vld [vmem:[%s2783_s12 + $0x46] sm:$0x3] }
  0x40   : > { %491 = vst [vmem:[%s452_s15 + $0x12] sm:$0x3] %v2250_v33  ;;  %493 = vst [vmem:[%s452_s15 + $0x14] sm:$0x3] %v2251_v34  ;;  %v2253_v36 = vld [vmem:[%s2783_s12 + $0x4c] sm:$0x3] }
  0x41   : > { %495 = vst [vmem:[%s452_s15 + $0x16] sm:$0x3] %v2252_v35  ;;  %v2254_v37 = vld [vmem:[%s2783_s12 + $0x52] sm:$0x3]  ;;  %v2255_v38 = vld [vmem:[%s2783_s12 + $0x58] sm:$0x3] }
  0x42   : > { %497 = vst [vmem:[%s452_s15 + $0x18] sm:$0x3] %v2253_v36  ;;  %499 = vst [vmem:[%s452_s15 + $0x1a] sm:$0x3] %v2254_v37  ;;  %v2256_v39 = vld [vmem:[%s2783_s12 + $0x5e] sm:$0x3] }
  0x43   : > { %501 = vst [vmem:[%s452_s15 + $0x1c] sm:$0x3] %v2255_v38  ;;  %503 = vst [vmem:[%s452_s15 + $0x1e] sm:$0x3] %v2256_v39 }
  0x44 PF: > { %p2257_p10 = scmp.ge.s32.totalorder %s2621_s9, 1  ;;  %p579_p11 = scmp.lt.s32.totalorder %s2621_s9, 5 }
  0x46   : > { %p580_p12 = pnand %p2257_p10, %p579_p11 }
  0x48   : > { %583 = sbr.rel (%p580_p12) target bundleno = 2156 (0x86c), region = 159 }
  0x4f   : > { %s593_s21 = sand.u32 1, %s2589_s24   ;;  %v3389_v40 = vmov 0.0   ;;  %vm2624_vm0 = vmmov 0   ;;  %vm807_vm1 = vcmask 1041409   ;;  %vm810_vm2 = vcmask 1042434   ;;  %s586_s24 = sand.u32 1, %s2597_s26  }
  0x50   : > { %2358 = vmatprep.subr.bf16.mxu0 %v3389_v40  ;;  %s2805_s22 = sshll.u32 %s593_s21, 5  ;;  %2370 = vmatprep.subr.bf16.mxu1 %v3389_v40  ;;  %vm813_vm3 = vcmask 1043459   ;;  %vm816_vm4 = vcmask 1044484   ;;  %vm819_vm5 = vcmask 1045509   ;;  %vm822_vm6 = vcmask 1046534   ;;  %s2258_s26 = sshll.u32 %s586_s24, 4 }
  0x51   : > { %s2809_s23 = scalar_lea.vmem [#allocation3], %s2805_s22  ;;  %2360 = vmatprep.mubr.msk.bf16.mxu0 %vm2624_vm0, %v3389_v40  ;;  %2374 = vmatprep.mubr.msk.bf16.mxu1 %vm2624_vm0, %v3389_v40  ;;  %vm825_vm7 = vcmask 1047559   ;;  %s588_s13 = scalar_lea.vmem [#allocation2], %s2258_s26  ;;  %vm1001_vm8 = vcmask 261120   ;;  %vm1048_vm9 = vcmask 130048  }
  0x52   : > { %v2276_v41 = vld.sshfl [vmem:[%s2809_s23] sm:$0x3 pattern:$0x76325410]  ;;  %p659_p13 = scmp.lt.s32.totalorder %s2609_s29, 1  ;;  %p661_p0 = scmp.lt.s32.totalorder %s2605_s28, 1 }
  0x53   : > { %v2277_v42 = vld.sshfl [vmem:[%s2809_s23 + $0x2] sm:$0x3 pattern:$0x76325410]  ;;  %v2818_v44 = vunpack.c.l.b16 %v2276_v41 }
  0x54   : > { %v2278_v43 = vld.sshfl [vmem:[%s2809_s23 + $0x4] sm:$0x3 pattern:$0x76325410]  ;;  %v2820_v45 = vunpack.c.l.b16 %v2277_v42  ;;  %s3419_s29 = smov (!%p659_p13, %s2609_s29), 1  ;;  %s3421_s28 = smov (!%p661_p0, %s2605_s28), 1 }
  0x55   : > { %v2279_v46 = vld.sshfl [vmem:[%s2809_s23 + $0x6] sm:$0x3 pattern:$0x76325410]  ;;  %v2823_v47 = vunpack.c.l.b16 %v2278_v43  ;;  %s2261_s10 = sshll.u32 %s3419_s29, 1 }
  0x56   : > { %v2280_v48 = vld.sshfl [vmem:[%s2809_s23 + $0x8] sm:$0x3 pattern:$0x76325410]  ;;  %v2826_v49 = vunpack.c.l.b16 %v2279_v46  ;;  %v972_v50 = vrot.slane %v2820_v45, 7  ;;  %s664_s16 = sadd.s32 %s2261_s10, %s3421_s28  ;;  %s2949_s28 = scalar_lea.vmem [#allocation4], %s2805_s22 }
  0x57   : > { %v2281_v51 = vld.sshfl [vmem:[%s2809_s23 + $0xa] sm:$0x3 pattern:$0x76325410]  ;;  %v2830_v52 = vunpack.c.l.b16 %v2280_v48  ;;  %v974_v53 = vrot.slane %v2823_v47, 6  ;;  %s2934_s18 = sshll.u32 %s664_s16, 3 }
  0x58   : > { %3397 = vst [vmem:[#allocation7_spill] sm:$0xff] %v2826_v49  ;;  %v2282_v54 = vld.sshfl [vmem:[%s2809_s23 + $0xc] sm:$0x3 pattern:$0x76325410]  ;;  %v2834_v55 = vunpack.c.l.b16 %v2281_v51  ;;  %v973_v56 = vsel %vm807_vm1, %v972_v50, %v2818_v44  ;;  %v976_v57 = vrot.slane %v2826_v49, 5  ;;  %s666_s11 = scalar_lea.vmem %s3382_s3, %s2934_s18  ;;  %s674_s21 = scalar_lea.vmem %s3385_s6, %s2934_s18 }
  0x59   : > { %v2283_v58 = vld.sshfl [vmem:[%s2809_s23 + $0xe] sm:$0x3 pattern:$0x76325410]  ;;  %v2840_v59 = vunpack.c.l.b16 %v2282_v54  ;;  %v975_v60 = vsel %vm810_vm2, %v974_v53, %v973_v56  ;;  %v978_v61 = vrot.slane %v2830_v52, 4 }
  0x5a   : > { %v2284_v62 = vld.sshfl [vmem:[%s2809_s23 + $0x10] sm:$0x3 pattern:$0x76325410]  ;;  %v977_v63 = vsel %vm813_vm3, %v976_v57, %v975_v60  ;;  %v980_v0 = vrot.slane %v2834_v55, 3  ;;  %v2849_v2 = vunpack.c.l.b16 %v2283_v58 }
  0x5b   : > { %v2285_v1 = vld.sshfl [vmem:[%s2809_s23 + $0x12] sm:$0x3 pattern:$0x76325410]  ;;  %v979_v3 = vsel %vm816_vm4, %v978_v61, %v977_v63  ;;  %v2853_v5 = vunpack.c.l.b16 %v2284_v62  ;;  %v982_v7 = vrot.slane %v2840_v59, 2 }
  0x5c   : > { %v2286_v4 = vld.sshfl [vmem:[%s2809_s23 + $0x14] sm:$0x3 pattern:$0x76325410]  ;;  %v2855_v6 = vunpack.c.l.b16 %v2285_v1  ;;  %v981_v10 = vsel %vm819_vm5, %v980_v0, %v979_v3  ;;  %v984_v16 = vrot.slane %v2849_v2, 1 }
  0x5d   : > { %v2287_v8 = vld.sshfl [vmem:[%s2809_s23 + $0x16] sm:$0x3 pattern:$0x76325410]  ;;  %v2859_v9 = vunpack.c.l.b16 %v2286_v4  ;;  %v983_v20 = vsel %vm822_vm6, %v982_v7, %v981_v10 }
  0x5e   : > { %v2288_v11 = vld.sshfl [vmem:[%s2809_s23 + $0x18] sm:$0x3 pattern:$0x76325410]  ;;  %v2863_v12 = vunpack.c.l.b16 %v2287_v8  ;;  %v986_v13 = vrot.slane %v2855_v6, 7  ;;  %v985_v31 = vsel %vm825_vm7, %v984_v16, %v983_v20 }
  0x5f   : > { %v2289_v14 = vld.sshfl [vmem:[%s2809_s23 + $0x1a] sm:$0x3 pattern:$0x76325410]  ;;  %v2867_v15 = vunpack.c.l.b16 %v2288_v11  ;;  %v988_v17 = vrot.slane %v2859_v9, 6 }
  0x60   : > { %3398 = vst [vmem:[#allocation8_spill] sm:$0xff] %v2863_v12  ;;  %v2290_v18 = vld.sshfl [vmem:[%s2809_s23 + $0x1c] sm:$0x3 pattern:$0x76325410]  ;;  %v2872_v19 = vunpack.c.l.b16 %v2289_v14  ;;  %v987_v21 = vsel %vm807_vm1, %v986_v13, %v2853_v5  ;;  %v990_v22 = vrot.slane %v2863_v12, 5 }
  0x61   : > { %v2291_v23 = vld.sshfl [vmem:[%s2809_s23 + $0x1e] sm:$0x3 pattern:$0x76325410]  ;;  %v2879_v24 = vunpack.c.l.b16 %v2290_v18  ;;  %v989_v25 = vsel %vm810_vm2, %v988_v17, %v987_v21  ;;  %v992_v26 = vrot.slane %v2867_v15, 4  ;;  %v2940_v21 = vld [vmem:[%s666_s11] sm:$0xff] }
  0x62   : > { %v2883_v27 = vunpack.c.l.b16 %v2291_v23  ;;  %v991_v28 = vsel %vm813_vm3, %v990_v22, %v989_v25  ;;  %v994_v29 = vrot.slane %v2872_v19, 3  ;;  %v2268_v30 = vld.sshfl [vmem:[%s588_s13] sm:$0x3 pattern:$0x76325410] }
  0x63   : > { %v993_v32 = vsel %vm816_vm4, %v992_v26, %v991_v28  ;;  %v996_v33 = vrot.slane %v2879_v24, 2  ;;  %v2269_v34 = vld.sshfl [vmem:[%s588_s13 + $0x2] sm:$0x3 pattern:$0x76325410]  ;;  %v2892_v38 = vunpack.c.l.b16 %v2268_v30 }
  0x64   : > { %v995_v35 = vsel %vm819_vm5, %v994_v29, %v993_v32  ;;  %v998_v36 = vrot.slane %v2883_v27, 1  ;;  %v2270_v37 = vld.sshfl [vmem:[%s588_s13 + $0x4] sm:$0x3 pattern:$0x76325410]  ;;  %v2894_v39 = vunpack.c.l.b16 %v2269_v34 }
  0x65   : > { %v997_v41 = vsel %vm822_vm6, %v996_v33, %v995_v35  ;;  %v2271_v42 = vld.sshfl [vmem:[%s588_s13 + $0x6] sm:$0x3 pattern:$0x76325410]  ;;  %v2897_v43 = vunpack.c.l.b16 %v2270_v37 }
  0x66   : > { %v999_v46 = vsel %vm825_vm7, %v998_v36, %v997_v41  ;;  %v2272_v48 = vld.sshfl [vmem:[%s588_s13 + $0x8] sm:$0x3 pattern:$0x76325410]  ;;  %v2900_v50 = vunpack.c.l.b16 %v2271_v42  ;;  %v806_v51 = vrot.slane %v2894_v39, 7 }
  0x67   : > { %v1000_v53 = vpack.c.b16 %v999_v46, %v985_v31  ;;  %v2273_v54 = vld.sshfl [vmem:[%s588_s13 + $0xa] sm:$0x3 pattern:$0x76325410]  ;;  %v2903_v56 = vunpack.c.l.b16 %v2272_v48  ;;  %v809_v57 = vrot.slane %v2897_v43, 6 }
  0x68   : > { %v2274_v58 = vld.sshfl [vmem:[%s588_s13 + $0xc] sm:$0x3 pattern:$0x76325410]  ;;  %v2906_v60 = vunpack.c.l.b16 %v2273_v54  ;;  %v808_v61 = vsel %vm807_vm1, %v806_v51, %v2892_v38  ;;  %v812_v62 = vrot.slane %v2900_v50, 5 }
  0x69   : > { %v1006_v63 = vsel %vm1001_vm8, %v1000_v53, 0  ;;  %v2275_v0 = vld.sshfl [vmem:[%s588_s13 + $0xe] sm:$0x3 pattern:$0x76325410]  ;;  %v2912_v1 = vunpack.c.l.b16 %v2274_v58  ;;  %v811_v3 = vsel %vm810_vm2, %v809_v57, %v808_v61  ;;  %v815_v4 = vrot.slane %v2903_v56, 4  ;;  %s682_s13 = scalar_lea.vmem %s3386_s7, %s2934_s18 }
  0x6a   : > { %2359 = vmatpush3.bf16.xpose.msra.mxu0 %v1006_v63  ;;  %v2916_v7 = vunpack.c.l.b16 %v2275_v0  ;;  %v814_v8 = vsel %vm813_vm3, %v812_v62, %v811_v3  ;;  %v818_v10 = vrot.slane %v2906_v60, 3  ;;  %v2294_v35 = vld.sshfl [vmem:[%s2949_s28 + $0x2] sm:$0x3 pattern:$0x76325410] }
  0x6b   : > { %v817_v11 = vsel %vm816_vm4, %v815_v4, %v814_v8  ;;  %v821_v13 = vrot.slane %v2912_v1, 2  ;;  %2364 = vmatprep.subr.bf16.mxu0 %v3389_v40  ;;  %v2295_v36 = vld.sshfl [vmem:[%s2949_s28 + $0x4] sm:$0x3 pattern:$0x76325410]  ;;  %v2953_v37 = vunpack.c.l.b16 %v2294_v35 }
  0x6c   : > { %v820_v14 = vsel %vm819_vm5, %v818_v10, %v817_v11  ;;  %v824_v16 = vrot.slane %v2916_v7, 1  ;;  %v2293_v41 = vld.sshfl [vmem:[%s2949_s28] sm:$0x3 pattern:$0x76325410]  ;;  %v2956_v42 = vunpack.c.l.b16 %v2295_v36 }
  0x6d   : > { %v823_v17 = vsel %vm822_vm6, %v821_v13, %v820_v14  ;;  %v2296_v46 = vld.sshfl [vmem:[%s2949_s28 + $0x6] sm:$0x3 pattern:$0x76325410]  ;;  %v2959_v48 = vunpack.c.l.b16 %v2293_v41  ;;  %v1205_v51 = vrot.slane %v2953_v37, 7 }
  0x6e   : > { %v826_v18 = vsel %vm825_vm7, %v824_v16, %v823_v17  ;;  %v2297_v53 = vld.sshfl [vmem:[%s2949_s28 + $0x8] sm:$0x3 pattern:$0x76325410]  ;;  %v2963_v54 = vunpack.c.l.b16 %v2296_v46  ;;  %v1207_v57 = vrot.slane %v2956_v42, 6 }
  0x6f   : > { %v827_v20 = vpack.c.b16 %v826_v18, %v826_v18  ;;  %v2298_v58 = vld.sshfl [vmem:[%s2949_s28 + $0xa] sm:$0x3 pattern:$0x76325410]  ;;  %v2967_v61 = vunpack.c.l.b16 %v2297_v53  ;;  %v1206_v62 = vsel %vm807_vm1, %v1205_v51, %v2959_v48 }
  0x70   : > { %v2299_v63 = vld.sshfl [vmem:[%s2949_s28 + $0xc] sm:$0x3 pattern:$0x76325410]  ;;  %v2972_v0 = vunpack.c.l.b16 %v2298_v58  ;;  %v1208_v3 = vsel %vm810_vm2, %v1207_v57, %v1206_v62  ;;  %v1209_v4 = vrot.slane %v2963_v54, 5 }
  0x71   : > { %2361 = vmatmul.mubr.msk.bf16.vlgmr.msra.gmra.mrb[0].mxu0 %vm1001_vm8, %v827_v20  ;;  %v2300_v8 = vld.sshfl [vmem:[%s2949_s28 + $0xe] sm:$0x3 pattern:$0x76325410]  ;;  %v2977_v10 = vunpack.c.l.b16 %v2299_v63  ;;  %v1211_v11 = vrot.slane %v2967_v61, 4 }
  0x72   : > { %2366 = vmatprep.mubr.msk.bf16.mxu0 %vm2624_vm0, %v3389_v40  ;;  %v2301_v13 = vld.sshfl [vmem:[%s2949_s28 + $0x10] sm:$0x3 pattern:$0x76325410]  ;;  %v1210_v14 = vsel %vm813_vm3, %v1209_v4, %v1208_v3  ;;  %v1213_v16 = vrot.slane %v2972_v0, 3 }
  0x73   : > { %v2302_v17 = vld.sshfl [vmem:[%s2949_s28 + $0x12] sm:$0x3 pattern:$0x76325410]  ;;  %v1212_v18 = vsel %vm816_vm4, %v1211_v11, %v1210_v14 }
  0x74   : > { %v2303_v20 = vld.sshfl [vmem:[%s2949_s28 + $0x14] sm:$0x3 pattern:$0x76325410] }
  0x75   : > { %v2306_v35 = vld.sshfl [vmem:[%s2949_s28 + $0x1a] sm:$0x3 pattern:$0x76325410] }
  0x76   : > { %v2307_v46 = vld.sshfl [vmem:[%s2949_s28 + $0x1c] sm:$0x3 pattern:$0x76325410]  ;;  %v3006_v51 = vunpack.c.l.b16 %v2306_v35  ;;  %v1354_v35 = vrot.slane %v2818_v44, 1 }
  0x77   : > { %v2308_v62 = vld.sshfl [vmem:[%s2949_s28 + $0x1e] sm:$0x3 pattern:$0x76325410]  ;;  %v3013_v63 = vunpack.c.l.b16 %v2307_v46  ;;  %v1356_v46 = vrot.slane %v2823_v47, 7 }
  0x78   : > { %v3018_v11 = vunpack.c.l.b16 %v2308_v62  ;;  %v1227_v14 = vrot.slane %v3006_v51, 3  ;;  %v1358_v62 = vrot.slane %v2826_v49, 6 }
 0x144   : > { %v1042_v22 = vpop.f32.mrb[0].mxu0 }
 0x145   : > { %v1043_v23 = vadd.f32 %v1042_v22, %v2940_v21  ;;  %v2362_v25 = vpop.f32.mrb[1].mxu0  ;;  %v2986_v22 = vunpack.c.l.b16 %v2300_v8 }
 0x146   : > { %v1045_v26 = vpop.f32.mrb[2].mxu0  ;;  %v2990_v25 = vunpack.c.l.b16 %v2302_v17  ;;  %v1229_v17 = vrot.slane %v3013_v63, 2 }
 0x147   : > { %v2363_v28 = vpop.f32.mrb[3].mxu0  ;;  %v1049_v29 = vsel %vm1048_vm9, %v1043_v23, -inf  ;;  %v2304_v26 = vld.sshfl [vmem:[%s2949_s28 + $0x16] sm:$0x3 pattern:$0x76325410] }
 0x148   : > { %1050 = vmax.xlane.f32.xlu0 %v1049_v29  ;;  %v2993_v28 = vunpack.c.l.b16 %v2303_v20  ;;  %v1215_v29 = vrot.slane %v2977_v10, 2  ;;  %v1217_v53 = vrot.slane %v2986_v22, 1 }
 0x14a   : > { %v1221_v41 = vrot.slane %v2993_v28, 6 }
 0x1d5   : > { %v1051_v30 = vpop.xlane.xlu0 %1050 }
 0x1d6   : > { %v1052_v31 = vsub.f32 %v1043_v23, %v1051_v30  ;;  %v2988_v23 = vunpack.c.l.b16 %v2301_v13  ;;  %v2305_v30 = vld.sshfl [vmem:[%s2949_s28 + $0x18] sm:$0x3 pattern:$0x76325410] }
 0x1d7   : > { %v3002_v36 = vunpack.c.l.b16 %v2305_v30 }
 0x1d8   : > { %v1053_v32 = vmul.f32 1.442695, %v1052_v31  ;;  %v2997_v31 = vunpack.c.l.b16 %v2304_v26  ;;  %v1231_v26 = vrot.slane %v3018_v11, 1 }
 0x1d9   : > { %v1225_v8 = vrot.slane %v3002_v36, 4 }
 0x1da   : > { %2535 = vpow2.f32 %v1053_v32  ;;  %v1214_v32 = vsel %vm819_vm5, %v1213_v16, %v1212_v18  ;;  %v1223_v58 = vrot.slane %v2997_v31, 5 }
 0x1db   : > { %v1216_v3 = vsel %vm822_vm6, %v1215_v29, %v1214_v32 }
 0x1dc   : > { %v1218_v18 = vsel %vm825_vm7, %v1217_v53, %v1216_v3  ;;  %v1370_v53 = vrot.slane %v2859_v9, 7  ;;  %v1372_v3 = vrot.slane %v2863_v12, 6 }
 0x1e4   : > { %v2944_v33 = vpop.eup %2535 }
 0x1e5   : > { %v1055_v34 = vsel %vm1048_vm9, %v2944_v33, 0.0 }
 0x1e6   : > { %1056 = vadd.xlane.f32.xlu0 %v1055_v34  ;;  %v1219_v34 = vrot.slane %v2990_v25, 7 }
 0x1e8   : > { %v1220_v57 = vsel %vm807_vm1, %v1219_v34, %v2988_v23  ;;  %v2527_v34 = vld [vmem:[%s3383_s4] sm:$0xff]  }
 0x1e9   : > { %v1222_v4 = vsel %vm810_vm2, %v1221_v41, %v1220_v57  ;;  %2371 = vmatpush3.bf16.msra.mxu1 %v2527_v34  ;;  %v1368_v41 = vrot.slane %v2853_v5, 1  ;;  %v1355_v57 = vsel %vm807_vm1, %v2820_v45, %v1354_v35  ;;  %v1376_v34 = vrot.slane %v2872_v19, 4 }
 0x1ea   : > { %v1224_v13 = vsel %vm813_vm3, %v1223_v58, %v1222_v4  ;;  %2372 = vmatprep.subr.bf16.mxu1 %v3389_v40  ;;  %v1357_v4 = vsel %vm810_vm2, %v1356_v46, %v1355_v57  ;;  %v1341_v57 = vrot.slane %v2897_v43, 7 }
 0x1eb   : > { %v1226_v16 = vsel %vm816_vm4, %v1225_v8, %v1224_v13  ;;  %v1369_v58 = vsel %vm807_vm1, %v2855_v6, %v1368_v41  ;;  %v1590_v13 = vrot.slane %v2818_v44, 2 }
 0x1ec   : > { %v1228_v20 = vsel %vm819_vm5, %v1227_v14, %v1226_v16  ;;  %v1371_v8 = vsel %vm810_vm2, %v1370_v53, %v1369_v58  ;;  %v1591_v14 = vrot.slane %v2820_v45, 1  ;;  %v1604_v16 = vrot.slane %v2853_v5, 2 }
 0x1ed   : > { %v1230_v29 = vsel %vm822_vm6, %v1229_v17, %v1228_v20  ;;  %v1605_v17 = vrot.slane %v2855_v6, 1  ;;  %v1374_v20 = vrot.slane %v2867_v15, 5  ;;  %v1364_v58 = vrot.slane %v2840_v59, 3 }
 0x1ee   : > { %v1232_v30 = vsel %vm825_vm7, %v1231_v26, %v1230_v29  ;;  %v1359_v26 = vsel %vm813_vm3, %v1358_v62, %v1357_v4  ;;  %v1373_v29 = vsel %vm813_vm3, %v1372_v3, %v1371_v8  ;;  %v1592_v35 = vsel %vm807_vm1, %v1591_v14, %v1590_v13 }
 0x1ef   : > { %v1233_v32 = vpack.c.b16 %v1232_v30, %v1218_v18  ;;  %v1360_v18 = vrot.slane %v2830_v52, 5  ;;  %v1339_v30 = vrot.slane %v2892_v38, 1  ;;  %v1606_v41 = vsel %vm807_vm1, %v1605_v17, %v1604_v16 }
 0x1f0   : > { %v1375_v53 = vsel %vm816_vm4, %v1374_v20, %v1373_v29  ;;  %v1594_v3 = vrot.slane %v2826_v49, 7  ;;  %v1608_v4 = vrot.slane %v2863_v12, 7  ;;  %v1366_v13 = vrot.slane %v2849_v2, 2 }
 0x1f1   : > { %2365 = vmatpush3.bf16.msra.mxu0 %v1233_v32  ;;  %v1362_v32 = vrot.slane %v2834_v55, 4  ;;  %v1361_v46 = vsel %vm816_vm4, %v1360_v18, %v1359_v26  ;;  %v1340_v62 = vsel %vm807_vm1, %v2894_v39, %v1339_v30  ;;  %v1378_v14 = vrot.slane %v2879_v24, 3 }
 0x1f2   : > { %2378 = vmatprep.subr.bf16.mxu0 %v3389_v40  ;;  %v1593_v16 = vsel %vm810_vm2, %v2823_v47, %v1592_v35  ;;  %v1607_v17 = vsel %vm810_vm2, %v2859_v9, %v1606_v41  ;;  %v1377_v20 = vsel %vm819_vm5, %v1376_v34, %v1375_v53  ;;  %v1343_v26 = vrot.slane %v2900_v50, 6 }
 0x1f3   : > { %v1363_v18 = vsel %vm819_vm5, %v1362_v32, %v1361_v46  ;;  %v1380_v29 = vrot.slane %v2883_v27, 2  ;;  %v1342_v30 = vsel %vm810_vm2, %v1341_v57, %v1340_v62  ;;  %v1596_v40 = vrot.slane %v2830_v52, 6 }
 0x1f4   : > { %v1610_v12 = vrot.slane %v2867_v15, 6  ;;  %v1595_v35 = vsel %vm813_vm3, %v1594_v3, %v1593_v16  ;;  %v1609_v49 = vsel %vm813_vm3, %v1608_v4, %v1607_v17  ;;  %v1575_v41 = vrot.slane %v2892_v38, 2 }
 0x1f5   : > { %v1576_v32 = vrot.slane %v2894_v39, 1  ;;  %v1365_v34 = vsel %vm822_vm6, %v1364_v58, %v1363_v18  ;;  %v1379_v46 = vsel %vm822_vm6, %v1378_v14, %v1377_v20  ;;  %v1345_v53 = vrot.slane %v2903_v56, 5 }
 0x1f6   : > { %v1344_v57 = vsel %vm813_vm3, %v1343_v26, %v1342_v30  ;;  %v1598_v62 = vrot.slane %v2834_v55, 5  ;;  %v1597_v3 = vsel %vm816_vm4, %v1596_v40, %v1595_v35  ;;  %v1611_v4 = vsel %vm816_vm4, %v1610_v12, %v1609_v49 }
 0x1f7   : > { %v1367_v16 = vsel %vm825_vm7, %v1366_v13, %v1365_v34  ;;  %v1381_v17 = vsel %vm825_vm7, %v1380_v29, %v1379_v46  ;;  %v1347_v58 = vrot.slane %v2906_v60, 4  ;;  %v1577_v14 = vsel %vm807_vm1, %v1576_v32, %v1575_v41 }
 0x1f8   : > { %v1346_v18 = vsel %vm816_vm4, %v1345_v53, %v1344_v57  ;;  %v1600_v20 = vrot.slane %v2840_v59, 4  ;;  %v1614_v26 = vrot.slane %v2879_v24, 4  ;;  %v1599_v30 = vsel %vm819_vm5, %v1598_v62, %v1597_v3 }
 0x1f9   : > { %v1579_v49 = vrot.slane %v2900_v50, 7  ;;  %v1382_v12 = vpack.c.b16 %v1381_v17, %v1367_v16  ;;  %v1349_v13 = vrot.slane %v2912_v1, 3  ;;  %v1578_v29 = vsel %vm810_vm2, %v2897_v43, %v1577_v14 }
 0x1fa   : > { %v1348_v41 = vsel %vm819_vm5, %v1347_v58, %v1346_v18  ;;  %v1602_v32 = vrot.slane %v2849_v2, 3  ;;  %v1616_v34 = vrot.slane %v2883_v27, 3  ;;  %v1601_v53 = vsel %vm822_vm6, %v1600_v20, %v1599_v30 }
 0x1fb   : > { %v1581_v62 = vrot.slane %v2903_v56, 6  ;;  %v1580_v3 = vsel %vm813_vm3, %v1579_v49, %v1578_v29  ;;  %v1387_v16 = vsel %vm1001_vm8, %v1382_v12, 0  ;;  %v1350_v17 = vsel %vm822_vm6, %v1349_v13, %v1348_v41 }
 0x1fc   : > { %v1603_v58 = vsel %vm825_vm7, %v1602_v32, %v1601_v53  ;;  %v3399_v20 = vmov 0.0   ;;  %v1587_v13 = vrot.slane %v2916_v7, 3 }
 0x1fd   : > { %v1582_v18 = vsel %vm816_vm4, %v1581_v62, %v1580_v3 }
 0x273   : > { %v1057_v8 = vpop.xlane.xlu0 %1056 }
 0x274   : > { %2537 = vrcp.f32 %v1057_v8  ;;  %v1612_v8 = vrot.slane %v2872_v19, 5 }
 0x276   : > { %v1613_v40 = vsel %vm819_vm5, %v1612_v8, %v1611_v4  ;;  %v1351_v8 = vrot.slane %v2916_v7, 2 }
 0x277   : > { %v1615_v57 = vsel %vm822_vm6, %v1614_v26, %v1613_v40  ;;  %v1585_v40 = vrot.slane %v2912_v1, 4 }
 0x278   : > { %v1617_v14 = vsel %vm825_vm7, %v1616_v34, %v1615_v57  ;;  %v1352_v26 = vsel %vm825_vm7, %v1351_v8, %v1350_v17  ;;  %v2528_v34 = vld [vmem:[%s3383_s4 + $0x8] sm:$0xff]  }
 0x279   : > { %v1618_v30 = vpack.c.b16 %v1617_v14, %v1603_v58  ;;  %v1353_v12 = vpack.c.b16 %v1352_v26, %v1352_v26  ;;  %2373 = vmatpush3.bf16.msra.mxu1 %v2528_v34 }
 0x27a   : > { %2384 = vmatprep.subr.bf16.mxu1 %v3399_v20 }
 0x27b   : > { %v1623_v29 = vsel %vm1001_vm8, %v1618_v30, 0 }
 0x27e   : > { %v2538_v35 = vpop.eup %2537 }
 0x27f   : > { %v1059_v46 = vmul.f32 %v2538_v35, %v2944_v33  ;;  %v1583_v33 = vrot.slane %v2906_v60, 5 }
 0x281   : > { %v1060_v4 = vpack.c.bf16 %v1059_v46, %v1059_v46  ;;  %v1584_v49 = vsel %vm819_vm5, %v1583_v33, %v1582_v18 }
 0x282   : > { %v1586_v35 = vsel %vm822_vm6, %v1585_v40, %v1584_v49 }
 0x283   : > { %2367 = vmatmul.mubr.msk.bf16.vlgmr.msra.gmra.mrb[4].mxu0 %vm1048_vm9, %v1060_v4  ;;  %v1588_v41 = vsel %vm825_vm7, %v1587_v13, %v1586_v35 }
 0x284   : > { %2379 = vmatpush3.bf16.xpose.msra.mxu0 %v1387_v16  ;;  %2380 = vmatprep.mubr.msk.bf16.mxu0 %vm2624_vm0, %v3399_v20  ;;  %v1589_v32 = vpack.c.b16 %v1588_v41, %v1588_v41 }
 0x285   : > { %2398 = vmatprep.subr.bf16.mxu0 %v3399_v20 }
 0x28b   : > { %2381 = vmatmul.mubr.msk.bf16.vlgmr.msra.gmra.mrb[8].mxu0 %vm1001_vm8, %v1353_v12 }
 0x28c   : > { %2399 = vmatpush3.bf16.xpose.msra.mxu0 %v1623_v29  ;;  %2400 = vmatprep.mubr.msk.bf16.mxu0 %vm2624_vm0, %v3399_v20 }
 0x28d   : > { %2404 = vmatprep.subr.bf16.mxu0 %v3399_v20 }
 0x293   : > { %2401 = vmatmul.mubr.msk.bf16.vlgmr.msra.gmra.mrb[12].mxu0 %vm1001_vm8, %v1589_v32 }
 0x294   : > { %2406 = vmatprep.mubr.msk.bf16.mxu0 %vm2624_vm0, %v3399_v20 }
 0x356   : > { %v1272_v46 = vpop.f32.mrb[4].mxu0 }
 0x357   : > { %v1282_v53 = vpack.c.bf16 %v1272_v46, %v1272_v46  ;;  %v2368_v57 = vpop.f32.mrb[5].mxu0 }
 0x358   : > { %v1275_v62 = vpop.f32.mrb[6].mxu0 }
 0x359   : > { %v2369_v8 = vpop.f32.mrb[7].mxu0  ;;  %2375 = vmatmul.mubr.msk.bf16.vlgmr.msra.gmra.mrb[0].mxu1 %vm1001_vm8, %v1282_v53  ;;  %v1677_v62 = vrot.slane %v2959_v48, 2 }
 0x35a   : > { %2386 = vmatprep.mubr.msk.bf16.mxu1 %vm2624_vm0, %v3399_v20  ;;  %v1678_v8 = vrot.slane %v2953_v37, 1 }
 0x35e   : > { %v1423_v3 = vpop.f32.mrb[8].mxu0 }
 0x35f   : > { %v1424_v4 = vadd.f32 %v1423_v3, %v2940_v21  ;;  %v2382_v16 = vpop.f32.mrb[9].mxu0  ;;  %v1691_v3 = vrot.slane %v2988_v23, 2 }
 0x360   : > { %v1426_v17 = vpop.f32.mrb[10].mxu0  ;;  %v1679_v16 = vsel %vm807_vm1, %v1678_v8, %v1677_v62  ;;  %v1703_v8 = vrot.slane %v3018_v11, 3 }
 0x361   : > { %v2383_v58 = vpop.f32.mrb[11].mxu0  ;;  %v1429_v14 = vsel %vm1048_vm9, %v1424_v4, -inf  ;;  %v1681_v17 = vrot.slane %v2963_v54, 7 }
 0x362   : > { %1430 = vmax.xlane.f32.xlu0 %v1429_v14  ;;  %v1695_v14 = vrot.slane %v2997_v31, 7 }
 0x366   : > { %v1659_v33 = vpop.f32.mrb[12].mxu0 }
 0x367   : > { %v1660_v18 = vadd.f32 %v1659_v33, %v2940_v21  ;;  %v2402_v26 = vpop.f32.mrb[13].mxu0  ;;  %v1680_v33 = vsel %vm810_vm2, %v2956_v42, %v1679_v16 }
 0x368   : > { %v1662_v30 = vpop.f32.mrb[14].mxu0 }
 0x369   : > { %v2403_v40 = vpop.f32.mrb[15].mxu0  ;;  %v1665_v49 = vsel %vm1048_vm9, %v1660_v18, -inf  ;;  %v1697_v30 = vrot.slane %v3002_v36, 6 }
 0x36a   : > { %1666 = vmax.xlane.f32.xlu1 %v1665_v49  ;;  %v1682_v40 = vsel %vm813_vm3, %v1681_v17, %v1680_v33  ;;  %v1685_v49 = vrot.slane %v2972_v0, 5  ;;  %v1443_v33 = vrot.slane %v2956_v42, 7 }
 0x3ef   : > { %v1431_v12 = vpop.xlane.xlu0 %1430 }
 0x3f0   : > { %v1432_v13 = vsub.f32 %v1424_v4, %v1431_v12  ;;  %v1692_v4 = vrot.slane %v2990_v25, 1 }
 0x3f2   : > { %v1433_v41 = vmul.f32 1.442695, %v1432_v13  ;;  %v1693_v58 = vsel %vm807_vm1, %v1692_v4, %v1691_v3  ;;  %v1699_v13 = vrot.slane %v3006_v51, 5 }
 0x3f3   : > { %v1694_v26 = vsel %vm810_vm2, %v2993_v28, %v1693_v58 }
 0x3f4   : > { %v1696_v12 = vsel %vm813_vm3, %v1695_v14, %v1694_v26  ;;  %v1441_v14 = vrot.slane %v2959_v48, 1  ;;  %v1445_v26 = vrot.slane %v2963_v54, 6 }
 0x3f7   : > { %v1667_v29 = vpop.xlane.xlu1 %1666 }
 0x3f8   : > { %v1668_v35 = vsub.f32 %v1660_v18, %v1667_v29  ;;  %v1683_v18 = vrot.slane %v2967_v61, 6 }
 0x3fa   : > { %v1669_v32 = vmul.f32 1.442695, %v1668_v35  ;;  %v1684_v29 = vsel %vm816_vm4, %v1683_v18, %v1682_v40  ;;  %v1687_v35 = vrot.slane %v2977_v10, 4  ;;  %v1442_v18 = vsel %vm807_vm1, %v2953_v37, %v1441_v14 }
 0x3fb   : > { %v1447_v40 = vrot.slane %v2967_v61, 5  ;;  %v1467_v14 = vrot.slane %v3018_v11, 2 }
 0x3fc   : > { %2539 = vpow2.f32 %v1669_v32  ;;  %v1701_v32 = vrot.slane %v3013_v63, 4 }
 0x3fd   : > { %2541 = vpow2.f32 %v1433_v41  ;;  %v1698_v41 = vsel %vm816_vm4, %v1697_v30, %v1696_v12  ;;  %v1444_v30 = vsel %vm810_vm2, %v1443_v33, %v1442_v18  ;;  %v1449_v12 = vrot.slane %v2972_v0, 4 }
 0x3fe   : > { %v1700_v62 = vsel %vm819_vm5, %v1699_v13, %v1698_v41  ;;  %v1451_v13 = vrot.slane %v2977_v10, 3 }
 0x3ff   : > { %v1702_v4 = vsel %vm822_vm6, %v1701_v32, %v1700_v62  ;;  %v1457_v32 = vrot.slane %v2993_v28, 7  ;;  %v1453_v62 = vrot.slane %v2986_v22, 2 }
 0x400   : > { %v1704_v17 = vsel %vm825_vm7, %v1703_v8, %v1702_v4 }
 0x406   : > { %v3149_v34 = vpop.eup %2539 }
 0x407   : > { %v1671_v46 = vsel %vm1048_vm9, %v3149_v34, 0.0  ;;  %v3153_v53 = vpop.eup %2541 }
 0x408   : > { %1672 = vadd.xlane.f32.xlu1 %v1671_v46  ;;  %v1435_v57 = vsel %vm1048_vm9, %v3153_v53, 0.0  ;;  %v1686_v46 = vsel %vm819_vm5, %v1685_v49, %v1684_v29  ;;  %v1446_v49 = vsel %vm813_vm3, %v1445_v26, %v1444_v30 }
 0x409   : > { %v1688_v3 = vsel %vm822_vm6, %v1687_v35, %v1686_v46  ;;  %v1448_v29 = vsel %vm816_vm4, %v1447_v40, %v1446_v49  ;;  %v1455_v35 = vrot.slane %v2988_v23, 1  ;;  %v1459_v46 = vrot.slane %v2997_v31, 6 }
 0x40a   : > { %v1450_v41 = vsel %vm819_vm5, %v1449_v12, %v1448_v29  ;;  %v1826_v12 = vrot.slane %v2818_v44, 3  ;;  %v1840_v29 = vrot.slane %v2853_v5, 3  ;;  %v1832_v44 = vrot.slane %v2830_v52, 7 }
 0x40b   : > { %v1456_v8 = vsel %vm807_vm1, %v2990_v25, %v1455_v35  ;;  %v1452_v4 = vsel %vm822_vm6, %v1451_v13, %v1450_v41  ;;  %v1827_v13 = vrot.slane %v2820_v45, 2  ;;  %v1841_v35 = vrot.slane %v2855_v6, 2  ;;  %v3401_v6 = vld [vmem:[#allocation8_spill] sm:$0xff] }
 0x40c   : > { %1436 = vadd.xlane.f32.xlu1 %v1435_v57  ;;  %v1689_v57 = vrot.slane %v2986_v22, 3  ;;  %v1454_v18 = vsel %vm825_vm7, %v1453_v62, %v1452_v4  ;;  %v1829_v41 = vrot.slane %v2823_v47, 1  ;;  %v1846_v45 = vrot.slane %v2867_v15, 7 }
 0x40d   : > { %v1812_v4 = vrot.slane %v2894_v39, 2  ;;  %v1814_v15 = vrot.slane %v2897_v43, 1  ;;  %v1838_v39 = vrot.slane %v2849_v2, 4 }
 0x40e   : > { %v1690_v16 = vsel %vm825_vm7, %v1689_v57, %v1688_v3  ;;  %v1461_v57 = vrot.slane %v3002_v36, 5  ;;  %v1463_v3 = vrot.slane %v3006_v51, 4 }
 0x40f   : > { %v1705_v58 = vpack.c.b16 %v1704_v17, %v1690_v16  ;;  %v1458_v16 = vsel %vm810_vm2, %v1457_v32, %v1456_v8  ;;  %v1465_v17 = vrot.slane %v3013_v63, 3  ;;  %v1843_v32 = vrot.slane %v2859_v9, 1 }
 0x410   : > { %v1811_v9 = vrot.slane %v2892_v38, 3 }
 0x411   : > { %2405 = vmatpush3.bf16.msra.mxu0 %v1705_v58  ;;  %v1460_v58 = vsel %vm813_vm3, %v1459_v46, %v1458_v16  ;;  %v1828_v46 = vsel %vm807_vm1, %v1827_v13, %v1826_v12  ;;  %v1834_v16 = vrot.slane %v2834_v55, 6 }
 0x412   : > { %2418 = vmatprep.subr.bf16.mxu0 %v3399_v20  ;;  %v1462_v33 = vsel %vm816_vm4, %v1461_v57, %v1460_v58  ;;  %v1842_v57 = vsel %vm807_vm1, %v1841_v35, %v1840_v29  ;;  %v1830_v62 = vsel %vm810_vm2, %v1829_v41, %v1828_v46  ;;  %v1819_v29 = vrot.slane %v2906_v60, 6 }
 0x413   : > { %v1464_v26 = vsel %vm819_vm5, %v1463_v3, %v1462_v33  ;;  %v1844_v8 = vsel %vm810_vm2, %v1843_v32, %v1842_v57  ;;  %v3400_v3 = vld [vmem:[#allocation7_spill] sm:$0xff]  ;;  %v1821_v35 = vrot.slane %v2912_v1, 5  ;;  %v1823_v46 = vrot.slane %v2916_v7, 4  ;;  %v2529_v7 = vld [vmem:[%s3383_s4 + $0x10] sm:$0xff]  }
 0x414   : > { %v1466_v30 = vsel %vm822_vm6, %v1465_v17, %v1464_v26  ;;  %v1831_v5 = vsel %vm813_vm3, %v3400_v3, %v1830_v62  ;;  %v1845_v47 = vsel %vm813_vm3, %v3401_v6, %v1844_v8  ;;  %v1848_v17 = vrot.slane %v2872_v19, 6 }
 0x415   : > { %v1468_v40 = vsel %vm825_vm7, %v1467_v14, %v1466_v30  ;;  %v1833_v58 = vsel %vm816_vm4, %v1832_v44, %v1831_v5  ;;  %v1847_v52 = vsel %vm816_vm4, %v1846_v45, %v1845_v47  ;;  %v1813_v14 = vsel %vm807_vm1, %v1812_v4, %v1811_v9  ;;  %v2531_v9 = vld [vmem:[%s3383_s4 + $0x20] sm:$0xff]  }
 0x416   : > { %v1469_v49 = vpack.c.b16 %v1468_v40, %v1454_v18  ;;  %v1836_v18 = vrot.slane %v2840_v59, 5  ;;  %v1850_v26 = vrot.slane %v2879_v24, 5  ;;  %v1835_v38 = vsel %vm819_vm5, %v1834_v16, %v1833_v58 }
 0x417   : > { %v1849_v55 = vsel %vm819_vm5, %v1848_v17, %v1847_v52  ;;  %v1815_v19 = vsel %vm810_vm2, %v1814_v15, %v1813_v14  ;;  %v1852_v30 = vrot.slane %v2883_v27, 4  ;;  %v1817_v59 = vrot.slane %v2903_v56, 7  ;;  %v2532_v15 = vld [vmem:[%s3383_s4 + $0x28] sm:$0xff]  }
 0x418   : > { %2385 = vmatpush3.bf16.msra.mxu1 %v1469_v49  ;;  %v1837_v43 = vsel %vm822_vm6, %v1836_v18, %v1835_v38  ;;  %v1851_v49 = vsel %vm822_vm6, %v1850_v26, %v1849_v55  ;;  %v1816_v24 = vsel %vm813_vm3, %v2900_v50, %v1815_v19 }
 0x419   : > { %2390 = vmatprep.subr.bf16.mxu1 %v3399_v20  ;;  %v1839_v12 = vsel %vm825_vm7, %v1838_v39, %v1837_v43  ;;  %v1853_v13 = vsel %vm825_vm7, %v1852_v30, %v1851_v49  ;;  %v1818_v2 = vsel %vm816_vm4, %v1817_v59, %v1816_v24  ;;  %v1913_v43 = vrot.slane %v2959_v48, 3 }
 0x41a   : > { %v1854_v27 = vpack.c.b16 %v1853_v13, %v1839_v12  ;;  %v1820_v32 = vsel %vm819_vm5, %v1819_v29, %v1818_v2  ;;  %v1914_v49 = vrot.slane %v2953_v37, 2  ;;  %v1927_v59 = vrot.slane %v2988_v23, 3 }
 0x41b   : > { %v1822_v62 = vsel %vm822_vm6, %v1821_v35, %v1820_v32  ;;  %v1928_v24 = vrot.slane %v2990_v25, 2  ;;  %v1916_v12 = vrot.slane %v2956_v42, 1  ;;  %v1930_v13 = vrot.slane %v2993_v28, 1 }
 0x41c   : > { %v1859_v50 = vsel %vm1001_vm8, %v1854_v27, 0  ;;  %v1824_v1 = vsel %vm825_vm7, %v1823_v46, %v1822_v62  ;;  %v1915_v29 = vsel %vm807_vm1, %v1914_v49, %v1913_v43  ;;  %v1919_v35 = vrot.slane %v2967_v61, 7 }
 0x41d   : > { %v1825_v44 = vpack.c.b16 %v1824_v1, %v1824_v1  ;;  %v1929_v2 = vsel %vm807_vm1, %v1928_v24, %v1927_v59  ;;  %v1917_v27 = vsel %vm810_vm2, %v1916_v12, %v1915_v29  ;;  %v1933_v37 = vrot.slane %v3002_v36, 7 }
 0x41e   : > { %v1931_v48 = vsel %vm810_vm2, %v1930_v13, %v1929_v2  ;;  %v1918_v23 = vsel %vm813_vm3, %v2963_v54, %v1917_v27  ;;  %v1921_v25 = vrot.slane %v2972_v0, 6  ;;  %v1935_v28 = vrot.slane %v3006_v51, 6 }
 0x41f   : > { %v1932_v42 = vsel %vm813_vm3, %v2997_v31, %v1931_v48  ;;  %v1923_v32 = vrot.slane %v2977_v10, 5  ;;  %v1925_v46 = vrot.slane %v2986_v22, 4  ;;  %v1939_v0 = vrot.slane %v3018_v11, 4  ;;  %v2533_v11 = vld [vmem:[%s3383_s4 + $0x30] sm:$0xff]  }
 0x420   : > { %v1934_v61 = vsel %vm816_vm4, %v1933_v37, %v1932_v42 }
 0x421   : > { %v1936_v54 = vsel %vm819_vm5, %v1935_v28, %v1934_v61 }
 0x495   : > { %v1673_v33 = vpop.xlane.xlu1 %1672 }
 0x496   : > { %2543 = vrcp.f32 %v1673_v33 }
 0x499   : > { %v1437_v40 = vpop.xlane.xlu1 %1436 }
 0x49a   : > { %2545 = vrcp.f32 %v1437_v40 }
 0x4a0   : > { %v2544_v41 = vpop.eup %2543 }
 0x4a1   : > { %v1675_v56 = vmul.f32 %v2544_v41, %v3149_v34  ;;  %v1920_v41 = vsel %vm816_vm4, %v1919_v35, %v1918_v23 }
 0x4a2   : > { %v1922_v36 = vsel %vm819_vm5, %v1921_v25, %v1920_v41 }
 0x4a3   : > { %v1676_v57 = vpack.c.bf16 %v1675_v56, %v1675_v56  ;;  %v1937_v56 = vrot.slane %v3013_v63, 5  ;;  %v1924_v31 = vsel %vm822_vm6, %v1923_v32, %v1922_v36 }
 0x4a4   : > { %v2546_v8 = vpop.eup %2545 }
 0x4a5   : > { %v1439_v60 = vmul.f32 %v2546_v8, %v3153_v53  ;;  %2407 = vmatmul.mubr.msk.bf16.vlgmr.msra.gmra.mrb[16].mxu0 %vm1048_vm9, %v1676_v57  ;;  %v2530_v53 = vld [vmem:[%s3383_s4 + $0x18] sm:$0xff]   ;;  %v1938_v51 = vsel %vm822_vm6, %v1937_v56, %v1936_v54  ;;  %v1926_v57 = vsel %vm825_vm7, %v1925_v46, %v1924_v31 }
 0x4a6   : > { %2419 = vmatpush3.bf16.xpose.msra.mxu0 %v1859_v50  ;;  %2420 = vmatprep.mubr.msk.bf16.mxu0 %vm2624_vm0, %v3399_v20  ;;  %v1940_v10 = vsel %vm825_vm7, %v1939_v0, %v1938_v51 }
 0x4a7   : > { %v1440_v34 = vpack.c.bf16 %v1439_v60, %v1439_v60  ;;  %v1941_v50 = vpack.c.b16 %v1940_v10, %v1926_v57  ;;  %v2534_v60 = vld [vmem:[%s3383_s4 + $0x38] sm:$0xff]  }
 0x4a9   : > { %2387 = vmatmul.mubr.msk.bf16.vlgmr.msra.gmra.mrb[4].mxu1 %vm1048_vm9, %v1440_v34 }
 0x4aa   : > { %2391 = vmatpush3.bf16.msra.mxu1 %v2529_v7  ;;  %2394 = vmatprep.mubr.msk.bf16.mxu1 %vm2624_vm0, %v3399_v20 }
 0x4ab   : > { %2392 = vmatprep.subr.bf16.mxu1 %v3399_v20 }
 0x4ad   : > { %2421 = vmatmul.mubr.msk.bf16.vlgmr.msra.gmra.mrb[20].mxu0 %vm1001_vm8, %v1825_v44 }
 0x4ae   : > { %2393 = vmatpush3.bf16.msra.mxu1 %v2530_v53 }
 0x4af   : > { %2410 = vmatprep.subr.bf16.mxu1 %v3399_v20 }
 0x578   : > { %v1744_v45 = vpop.f32.mrb[16].mxu0 }
 0x579   : > { %v2408_v3 = vpop.f32.mrb[17].mxu0  ;;  %v1754_v55 = vpack.c.bf16 %v1744_v45, %v1744_v45  ;;  %v725_v45 = vld [vmem:[%s674_s21] sm:$0xff] }
 0x57a   : > { %v1747_v5 = vpop.f32.mrb[18].mxu0  ;;  %v2267_v3 = vld [vmem:[%s3384_s5] ss:$0 sm:$0xff] }
 0x57b   : > { %v2409_v6 = vpop.f32.mrb[19].mxu0  ;;  %v733_v5 = vadd.f32 %v2267_v3, %v725_v45 }
 0x57c   : > { %v1508_v47 = vpop.f32.mrb[4].mxu1 }
 0x57d   : > { %v1518_v4 = vpack.c.bf16 %v1508_v47, %v1508_v47  ;;  %v2388_v16 = vpop.f32.mrb[5].mxu1 }
 0x57e   : > { %v1511_v17 = vpop.f32.mrb[6].mxu1 }
 0x57f   : > { %v2389_v58 = vpop.f32.mrb[7].mxu1  ;;  %2395 = vmatmul.mubr.msk.bf16.vlgmr.msra.gmra.mrb[0].mxu1 %vm1001_vm8, %v1518_v4 }
 0x580   : > { %v1895_v52 = vpop.f32.mrb[20].mxu0  ;;  %2411 = vmatpush3.bf16.msra.mxu1 %v2531_v9  ;;  %2414 = vmatprep.mubr.msk.bf16.mxu1 %vm2624_vm0, %v3399_v20 }
 0x581   : > { %v1896_v14 = vadd.f32 %v1895_v52, %v2940_v21  ;;  %v2422_v33 = vpop.f32.mrb[21].mxu0  ;;  %2412 = vmatprep.subr.bf16.mxu1 %v3399_v20 }
 0x582   : > { %v1898_v18 = vpop.f32.mrb[22].mxu0 }
 0x583   : > { %v2423_v26 = vpop.f32.mrb[23].mxu0  ;;  %v1901_v38 = vsel %vm1048_vm9, %v1896_v14, -inf }
 0x584   : > { %1902 = vmax.xlane.f32.xlu0 %v1901_v38  ;;  %2413 = vmatpush3.bf16.msra.mxu1 %v2532_v15 }
 0x585   : > { %2424 = vmatprep.subr.bf16.mxu1 %v3399_v20 }
 0x58b   : > { %2415 = vmatmul.mubr.msk.bf16.vlgmr.msra.gmra.mrb[0].mxu1 %vm1001_vm8, %v1754_v55 }
 0x58c   : > { %2426 = vmatprep.mubr.msk.bf16.mxu1 %vm2624_vm0, %v3399_v20  ;;  %2425 = vmatpush3.bf16.msra.mxu1 %v1941_v50 }
 0x58d   : > { %2430 = vmatprep.subr.bf16.mxu1 %v3399_v20 }
 0x611   : > { %v1903_v19 = vpop.xlane.xlu0 %1902 }
 0x612   : > { %v1904_v39 = vsub.f32 %v1896_v14, %v1903_v19 }
 0x614   : > { %v1905_v21 = vmul.f32 1.442695, %v1904_v39 }
 0x616   : > { %2547 = vpow2.f32 %v1905_v21 }
 0x620   : > { %v2548_v30 = vpop.eup %2547 }
 0x621   : > { %v1907_v40 = vsel %vm1048_vm9, %v2548_v30, 0.0 }
 0x622   : > { %1908 = vadd.xlane.f32.xlu1 %v1907_v40 }
 0x6af   : > { %v1909_v63 = vpop.xlane.xlu1 %1908 }
 0x6b0   : > { %2549 = vrcp.f32 %v1909_v63 }
 0x6ba   : > { %v2550_v62 = vpop.eup %2549 }
 0x6bb   : > { %v1911_v22 = vmul.f32 %v2550_v62, %v2548_v30 }
 0x6bd   : > { %v1912_v8 = vpack.c.bf16 %v1911_v22, %v1911_v22 }
 0x6bf   : > { %2427 = vmatmul.mubr.msk.bf16.vlgmr.msra.gmra.mrb[8].mxu1 %vm1048_vm9, %v1912_v8 }
 0x6c0   : > { %2431 = vmatpush3.bf16.msra.mxu1 %v2533_v11  ;;  %2434 = vmatprep.mubr.msk.bf16.mxu1 %vm2624_vm0, %v3399_v20 }
 0x6c1   : > { %2432 = vmatprep.subr.bf16.mxu1 %v3399_v20 }
 0x6c4   : > { %2433 = vmatpush3.bf16.msra.mxu1 %v2534_v60 }
 0x792   : > { %v1980_v1 = vpop.f32.mrb[8].mxu1 }
 0x793   : > { %v1990_v7 = vpack.c.bf16 %v1980_v1, %v1980_v1  ;;  %v2428_v34 = vpop.f32.mrb[9].mxu1 }
 0x794   : > { %v1983_v44 = vpop.f32.mrb[10].mxu1 }
 0x795   : > { %v2429_v53 = vpop.f32.mrb[11].mxu1  ;;  %2435 = vmatmul.mubr.msk.bf16.vlgmr.msra.gmra.mrb[0].mxu1 %vm1001_vm8, %v1990_v7 }
 0x868   : > { %v2040_v20 = vpop.f32.mrb[0].mxu1 }
 0x869   : > { %v2438_v6 = vadd.f32 %v2040_v20, %v733_v5  ;;  %v2436_v47 = vpop.f32.mrb[1].mxu1 }
 0x86a   : > { %v2043_v9 = vpop.f32.mrb[2].mxu1 }
 0x86b   : > { %2047 = vst [vmem:[%s682_s13] sm:$0xff] %v2438_v6  ;;  %v2437_v4 = vpop.f32.mrb[3].mxu1 }
 0x86c PF: > { %s17_s9 = sadd.s32 1, %s2621_s9   ;;  %s3402_s10 = sld [smem:[#allocation5_spill]] }
 0x86d   : > { %p14_p1 = scmp.ge.s32.totalorder %s17_s9, 6   ;;  %s3403_s16 = sld [smem:[#allocation6_spill]] }
 0x86e   : > { %s3404_s24 = smov %s2593_s25  ;;  %s3405_s25 = smov %s2737_s19 }
 0x86f   : > { %s3406_s26 = smov %s2601_s27  ;;  %s3407_s27 = smov %s2740_s20 }
 0x870   : > { %s3408_s28 = smov %s2613_s30  ;;  %s3409_s29 = smov %s2617_s8 }
 0x871   :  { %16 = sbr.rel (!%p14_p1) target bundleno = 5 (0x5), region = 228 }
 0x872   : > { %s3410_s30 = smov %s3402_s10 }
 0x873   : > { %s3411_s8 = smov %s3403_s16 }

// kernel: decoder_layer_forward.11
= control target key start
LH: loop header
LB: loop body
LE: loop exit
PB: predicated region body
PF: predicated region fallthrough
CT: control target
= control target key end

     0   :  { %s1622_s0 = inlined_call_operand.vmem [shape: f32[32,128], index: 0, kind: input, shape index: {}]   ;;  %s1623_s1 = inlined_call_operand.vmem [shape: f32[1,128], index: 1, kind: input, shape index: {}]   ;;  %s1624_s2 = inlined_call_operand.vmem [shape: f32[1,128], index: 2, kind: input, shape index: {}]   ;;  %s1625_s3 = inlined_call_operand.vmem [shape: bf16[128,512], index: 3, kind: input, shape index: {}]   ;;  %s1626_s4 = inlined_call_operand.vmem [shape: f32[1,512], index: 4, kind: input, shape index: {}]   ;;  %s1627_s5 = inlined_call_operand.vmem [shape: bf16[512,128], index: 5, kind: input, shape index: {}]   ;;  %s1628_s6 = inlined_call_operand.vmem [shape: f32[1,128], index: 6, kind: input, shape index: {}]   ;;  %s1629_s7 = inlined_call_operand.hbm [shape: f32[32,128], index: 7, kind: output, shape index: {}]  }
   0x1   :  { %1637 = sst [smem:[#allocation16_spill]] %s1625_s3 }
   0x2   :  { %12 = vsyncpa [#allocation6], 0 }
   0x3   :  { %14 = vsyncpa [#allocation6 + $0x1], 0  ;;  %s1354_s24 = smov 0   ;;  %s1356_s25 = smov 0  }
   0x4   :  { %s1358_s26 = smov 0   ;;  %s1360_s27 = smov 0  }
   0x5   :  { %s1362_s28 = smov 0   ;;  %s1364_s29 = smov 0  }
   0x6   :  { %s1366_s30 = smov 0   ;;  %s1368_s8 = smov 0  }
   0x7   :  { %s1370_s9 = smov 0   ;;  %s1372_s10 = smov 0  }
   0x8 LB: > { %1638 = sst [smem:[#allocation8_spill]] %s1279_s26  ;;  %s981_s11 = sadd.s32 4294967295, %s1307_s10   ;;  %s1307_s10 = sphi %s1372_s10, %s20_s10   ;;  %s1303_s9 = sphi %s1370_s9, %s1658_s9   ;;  %s1299_s8 = sphi %s1368_s8, %s1657_s8   ;;  %s1295_s30 = sphi %s1366_s30, %s1656_s30   ;;  %s1291_s29 = sphi %s1364_s29, %s1655_s29   ;;  %s1287_s28 = sphi %s1362_s28, %s1654_s28   ;;  %s1283_s27 = sphi %s1360_s27, %s1653_s27   ;;  %s1279_s26 = sphi %s1358_s26, %s1652_s26   ;;  %s1275_s25 = sphi %s1356_s25, %s1660_s25   ;;  %s1271_s24 = sphi %s1354_s24, %s1659_s24  }
   0x9   : > { %1639 = sst [smem:[#allocation9_spill]] %s1287_s28  ;;  %s982_s12 = sadd.s32 4294967294, %s1307_s10  }
   0xa   : > { %1640 = sst [smem:[#allocation10_spill]] %s1299_s8  ;;  %s29_s13 = sadd.s32 1, %s1299_s8 }
   0xb   : > { %1641 = sst [smem:[#allocation11_spill]] %s1303_s9  ;;  %s32_s14 = sadd.s32 1, %s1303_s9 }
   0xc   : > { %p30_p0 = scmp.ge.s32.totalorder %s29_s13, 2  ;;  %s107_s15 = sadd.s32 1, %s1287_s28 }
   0xd   : > { %p114_p1 = scmp.ne.s32.totalorder %s1287_s28, %s1283_s27  ;;  %p115_p2 = scmp.eq.s32.totalorder %s1307_s10, 0 }
   0xe   : > { %s1662_s13 = smov (%p30_p0, %s29_s13), 0  ;;  %s1664_s14 = smov (!%p30_p0, %s32_s14), %s1303_s9 }
   0xf   : > { %1642 = sst [smem:[#allocation12_spill]] %s1662_s13  ;;  %s104_s16 = ssub.s32 %s1299_s8, %s1662_s13 }
  0x10   : > { %p1417_p3 = por %p115_p2, %p114_p1  ;;  %p34_p4 = scmp.ge.s32.totalorder %s1664_s14, 2 }
  0x11   : > { %p105_p5 = scmp.eq.s32.totalorder %s104_s16, 0  ;;  %s206_s18 = sadd.s32 1, %s1279_s26 }
  0x12   : > { %p216_p6 = scmp.ne.s32.totalorder %s1279_s26, %s1275_s25  ;;  %s1666_s14 = smov (%p34_p4, %s1664_s14), 0 }
  0x13   : > { %1644 = sst [smem:[#allocation13_spill]] %s1666_s14  ;;  %s203_s20 = ssub.s32 %s1303_s9, %s1666_s14 }
  0x14   : > { %s1427_s19 = scalar_select %p105_p5, %s1287_s28, %s107_s15  }
  0x15   : > { %p217_p7 = scmp.eq.s32.totalorder %s981_s11, 3  ;;  %p204_p8 = scmp.eq.s32.totalorder %s203_s20, 0 }
  0x16   : > { %1645 = sst [smem:[#allocation14_spill]] %s1427_s19  ;;  %p222_p9 = scmp.ne.s32.totalorder %s1275_s25, %s1271_s24 }
  0x17   : > { %p1433_p10 = por %p217_p7, %p216_p6  ;;  %p223_p11 = scmp.eq.s32.totalorder %s982_s12, 3 }
  0x18   : > { %s1438_s22 = scalar_select %p204_p8, %s1279_s26, %s206_s18  }
  0x19   : > { %p1440_p12 = por %p223_p11, %p222_p9  ;;  %p984_p13 = scmp.ge.s32.totalorder %s1307_s10, 4 }
  0x1a   : > { %1647 = sst [smem:[#allocation15_spill]] %s1438_s22 }
  0x1b   : > { %248 = sbr.rel (%p984_p13) target bundleno = 52 (0x34), region = 28 }
  0x22   : > { %260 = sbr.rel (!%p1417_p3) target bundleno = 52 (0x34), region = 36  ;;  %s262_s11 = sand.u32 (%p1417_p3), 1, %s1287_s28  }
  0x23   : > { %s1038_s15 = sshll.u32 (%p1417_p3), %s1299_s8, 3  ;;  %s985_s16 = sshll.u32 (%p1417_p3), %s262_s11, 7 }
  0x24   : > { %s1649_s3 = sld [smem:[#allocation16_spill]] (%p1417_p3)  ;;  %s264_s17 = scalar_lea.vmem (%p1417_p3), [#allocation4], %s985_s16 }
  0x2a   : > { %s1452_s12 = scalar_lea.vmem %s1649_s3, %s1038_s15 }
  0x2b   : > { %v325_v0 = vld [vmem:[%s1452_s12] sm:$0xff]  ;;  %v327_v1 = vld [vmem:[%s1452_s12 + $0x10] sm:$0xff] }
  0x2c   : > { %v329_v2 = vld [vmem:[%s1452_s12 + $0x20] sm:$0xff]  ;;  %326 = vst [vmem:[%s264_s17] sm:$0xff] %v325_v0  ;;  %328 = vst [vmem:[%s264_s17 + $0x8] sm:$0xff] %v327_v1  ;;  %v331_v3 = vld [vmem:[%s1452_s12 + $0x30] sm:$0xff] }
  0x2d   : > { %330 = vst [vmem:[%s264_s17 + $0x10] sm:$0xff] %v329_v2  ;;  %v333_v4 = vld [vmem:[%s1452_s12 + $0x40] sm:$0xff]  ;;  %v335_v5 = vld [vmem:[%s1452_s12 + $0x50] sm:$0xff]  ;;  %332 = vst [vmem:[%s264_s17 + $0x18] sm:$0xff] %v331_v3 }
  0x2e   : > { %334 = vst [vmem:[%s264_s17 + $0x20] sm:$0xff] %v333_v4  ;;  %336 = vst [vmem:[%s264_s17 + $0x28] sm:$0xff] %v335_v5  ;;  %v337_v6 = vld [vmem:[%s1452_s12 + $0x60] sm:$0xff]  ;;  %v339_v7 = vld [vmem:[%s1452_s12 + $0x70] sm:$0xff] }
  0x2f   : > { %v341_v8 = vld [vmem:[%s1452_s12 + $0x80] sm:$0xff]  ;;  %338 = vst [vmem:[%s264_s17 + $0x30] sm:$0xff] %v337_v6  ;;  %340 = vst [vmem:[%s264_s17 + $0x38] sm:$0xff] %v339_v7  ;;  %v343_v9 = vld [vmem:[%s1452_s12 + $0x90] sm:$0xff] }
  0x30   : > { %342 = vst [vmem:[%s264_s17 + $0x40] sm:$0xff] %v341_v8  ;;  %v345_v10 = vld [vmem:[%s1452_s12 + $0xa0] sm:$0xff]  ;;  %v347_v11 = vld [vmem:[%s1452_s12 + $0xb0] sm:$0xff]  ;;  %344 = vst [vmem:[%s264_s17 + $0x48] sm:$0xff] %v343_v9 }
  0x31   : > { %346 = vst [vmem:[%s264_s17 + $0x50] sm:$0xff] %v345_v10  ;;  %348 = vst [vmem:[%s264_s17 + $0x58] sm:$0xff] %v347_v11  ;;  %v349_v12 = vld [vmem:[%s1452_s12 + $0xc0] sm:$0xff]  ;;  %v351_v13 = vld [vmem:[%s1452_s12 + $0xd0] sm:$0xff] }
  0x32   : > { %v353_v14 = vld [vmem:[%s1452_s12 + $0xe0] sm:$0xff]  ;;  %350 = vst [vmem:[%s264_s17 + $0x60] sm:$0xff] %v349_v12  ;;  %352 = vst [vmem:[%s264_s17 + $0x68] sm:$0xff] %v351_v13  ;;  %v355_v15 = vld [vmem:[%s1452_s12 + $0xf0] sm:$0xff] }
  0x33   : > { %354 = vst [vmem:[%s264_s17 + $0x70] sm:$0xff] %v353_v14  ;;  %356 = vst [vmem:[%s264_s17 + $0x78] sm:$0xff] %v355_v15 }
  0x34 PF: > { %p988_p0 = scmp.ge.s32.totalorder %s1307_s10, 1  ;;  %p378_p1 = scmp.lt.s32.totalorder %s1307_s10, 5 }
  0x36   : > { %p379_p2 = pnand %p988_p0, %p378_p1 }
  0x37   : > { %s385_s14 = sand.u32 (!%p379_p2), 1, %s1283_s27   ;;  %s1633_s18 = sand.u32 (!%p379_p2), 1, %s1275_s25  }
  0x38   : > { %382 = sbr.rel (%p379_p2) target bundleno = 898 (0x382), region = 82  ;;  %s989_s11 = sshll.u32 (!%p379_p2), %s385_s14, 7 }
  0x39   : > { %s990_s15 = sshll.u32 (!%p379_p2), %s1633_s18, 4  ;;  %s991_s16 = sshll.u32 (!%p379_p2), %s1295_s30, 1 }
  0x3a   : > { %s993_s20 = sshll.u32 (!%p379_p2), %s1291_s29, 1  ;;  %p431_p3 = scmp.lt.s32.totalorder (!%p379_p2), %s991_s16, 3 }
  0x3b   : > { %p438_p4 = scmp.lt.s32.totalorder (!%p379_p2), %s993_s20, 3  ;;  %s994_s12 = sshll.u32 (!%p379_p2), %s1291_s29, 5 }
  0x3c   : > { %p443_p5 = scmp.lt.s32.totalorder (!%p379_p2), %s994_s12, 63  ;;  %s1495_s26 = scalar_lea.vmem (!%p379_p2), [#allocation4], %s989_s11 }
  0x3d   : > { %p996_p6 = scmp.ne.s32.totalorder (!%p379_p2), %s1291_s29, 0 }
  0x3f   : > { %s1668_s16 = smov (!%p431_p3, %s991_s16), 3  ;;  %s1670_s20 = smov (!%p438_p4, %s993_s20), 3 }
  0x40   : > { %s992_s17 = sshll.u32 %s1668_s16, 3  ;;  %s440_s18 = scalar_lea.vmem %s1626_s4, %s1670_s20  ;;  %v1309_v26 = vmov (!%p996_p6), 0.0   ;;  %v997_v35 = vld [vmem:[%s1623_s1] ss:$0 sm:$0xff] (!%p996_p6) }
  0x41   : > { %s1484_s9 = scalar_lea.vmem %s1622_s0, %s992_s17  ;;  %s1672_s12 = smov (!%p443_p5, %s994_s12), 63  ;;  %499 = vst [vmem:[#allocation3] sm:$0xff] (!%p996_p6), %v1309_v26  ;;  %500 = vst [vmem:[#allocation3 + $0x8] sm:$0xff] (!%p996_p6), %v1309_v26  ;;  %v998_v39 = vld [vmem:[%s1624_s2] ss:$0 sm:$0xff] (!%p996_p6) }
  0x42   : > { %s995_s8 = sshll.u32 %s1672_s12, 2  ;;  %s1497_s16 = scalar_lea.vmem [#allocation5], %s990_s15  ;;  %v454_v16 = vld [vmem:[%s1484_s9] sm:$0xff] (!%p996_p6)  ;;  %v455_v17 = vld [vmem:[%s1484_s9 + $0x8] sm:$0xff] (!%p996_p6) }
  0x43   : > { %s1493_s22 = scalar_lea.vmem %s1627_s5, %s995_s8  ;;  %453 = sbr.rel (%p996_p6) target bundleno = 385 (0x181), region = 90  ;;  %456 = vadd.xlane.f32.xlu0 (!%p996_p6), %v454_v16 }
  0x47   : > { %458 = vadd.xlane.f32.xlu0 (!%p996_p6), %v455_v17 }
  0xd0   : > { %v457_v18 = vpop.xlane.xlu0 %456 }
  0xd1   : > { %v461_v19 = vmul.f32 0.0078125, %v457_v18 }
  0xd3   : > { %v463_v20 = vsub.f32 %v454_v16, %v461_v19 }
  0xd4   : > { %v459_v21 = vpop.xlane.xlu0 %458 }
  0xd5   : > { %v462_v22 = vmul.f32 0.0078125, %v459_v21  ;;  %v465_v23 = vmul.f32 %v463_v20, %v463_v20 }
  0xd7   : > { %v464_v24 = vsub.f32 %v455_v17, %v462_v22  ;;  %467 = vadd.xlane.f32.xlu1 %v465_v23 }
  0xd9   : > { %v466_v25 = vmul.f32 %v464_v24, %v464_v24 }
  0xdb   : > { %469 = vadd.xlane.f32.xlu1 %v466_v25 }
 0x164   : > { %v468_v27 = vpop.xlane.xlu1 %467 }
 0x165   : > { %v471_v28 = vmul.f32 0.0078125, %v468_v27 }
 0x167   : > { %v473_v29 = vadd.f32 1e-05, %v471_v28 }
 0x168   : > { %v470_v30 = vpop.xlane.xlu1 %469 }
 0x169   : > { %1153 = vrsqrt.f32 %v473_v29  ;;  %v472_v31 = vmul.f32 0.0078125, %v470_v30 }
 0x16b   : > { %v474_v32 = vadd.f32 1e-05, %v472_v31 }
 0x16d   : > { %1155 = vrsqrt.f32 %v474_v32 }
 0x173   : > { %v1154_v33 = vpop.eup %1153 }
 0x174   : > { %v477_v34 = vmul.f32 %v1154_v33, %v463_v20 }
 0x176   : > { %v486_v37 = vmul.f32 %v997_v35, %v477_v34 }
 0x177   : > { %v1156_v36 = vpop.eup %1155 }
 0x178   : > { %v478_v38 = vmul.f32 %v1156_v36, %v464_v24  ;;  %v495_v41 = vadd.f32 %v998_v39, %v486_v37 }
 0x17a   : > { %v487_v40 = vmul.f32 %v997_v35, %v478_v38 }
 0x17c   : > { %v496_v42 = vadd.f32 %v998_v39, %v487_v40 }
 0x17e   : > { %v497_v43 = vpack.c.bf16 %v496_v42, %v495_v41 }
 0x180   : > { %498 = vst [vmem:[#allocation2] sm:$0xff] %v497_v43 }
 0x181 PF: > { %v1157_v44 = vld [vmem:[%s1495_s26 + $0x4] ss:$8 sps:$4 sm:$0xff]   ;;  %v1159_v45 = vld [vmem:[%s1495_s26] ss:$8 sps:$4 sm:$0xff]   ;;  %v1310_v46 = vmov 0   ;;  %v1183_v57 = vld [vmem:[%s1493_s22 + $0x48] sm:$0xff]   ;;  %v520_v14 = vlaneseq }
 0x182   : > { %642 = vmatprep.mubr.bf16.mxu0 %v1310_v46  ;;  %610 = vmatprep.subr.bf16.mxu0 %v1157_v44  ;;  %v1160_v47 = vld [vmem:[%s1495_s26 + $0x14] ss:$8 sps:$4 sm:$0xff]   ;;  %v1162_v48 = vld [vmem:[%s1495_s26 + $0x10] ss:$8 sps:$4 sm:$0xff]   ;;  %v1163_v49 = vld [vmem:[%s1495_s26 + $0x24] ss:$8 sps:$4 sm:$0xff]  }
 0x183   : > { %611 = vmatpush1.bf16.msra.mxu0 %v1159_v45  ;;  %v1165_v50 = vld [vmem:[%s1495_s26 + $0x20] ss:$8 sps:$4 sm:$0xff]   ;;  %v1166_v51 = vld [vmem:[%s1495_s26 + $0x34] ss:$8 sps:$4 sm:$0xff]   ;;  %v1168_v52 = vld [vmem:[%s1495_s26 + $0x30] ss:$8 sps:$4 sm:$0xff]  }
 0x184   : > { %612 = vmatprep.subr.bf16.mxu0 %v1160_v47  ;;  %v1169_v53 = vld [vmem:[%s1495_s26 + $0x44] ss:$8 sps:$4 sm:$0xff]   ;;  %v1171_v56 = vld [vmem:[%s1495_s26 + $0x40] ss:$8 sps:$4 sm:$0xff]   ;;  %v1184_v58 = vld [vmem:[%s1493_s22 + $0x8] sm:$0xff]   ;;  %v521_v15 = vshrl.u32 %v520_v14, 7 }
 0x185   : > { %v1181_v54 = vld [vmem:[%s1493_s22 + $0x40] sm:$0xff]   ;;  %v1185_v59 = vld [vmem:[%s1493_s22 + $0x50] sm:$0xff]   ;;  %v1187_v63 = vld [vmem:[%s1493_s22 + $0x58] sm:$0xff]   ;;  %p1031_p7 = scmp.ne.s32.totalorder %s1291_s29, 1 }
 0x186   : > { %v1182_v55 = vld [vmem:[%s1493_s22] sm:$0xff]   ;;  %1040 = vmatprep.subr.bf16.mxu1 %v1181_v54  ;;  %v1172_v60 = vld [vmem:[%s1495_s26 + $0x54] ss:$8 sps:$4 sm:$0xff]   ;;  %v1174_v61 = vld [vmem:[%s1495_s26 + $0x50] ss:$8 sps:$4 sm:$0xff]   ;;  %v522_v16 = vsub.s32 0, %v521_v15 }
 0x187   : > { %613 = vmatpush1.bf16.msra.mxu0 %v1162_v48  ;;  %1041 = vmatpush3.bf16.msra.mxu1 %v1182_v55  ;;  %v1186_v62 = vld [vmem:[%s1493_s22 + $0x10] sm:$0xff]   ;;  %v1175_v0 = vld [vmem:[%s1495_s26 + $0x64] ss:$8 sps:$4 sm:$0xff]   ;;  %v1177_v1 = vld [vmem:[%s1495_s26 + $0x60] ss:$8 sps:$4 sm:$0xff]   ;;  %v526_v18 = vsub.s32 1, %v521_v15 }
 0x188   : > { %614 = vmatprep.subr.bf16.mxu0 %v1163_v49  ;;  %1042 = vmatprep.subr.bf16.mxu1 %v1183_v57  ;;  %v1188_v2 = vld [vmem:[%s1493_s22 + $0x18] sm:$0xff]   ;;  %v1178_v3 = vld [vmem:[%s1495_s26 + $0x74] ss:$8 sps:$4 sm:$0xff]   ;;  %v1189_v4 = vld [vmem:[%s1493_s22 + $0x60] sm:$0xff]  }
 0x189   : > { %v1190_v5 = vld [vmem:[%s1493_s22 + $0x20] sm:$0xff]   ;;  %v1180_v6 = vld [vmem:[%s1495_s26 + $0x70] ss:$8 sps:$4 sm:$0xff]   ;;  %v1195_v12 = vld [vmem:[%s1493_s22 + $0x78] sm:$0xff]  }
 0x18a   : > { %v1191_v7 = vld [vmem:[%s1493_s22 + $0x68] sm:$0xff]   ;;  %v501_v8 = vld [vmem:[#allocation2] sm:$0xff]  ;;  %v1193_v10 = vld [vmem:[%s1493_s22 + $0x70] sm:$0xff]  }
 0x18b   : > { %615 = vmatpush1.bf16.msra.mxu0 %v1165_v50  ;;  %1043 = vmatpush3.bf16.msra.mxu1 %v1184_v58  ;;  %v1192_v9 = vld [vmem:[%s1493_s22 + $0x28] sm:$0xff]   ;;  %v1194_v11 = vld [vmem:[%s1493_s22 + $0x30] sm:$0xff]   ;;  %v1196_v13 = vld [vmem:[%s1493_s22 + $0x38] sm:$0xff]  }
 0x18c   : > { %616 = vmatprep.subr.bf16.mxu0 %v1166_v51  ;;  %1044 = vmatprep.subr.bf16.mxu1 %v1185_v59  ;;  %v518_v17 = vld [vmem:[%s440_s18] sm:$0x3]  ;;  %v657_v36 = vld [vmem:[#allocation3] sm:$0xff]  ;;  %v658_v40 = vld [vmem:[#allocation3 + $0x8] sm:$0xff] }
 0x18d   : > { %v523_v19 = vrot.slane %v518_v17, %v522_v16  ;;  %v527_v20 = vrot.slane %v518_v17, %v526_v18  ;;  %v838_v45 = vld [vmem:[%s1484_s9] sm:$0xff] (!%p1031_p7)  ;;  %v839_v49 = vld [vmem:[%s1484_s9 + $0x8] sm:$0xff] (!%p1031_p7) }
 0x18e   : > { %v1032_v47 = vld [vmem:[%s1628_s6] ss:$0 sm:$0xff] (!%p1031_p7) }
 0x18f   : > { %617 = vmatpush1.bf16.msra.mxu0 %v1168_v52  ;;  %1045 = vmatpush3.bf16.msra.mxu1 %v1186_v62 }
 0x190   : > { %618 = vmatprep.subr.bf16.mxu0 %v1169_v53  ;;  %1046 = vmatprep.subr.bf16.mxu1 %v1187_v63 }
 0x193   : > { %619 = vmatpush1.bf16.msra.mxu0 %v1171_v56  ;;  %1047 = vmatpush3.bf16.msra.mxu1 %v1188_v2 }
 0x194   : > { %620 = vmatprep.subr.bf16.mxu0 %v1172_v60  ;;  %1048 = vmatprep.subr.bf16.mxu1 %v1189_v4 }
 0x197   : > { %621 = vmatpush1.bf16.msra.mxu0 %v1174_v61  ;;  %1049 = vmatpush3.bf16.msra.mxu1 %v1190_v5 }
 0x198   : > { %622 = vmatprep.subr.bf16.mxu0 %v1175_v0  ;;  %1050 = vmatprep.subr.bf16.mxu1 %v1191_v7 }
 0x19b   : > { %623 = vmatpush1.bf16.msra.mxu0 %v1177_v1  ;;  %1051 = vmatpush3.bf16.msra.mxu1 %v1192_v9 }
 0x19c   : > { %624 = vmatprep.subr.bf16.mxu0 %v1178_v3  ;;  %1052 = vmatprep.subr.bf16.mxu1 %v1193_v10 }
 0x19f   : > { %625 = vmatpush1.bf16.msra.mxu0 %v1180_v6  ;;  %1053 = vmatpush3.bf16.msra.mxu1 %v1194_v11 }
 0x1a0   : > { %1054 = vmatprep.subr.bf16.mxu1 %v1195_v12 }
 0x1a2   : > { %643 = vmatmul.mubr.bf16.vlgmr.msra.gmra.mrb[0].mxu0 %v501_v8 }
 0x1a3   : > { %1055 = vmatpush3.bf16.msra.mxu1 %v1196_v13 }
 0x275   : > { %v644_v21 = vpop.f32.mrb[0].mxu0 }
 0x276   : > { %v645_v22 = vadd.f32 %v644_v21, %v523_v19  ;;  %v646_v23 = vpop.f32.mrb[1].mxu0 }
 0x277   : > { %v647_v24 = vadd.f32 %v646_v23, %v527_v20  ;;  %v648_v25 = vpop.f32.mrb[2].mxu0 }
 0x278   : > { %v649_v26 = vadd.f32 %v648_v25, %v523_v19  ;;  %v650_v27 = vpop.f32.mrb[3].mxu0  ;;  %v653_v29 = vmax.f32 %v645_v22, 0.0 }
 0x279   : > { %v651_v28 = vadd.f32 %v650_v27, %v527_v20  ;;  %v654_v31 = vmax.f32 %v647_v24, 0.0 }
 0x27a   : > { %v655_v30 = vmax.f32 %v649_v26, 0.0 }
 0x27b   : > { %v656_v32 = vmax.f32 %v651_v28, 0.0 }
 0x27c   : > { %v659_v33 = vpack.c.bf16 %v655_v30, %v653_v29 }
 0x27d   : > { %v660_v34 = vpack.c.bf16 %v656_v32, %v654_v31 }
 0x27f   : > { %821 = vmatprep.mubr.bf16.mxu1 %v660_v34 }
 0x280   : > { %822 = vmatmul.mubr.bf16.vlgmr.msra.gmra.mrb[0].mxu1 %v659_v33 }
 0x353   : > { %v1056_v35 = vpop.f32.mrb[0].mxu1 }
 0x354   : > { %v1057_v37 = vpop.f32.mrb[1].mxu1 }
 0x355   : > { %v1058_v38 = vadd.f32 %v1057_v37, %v1056_v35  ;;  %v1059_v39 = vpop.f32.mrb[2].mxu1  ;;  %837 = sbr.rel (%p1031_p7) target bundleno = 872 (0x368), region = 94 }
 0x356   : > { %v1060_v41 = vpop.f32.mrb[3].mxu1 }
 0x357   : > { %v830_v42 = vadd.f32 %v1058_v38, %v657_v36  ;;  %v1061_v43 = vadd.f32 %v1060_v41, %v1059_v39 }
 0x359   : > { %832 = vst [vmem:[#allocation3] sm:$0xff] %v830_v42  ;;  %v831_v44 = vadd.f32 %v1061_v43, %v658_v40 }
 0x35b   : > { %833 = vst [vmem:[#allocation3 + $0x8] sm:$0xff] %v831_v44 }
 0x360   : > { %v840_v46 = vld [vmem:[#allocation3] sm:$0xff] }
 0x361   : > { %v842_v48 = vadd.f32 %v840_v46, %v838_v45 }
 0x362   : > { %v841_v50 = vld [vmem:[#allocation3 + $0x8] sm:$0xff] }
 0x363   : > { %v843_v51 = vadd.f32 %v841_v50, %v839_v49  ;;  %v851_v52 = vadd.f32 %v1032_v47, %v842_v48 }
 0x365   : > { %v852_v53 = vadd.f32 %v1032_v47, %v843_v51  ;;  %853 = vst [vmem:[%s1497_s16] sm:$0xff] %v851_v52 }
 0x367   : > { %854 = vst [vmem:[%s1497_s16 + $0x8] sm:$0xff] %v852_v53 }
 0x368 PF: > { %s1039_s29 = sshll.u32 %s1295_s30, 8  ;;  %s869_s12 = sshll.u32 %s1497_s16, 4  ;;  %s1560_s12 = int_to_ptr.vmem [resolvable:$true] %s869_s12 }
 0x369   : > { %s1557_s20 = scalar_lea.hbm %s1629_s7, %s1039_s29  ;;  %s1650_s9 = sand.u32 1, %s1275_s25  }
 0x36a   : > { %s1564_s17 = scalar_lea.sflag [#allocation6], %s1650_s9  ;;  %s1197_s27 = scalar_lea.vmem %s1560_s12, 256 }
 0x36b   : > { %p1198_p8 = scmp.ne.s32.totalorder %s1560_s12, %s1197_s27  ;;  %s1311_s30 = smov [#allocation5]  }
 0x36c   : > { %s1201_s14 = sshll.u32 %s1311_s30, 4  ;;  %s1202_s14 = int_to_ptr.vmem [resolvable:$false] %s1201_s14 }
 0x36d   : > { %p1199_p9 = pnand %p1198_p8, %p1433_p10  ;;  %s1203_s3 = scalar_lea.vmem %s1202_s14, 512 }
 0x36e   : > { %p1204_p13 = scmp.lt.s32.totalorder %s1560_s12, %s1202_s14  ;;  %p1205_p0 = scmp.lt.s32.totalorder %s1203_s3, %s1197_s27 }
 0x36f   : > { %p1200_p11 = pneg %p1199_p9 }
 0x370   : > { %p1206_p1 = por %p1205_p0, %p1204_p13 }
 0x372   : > { %p1207_p2 = pnand %p1206_p1, %p1200_p11 }
 0x374   : > { %1210 = shalt.err (!%p1207_p2)
}
 0x375   : > { %s1211_s16 = scalar_lea.hbm %s1557_s20, 256  ;;  %s1215_s13 = scalar_lea.hbm %s1629_s7, 512 }
 0x376   : > { %p1212_p3 = scmp.ne.s32.totalorder %s1557_s20, %s1211_s16  ;;  %p1216_p6 = scmp.lt.u32.totalorder %s1557_s20, %s1629_s7 }
 0x377   : > { %p1217_p7 = scmp.lt.u32.totalorder %s1215_s13, %s1211_s16  ;;  %p1219_p9 = scmp.lt.u32.totalorder %s1211_s16, %s1557_s20 }
 0x378   : > { %p1213_p4 = pnand %p1212_p3, %p1433_p10 }
 0x379   : > { %p1218_p8 = por %p1217_p7, %p1216_p6 }
 0x37a   : > { %p1214_p5 = pneg %p1213_p4 }
 0x37b   : > { %p1220_p11 = por %p1219_p9, %p1218_p8 }
 0x37d   : > { %p1221_p13 = pnand %p1220_p11, %p1214_p5 }
 0x37f   : > { %1224 = shalt.err (!%p1221_p13)
}
 0x380   : > { %s1312_s22 = smov 128   ;;  %s1313_s18 = smov 8  }
 0x381   : > { %1062 = dma.vmem_to_hbm [thread:$0]  (%p1433_p10), %s1560_s12, 256, %s1557_s20, %s1564_s17, %s1312_s22, %s1312_s22, %s1313_s18  }
 0x382 PF: > { %p1068_p0 = scmp.ge.s32.totalorder %s1307_s10, 2  ;;  %s884_s29 = sand.u32 1, %s1271_s24  }
 0x383   : > { %s885_s11 = scalar_lea.sflag [#allocation6], %s884_s29 }
 0x384   : > { %p1065_p1 = pnand %p1068_p0, %p1440_p12 }
 0x386   : > { %1266 = dma.done.wait (!%p1065_p1), %s885_s11, 256  }
 0x387   : > { %1268 = vsyncadd (!%p1065_p1), %s885_s11, 4294967040  ;;  %s20_s10 = sadd.s32 1, %s1307_s10   ;;  %s1651_s15 = sld [smem:[#allocation8_spill]] }
 0x388   : > { %p17_p2 = scmp.ge.s32.totalorder %s20_s10, 6   ;;  %s1652_s26 = sld [smem:[#allocation15_spill]] }
 0x389   : > { %s1653_s27 = sld [smem:[#allocation9_spill]]  ;;  %s1654_s28 = sld [smem:[#allocation14_spill]] }
 0x38a   : > { %s1655_s29 = sld [smem:[#allocation10_spill]]  ;;  %s1656_s30 = sld [smem:[#allocation11_spill]] }
 0x38b   : > { %s1657_s8 = sld [smem:[#allocation12_spill]]  ;;  %s1658_s9 = sld [smem:[#allocation13_spill]] }
 0x38c   : > { %s1659_s24 = smov %s1275_s25  ;;  %19 = sbr.rel (!%p17_p2) target bundleno = 8 (0x8), region = 143 }
 0x38d   : > { %s1660_s25 = smov %s1651_s15 }
 0x393   :  { %890 = vsyncpa [#allocation6], 1 }
 0x394   :  { %892 = vsyncpa [#allocation6 + $0x1], 1 }

// kernel: decoder_layer_forward.10
= control target key start
LH: loop header
LB: loop body
LE: loop exit
PB: predicated region body
PF: predicated region fallthrough
CT: control target
= control target key end

     0   :  { %s2551_s24 = smov 0   ;;  %s2553_s25 = smov 0   ;;  %s3249_s0 = inlined_call_operand.vmem [shape: bf16[2,16,4,32], index: 0, kind: input, shape index: {}]   ;;  %s3250_s1 = inlined_call_operand.vmem [shape: bf16[2,16,2,4,32], index: 1, kind: input, shape index: {}, may-alias: {1,2}]   ;;  %s3251_s2 = inlined_call_operand.vmem [shape: bf16[2,16,2,4,32], index: 2, kind: input, shape index: {}, may-alias: {1,2}]   ;;  %s3252_s3 = inlined_call_operand.vmem [shape: f32[2,16,16], index: 3, kind: input, shape index: {}]   ;;  %s3253_s4 = inlined_call_operand.vmem [shape: bf16[128,128], index: 4, kind: input, shape index: {}]   ;;  %s3254_s5 = inlined_call_operand.vmem [shape: f32[1,128], index: 5, kind: input, shape index: {}]   ;;  %s3255_s6 = inlined_call_operand.vmem [shape: f32[2,16,128], index: 6, kind: input, shape index: {}]   ;;  %s3256_s7 = inlined_call_operand.vmem [shape: f32[2,16,128], index: 7, kind: output, shape index: {}]  }
   0x1   :  { %s2555_s26 = smov 0   ;;  %s2557_s27 = smov 0  }
   0x2   :  { %s2559_s28 = smov 0   ;;  %s2561_s29 = smov 0  }
   0x3   :  { %s2563_s30 = smov 0  }
   0x4 LB: > { %s26_s8 = sadd.s32 1, %s2499_s28  ;;  %s29_s9 = sadd.s32 1, %s2503_s29  ;;  %s2507_s30 = sphi %s2563_s30, %s17_s30   ;;  %s2503_s29 = sphi %s2561_s29, %s3272_s29   ;;  %s2499_s28 = sphi %s2559_s28, %s3271_s28   ;;  %s2495_s27 = sphi %s2557_s27, %s3270_s27   ;;  %s2491_s26 = sphi %s2555_s26, %s3269_s26   ;;  %s2487_s25 = sphi %s2553_s25, %s3268_s25   ;;  %s2483_s24 = sphi %s2551_s24, %s3267_s24  }
   0x5   : > { %p27_p0 = scmp.ge.s32.totalorder %s26_s8, 2  ;;  %p71_p1 = scmp.ne.s32.totalorder %s2487_s25, %s2483_s24 }
   0x6   : > { %p72_p2 = scmp.eq.s32.totalorder %s2507_s30, 0  ;;  %s64_s12 = sadd.s32 1, %s2487_s25 }
   0x7   : > { %s3274_s8 = smov (%p27_p0, %s26_s8), 0  ;;  %s3276_s9 = smov (!%p27_p0, %s29_s9), %s2503_s29 }
   0x8   : > { %p2594_p3 = por %p72_p2, %p71_p1  ;;  %p31_p4 = scmp.ge.s32.totalorder %s3276_s9, 2 }
   0x9   : > { %p2150_p6 = scmp.ge.s32.totalorder %s2507_s30, 4 }
   0xa   : > { %s3278_s9 = smov (%p31_p4, %s3276_s9), 0 }
   0xb   : > { %s61_s11 = ssub.s32 %s2503_s29, %s3278_s9  ;;  %255 = sbr.rel (%p2150_p6) target bundleno = 46 (0x2e), region = 24 }
   0xc   : > { %p62_p5 = scmp.eq.s32.totalorder %s61_s11, 0 }
   0xe   : > { %s2604_s13 = scalar_select %p62_p5, %s2487_s25, %s64_s12  }
  0x12   : > { %271 = sbr.rel (!%p2594_p3) target bundleno = 32 (0x20), region = 32  ;;  %s273_s14 = sand.u32 (%p2594_p3), 1, %s2487_s25  }
  0x13   : > { %s2248_s15 = sshll.u32 (%p2594_p3), %s2503_s29, 6  ;;  %s2151_s16 = sshll.u32 (%p2594_p3), %s273_s14, 5 }
  0x14   : > { %s2614_s19 = scalar_lea.vmem (%p2594_p3), %s3250_s1, %s2248_s15  ;;  %s275_s20 = scalar_lea.vmem (%p2594_p3), [#allocation2], %s2151_s16 }
  0x15   : > { %v294_v0 = vld [vmem:[%s2614_s19] sm:$0x3] (%p2594_p3)  ;;  %v296_v1 = vld [vmem:[%s2614_s19 + $0x4] sm:$0x3] (%p2594_p3)  ;;  %v298_v2 = vld [vmem:[%s2614_s19 + $0x8] sm:$0x3] (%p2594_p3) }
  0x16   : > { %295 = vst [vmem:[%s275_s20] sm:$0x3] (%p2594_p3), %v294_v0  ;;  %297 = vst [vmem:[%s275_s20 + $0x2] sm:$0x3] (%p2594_p3), %v296_v1  ;;  %v300_v3 = vld [vmem:[%s2614_s19 + $0xc] sm:$0x3] (%p2594_p3) }
  0x17   : > { %v302_v4 = vld [vmem:[%s2614_s19 + $0x10] sm:$0x3] (%p2594_p3)  ;;  %299 = vst [vmem:[%s275_s20 + $0x4] sm:$0x3] (%p2594_p3), %v298_v2  ;;  %301 = vst [vmem:[%s275_s20 + $0x6] sm:$0x3] (%p2594_p3), %v300_v3 }
  0x18   : > { %303 = vst [vmem:[%s275_s20 + $0x8] sm:$0x3] (%p2594_p3), %v302_v4  ;;  %v304_v5 = vld [vmem:[%s2614_s19 + $0x14] sm:$0x3] (%p2594_p3)  ;;  %v306_v6 = vld [vmem:[%s2614_s19 + $0x18] sm:$0x3] (%p2594_p3) }
  0x19   : > { %v308_v7 = vld [vmem:[%s2614_s19 + $0x1c] sm:$0x3]  ;;  %305 = vst [vmem:[%s275_s20 + $0xa] sm:$0x3] %v304_v5  ;;  %307 = vst [vmem:[%s275_s20 + $0xc] sm:$0x3] %v306_v6 }
  0x1a   : > { %309 = vst [vmem:[%s275_s20 + $0xe] sm:$0x3] %v308_v7  ;;  %v310_v8 = vld [vmem:[%s2614_s19 + $0x20] sm:$0x3]  ;;  %v312_v9 = vld [vmem:[%s2614_s19 + $0x24] sm:$0x3] }
  0x1b   : > { %v314_v10 = vld [vmem:[%s2614_s19 + $0x28] sm:$0x3]  ;;  %311 = vst [vmem:[%s275_s20 + $0x10] sm:$0x3] %v310_v8  ;;  %313 = vst [vmem:[%s275_s20 + $0x12] sm:$0x3] %v312_v9 }
  0x1c   : > { %315 = vst [vmem:[%s275_s20 + $0x14] sm:$0x3] %v314_v10  ;;  %v316_v11 = vld [vmem:[%s2614_s19 + $0x2c] sm:$0x3]  ;;  %v318_v12 = vld [vmem:[%s2614_s19 + $0x30] sm:$0x3] }
  0x1d   : > { %v320_v13 = vld [vmem:[%s2614_s19 + $0x34] sm:$0x3]  ;;  %317 = vst [vmem:[%s275_s20 + $0x16] sm:$0x3] %v316_v11  ;;  %319 = vst [vmem:[%s275_s20 + $0x18] sm:$0x3] %v318_v12 }
  0x1e   : > { %321 = vst [vmem:[%s275_s20 + $0x1a] sm:$0x3] %v320_v13  ;;  %v322_v14 = vld [vmem:[%s2614_s19 + $0x38] sm:$0x3]  ;;  %v324_v15 = vld [vmem:[%s2614_s19 + $0x3c] sm:$0x3] }
  0x1f   : > { %323 = vst [vmem:[%s275_s20 + $0x1c] sm:$0x3] %v322_v14  ;;  %325 = vst [vmem:[%s275_s20 + $0x1e] sm:$0x3] %v324_v15 }
  0x20 PF: > { %380 = sbr.rel (!%p2594_p3) target bundleno = 46 (0x2e), region = 73  ;;  %s382_s21 = sand.u32 (%p2594_p3), 1, %s2487_s25  }
  0x21   : > { %s2249_s22 = sshll.u32 (%p2594_p3), %s2503_s29, 6  ;;  %s2154_s23 = sshll.u32 (%p2594_p3), %s382_s21, 5 }
  0x22   : > { %s2639_s14 = scalar_lea.vmem (%p2594_p3), %s3251_s2, %s2249_s22  ;;  %s384_s10 = scalar_lea.vmem (%p2594_p3), [#allocation3], %s2154_s23 }
  0x23   : > { %v2157_v16 = vld [vmem:[%s2639_s14 + $0x2] sm:$0x3] (%p2594_p3)  ;;  %v2158_v17 = vld [vmem:[%s2639_s14 + $0x6] sm:$0x3] (%p2594_p3)  ;;  %v2159_v18 = vld [vmem:[%s2639_s14 + $0xa] sm:$0x3] (%p2594_p3) }
  0x24   : > { %405 = vst [vmem:[%s384_s10] sm:$0x3] (%p2594_p3), %v2157_v16  ;;  %407 = vst [vmem:[%s384_s10 + $0x2] sm:$0x3] (%p2594_p3), %v2158_v17  ;;  %v2160_v19 = vld [vmem:[%s2639_s14 + $0xe] sm:$0x3] (%p2594_p3) }
  0x25   : > { %v2161_v20 = vld [vmem:[%s2639_s14 + $0x12] sm:$0x3] (%p2594_p3)  ;;  %409 = vst [vmem:[%s384_s10 + $0x4] sm:$0x3] (%p2594_p3), %v2159_v18  ;;  %411 = vst [vmem:[%s384_s10 + $0x6] sm:$0x3] (%p2594_p3), %v2160_v19 }
  0x26   : > { %413 = vst [vmem:[%s384_s10 + $0x8] sm:$0x3] (%p2594_p3), %v2161_v20  ;;  %v2162_v21 = vld [vmem:[%s2639_s14 + $0x16] sm:$0x3] (%p2594_p3)  ;;  %v2163_v22 = vld [vmem:[%s2639_s14 + $0x1a] sm:$0x3] (%p2594_p3) }
  0x27   : > { %v2164_v23 = vld [vmem:[%s2639_s14 + $0x1e] sm:$0x3]  ;;  %415 = vst [vmem:[%s384_s10 + $0xa] sm:$0x3] %v2162_v21  ;;  %417 = vst [vmem:[%s384_s10 + $0xc] sm:$0x3] %v2163_v22 }
  0x28   : > { %419 = vst [vmem:[%s384_s10 + $0xe] sm:$0x3] %v2164_v23  ;;  %v2165_v24 = vld [vmem:[%s2639_s14 + $0x22] sm:$0x3]  ;;  %v2166_v25 = vld [vmem:[%s2639_s14 + $0x26] sm:$0x3] }
  0x29   : > { %v2167_v26 = vld [vmem:[%s2639_s14 + $0x2a] sm:$0x3]  ;;  %421 = vst [vmem:[%s384_s10 + $0x10] sm:$0x3] %v2165_v24  ;;  %423 = vst [vmem:[%s384_s10 + $0x12] sm:$0x3] %v2166_v25 }
  0x2a   : > { %425 = vst [vmem:[%s384_s10 + $0x14] sm:$0x3] %v2167_v26  ;;  %v2168_v27 = vld [vmem:[%s2639_s14 + $0x2e] sm:$0x3]  ;;  %v2169_v28 = vld [vmem:[%s2639_s14 + $0x32] sm:$0x3] }
  0x2b   : > { %v2170_v29 = vld [vmem:[%s2639_s14 + $0x36] sm:$0x3]  ;;  %427 = vst [vmem:[%s384_s10 + $0x16] sm:$0x3] %v2168_v27  ;;  %429 = vst [vmem:[%s384_s10 + $0x18] sm:$0x3] %v2169_v28 }
  0x2c   : > { %431 = vst [vmem:[%s384_s10 + $0x1a] sm:$0x3] %v2170_v29  ;;  %v2171_v30 = vld [vmem:[%s2639_s14 + $0x3a] sm:$0x3]  ;;  %v2172_v31 = vld [vmem:[%s2639_s14 + $0x3e] sm:$0x3] }
  0x2d   : > { %433 = vst [vmem:[%s384_s10 + $0x1c] sm:$0x3] %v2171_v30  ;;  %435 = vst [vmem:[%s384_s10 + $0x1e] sm:$0x3] %v2172_v31 }
  0x2e PF: > { %p2173_p7 = scmp.ge.s32.totalorder %s2507_s30, 1  ;;  %p511_p8 = scmp.lt.s32.totalorder %s2507_s30, 5 }
  0x30   : > { %p512_p9 = pnand %p2173_p7, %p511_p8 }
  0x32   : > { %515 = sbr.rel (%p512_p9) target bundleno = 2134 (0x856), region = 122 }
  0x39   : > { %s518_s15 = sand.u32 1, %s2483_s24   ;;  %s2176_s16 = sshll.u32 %s2491_s26, 3  ;;  %v3257_v32 = vmov 0.0   ;;  %vm2510_vm0 = vmmov 0   ;;  %vm746_vm1 = vcmask 1041409   ;;  %vm749_vm2 = vcmask 1042434  }
  0x3a   : > { %2278 = vmatprep.subr.bf16.mxu0 %v3257_v32  ;;  %s2662_s17 = sshll.u32 %s518_s15, 5  ;;  %p589_p10 = scmp.lt.s32.totalorder %s2495_s27, 1  ;;  %2290 = vmatprep.subr.bf16.mxu1 %v3257_v32  ;;  %vm752_vm3 = vcmask 1043459   ;;  %vm755_vm4 = vcmask 1044484   ;;  %vm758_vm5 = vcmask 1045509   ;;  %vm761_vm6 = vcmask 1046534  }
  0x3b   : > { %s2667_s18 = scalar_lea.vmem [#allocation2], %s2662_s17  ;;  %2280 = vmatprep.mubr.msk.bf16.mxu0 %vm2510_vm0, %v3257_v32  ;;  %2294 = vmatprep.mubr.msk.bf16.mxu1 %vm2510_vm0, %v3257_v32  ;;  %p591_p11 = scmp.lt.s32.totalorder %s2176_s16, 15  ;;  %vm764_vm7 = vcmask 1047559   ;;  %vm940_vm8 = vcmask 261120   ;;  %vm987_vm9 = vcmask 130048  }
  0x3c   : > { %v2194_v33 = vld.sshfl [vmem:[%s2667_s18] sm:$0x3 pattern:$0x76325410]  ;;  %s3280_s27 = smov (!%p589_p10, %s2495_s27), 1  ;;  %p600_p12 = scmp.lt.s32.totalorder %s2491_s26, 1 }
  0x3d   : > { %v2195_v34 = vld.sshfl [vmem:[%s2667_s18 + $0x2] sm:$0x3 pattern:$0x76325410]  ;;  %v2679_v36 = vunpack.c.l.b16 %v2194_v33  ;;  %s3282_s16 = smov (!%p591_p11, %s2176_s16), 15  ;;  %s2177_s24 = sshll.u32 %s3280_s27, 4 }
  0x3e   : > { %v2196_v35 = vld.sshfl [vmem:[%s2667_s18 + $0x4] sm:$0x3 pattern:$0x76325410]  ;;  %v2681_v37 = vunpack.c.l.b16 %v2195_v34  ;;  %s2706_s19 = sadd.s32 %s2177_s24, %s3282_s16  ;;  %s3284_s26 = smov (!%p600_p12, %s2491_s26), 1 }
  0x3f   : > { %v2197_v38 = vld.sshfl [vmem:[%s2667_s18 + $0x6] sm:$0x3 pattern:$0x76325410]  ;;  %v2684_v39 = vunpack.c.l.b16 %v2196_v35  ;;  %s2178_s20 = sshll.u32 %s2706_s19, 1  ;;  %s2179_s11 = sshll.u32 %s3280_s27, 1 }
  0x40   : > { %v2198_v40 = vld.sshfl [vmem:[%s2667_s18 + $0x8] sm:$0x3 pattern:$0x76325410]  ;;  %v2687_v41 = vunpack.c.l.b16 %v2197_v38  ;;  %v911_v42 = vrot.slane %v2681_v37, 7  ;;  %s2745_s23 = scalar_lea.vmem %s3249_s0, %s2178_s20  ;;  %s603_s12 = sadd.s32 %s2179_s11, %s3284_s26 }
  0x41   : > { %v2199_v43 = vld.sshfl [vmem:[%s2667_s18 + $0xa] sm:$0x3 pattern:$0x76325410]  ;;  %v2692_v44 = vunpack.c.l.b16 %v2198_v40  ;;  %v913_v45 = vrot.slane %v2684_v39, 6  ;;  %s2810_s14 = sshll.u32 %s603_s12, 3 }
  0x42   : > { %3262 = vst [vmem:[#allocation4_spill] sm:$0xff] %v2687_v41  ;;  %v2200_v46 = vld.sshfl [vmem:[%s2667_s18 + $0xc] sm:$0x3 pattern:$0x76325410]  ;;  %v2696_v47 = vunpack.c.l.b16 %v2199_v43  ;;  %v912_v48 = vsel %vm746_vm1, %v911_v42, %v2679_v36  ;;  %v915_v49 = vrot.slane %v2687_v41, 5  ;;  %s605_s16 = scalar_lea.vmem %s3252_s3, %s2810_s14  ;;  %s613_s24 = scalar_lea.vmem %s3255_s6, %s2810_s14 }
  0x43   : > { %v2201_v50 = vld.sshfl [vmem:[%s2667_s18 + $0xe] sm:$0x3 pattern:$0x76325410]  ;;  %v2702_v51 = vunpack.c.l.b16 %v2200_v46  ;;  %v914_v52 = vsel %vm749_vm2, %v913_v45, %v912_v48  ;;  %v917_v53 = vrot.slane %v2692_v44, 4  ;;  %s2825_s26 = scalar_lea.vmem [#allocation3], %s2662_s17 }
  0x44   : > { %v2202_v54 = vld.sshfl [vmem:[%s2667_s18 + $0x10] sm:$0x3 pattern:$0x76325410]  ;;  %v916_v55 = vsel %vm752_vm3, %v915_v49, %v914_v52  ;;  %v919_v56 = vrot.slane %v2696_v47, 3  ;;  %v2712_v58 = vunpack.c.l.b16 %v2201_v50 }
  0x45   : > { %v2203_v57 = vld.sshfl [vmem:[%s2667_s18 + $0x12] sm:$0x3 pattern:$0x76325410]  ;;  %v918_v59 = vsel %vm755_vm4, %v917_v53, %v916_v55  ;;  %v2716_v61 = vunpack.c.l.b16 %v2202_v54  ;;  %v921_v63 = vrot.slane %v2702_v51, 2 }
  0x46   : > { %v2204_v60 = vld.sshfl [vmem:[%s2667_s18 + $0x14] sm:$0x3 pattern:$0x76325410]  ;;  %v2718_v62 = vunpack.c.l.b16 %v2203_v57  ;;  %v920_v2 = vsel %vm758_vm5, %v919_v56, %v918_v59  ;;  %v923_v8 = vrot.slane %v2712_v58, 1 }
  0x47   : > { %v2205_v0 = vld.sshfl [vmem:[%s2667_s18 + $0x16] sm:$0x3 pattern:$0x76325410]  ;;  %v2723_v1 = vunpack.c.l.b16 %v2204_v60  ;;  %v922_v12 = vsel %vm761_vm6, %v921_v63, %v920_v2 }
  0x48   : > { %v2206_v3 = vld.sshfl [vmem:[%s2667_s18 + $0x18] sm:$0x3 pattern:$0x76325410]  ;;  %v2727_v4 = vunpack.c.l.b16 %v2205_v0  ;;  %v925_v5 = vrot.slane %v2718_v62, 7  ;;  %v924_v23 = vsel %vm764_vm7, %v923_v8, %v922_v12 }
  0x49   : > { %v2207_v6 = vld.sshfl [vmem:[%s2667_s18 + $0x1a] sm:$0x3 pattern:$0x76325410]  ;;  %v2731_v7 = vunpack.c.l.b16 %v2206_v3  ;;  %v927_v9 = vrot.slane %v2723_v1, 6 }
  0x4a   : > { %3263 = vst [vmem:[#allocation5_spill] sm:$0xff] %v2727_v4  ;;  %v2208_v10 = vld.sshfl [vmem:[%s2667_s18 + $0x1c] sm:$0x3 pattern:$0x76325410]  ;;  %v2736_v11 = vunpack.c.l.b16 %v2207_v6  ;;  %v926_v13 = vsel %vm746_vm1, %v925_v5, %v2716_v61  ;;  %v929_v14 = vrot.slane %v2727_v4, 5 }
  0x4b   : > { %v2209_v15 = vld.sshfl [vmem:[%s2667_s18 + $0x1e] sm:$0x3 pattern:$0x76325410]  ;;  %v2748_v16 = vunpack.c.l.b16 %v2208_v10  ;;  %v928_v17 = vsel %vm749_vm2, %v927_v9, %v926_v13  ;;  %v931_v18 = vrot.slane %v2731_v7, 4  ;;  %v2816_v13 = vld [vmem:[%s605_s16] sm:$0xff] }
  0x4c   : > { %v2752_v19 = vunpack.c.l.b16 %v2209_v15  ;;  %v930_v20 = vsel %vm752_vm3, %v929_v14, %v928_v17  ;;  %v933_v21 = vrot.slane %v2736_v11, 3  ;;  %v2186_v22 = vld.sshfl [vmem:[%s2745_s23] sm:$0x3 pattern:$0x76325410] }
  0x4d   : > { %v932_v24 = vsel %vm755_vm4, %v931_v18, %v930_v20  ;;  %v935_v25 = vrot.slane %v2748_v16, 2  ;;  %v2187_v26 = vld.sshfl [vmem:[%s2745_s23 + $0x2] sm:$0x3 pattern:$0x76325410]  ;;  %v2764_v30 = vunpack.c.l.b16 %v2186_v22 }
  0x4e   : > { %v934_v27 = vsel %vm758_vm5, %v933_v21, %v932_v24  ;;  %v937_v28 = vrot.slane %v2752_v19, 1  ;;  %v2188_v29 = vld.sshfl [vmem:[%s2745_s23 + $0x4] sm:$0x3 pattern:$0x76325410]  ;;  %v2766_v31 = vunpack.c.l.b16 %v2187_v26 }
  0x4f   : > { %v936_v33 = vsel %vm761_vm6, %v935_v25, %v934_v27  ;;  %v2189_v34 = vld.sshfl [vmem:[%s2745_s23 + $0x6] sm:$0x3 pattern:$0x76325410]  ;;  %v2770_v35 = vunpack.c.l.b16 %v2188_v29 }
  0x50   : > { %v938_v38 = vsel %vm764_vm7, %v937_v28, %v936_v33  ;;  %v2190_v40 = vld.sshfl [vmem:[%s2745_s23 + $0x8] sm:$0x3 pattern:$0x76325410]  ;;  %v2774_v42 = vunpack.c.l.b16 %v2189_v34  ;;  %v745_v43 = vrot.slane %v2766_v31, 7 }
  0x51   : > { %v939_v45 = vpack.c.b16 %v938_v38, %v924_v23  ;;  %v2191_v46 = vld.sshfl [vmem:[%s2745_s23 + $0xa] sm:$0x3 pattern:$0x76325410]  ;;  %v2778_v48 = vunpack.c.l.b16 %v2190_v40  ;;  %v748_v49 = vrot.slane %v2770_v35, 6 }
  0x52   : > { %v2192_v50 = vld.sshfl [vmem:[%s2745_s23 + $0xc] sm:$0x3 pattern:$0x76325410]  ;;  %v2782_v52 = vunpack.c.l.b16 %v2191_v46  ;;  %v747_v53 = vsel %vm746_vm1, %v745_v43, %v2764_v30  ;;  %v751_v54 = vrot.slane %v2774_v42, 5 }
  0x53   : > { %v945_v55 = vsel %vm940_vm8, %v939_v45, 0  ;;  %v2193_v56 = vld.sshfl [vmem:[%s2745_s23 + $0xe] sm:$0x3 pattern:$0x76325410]  ;;  %v2789_v57 = vunpack.c.l.b16 %v2192_v50  ;;  %v750_v59 = vsel %vm749_vm2, %v748_v49, %v747_v53  ;;  %v754_v60 = vrot.slane %v2778_v48, 4  ;;  %s621_s23 = scalar_lea.vmem %s3256_s7, %s2810_s14 }
  0x54   : > { %2279 = vmatpush3.bf16.xpose.msra.mxu0 %v945_v55  ;;  %v2793_v63 = vunpack.c.l.b16 %v2193_v56  ;;  %v753_v0 = vsel %vm752_vm3, %v751_v54, %v750_v59  ;;  %v757_v2 = vrot.slane %v2782_v52, 3  ;;  %v2212_v27 = vld.sshfl [vmem:[%s2825_s26 + $0x2] sm:$0x3 pattern:$0x76325410] }
  0x55   : > { %v756_v3 = vsel %vm755_vm4, %v754_v60, %v753_v0  ;;  %v760_v5 = vrot.slane %v2789_v57, 2  ;;  %2284 = vmatprep.subr.bf16.mxu0 %v3257_v32  ;;  %v2213_v28 = vld.sshfl [vmem:[%s2825_s26 + $0x4] sm:$0x3 pattern:$0x76325410]  ;;  %v2829_v29 = vunpack.c.l.b16 %v2212_v27 }
  0x56   : > { %v759_v6 = vsel %vm758_vm5, %v757_v2, %v756_v3  ;;  %v763_v8 = vrot.slane %v2793_v63, 1  ;;  %v2211_v33 = vld.sshfl [vmem:[%s2825_s26] sm:$0x3 pattern:$0x76325410]  ;;  %v2832_v34 = vunpack.c.l.b16 %v2213_v28 }
  0x57   : > { %v762_v9 = vsel %vm761_vm6, %v760_v5, %v759_v6  ;;  %v2214_v38 = vld.sshfl [vmem:[%s2825_s26 + $0x6] sm:$0x3 pattern:$0x76325410]  ;;  %v2835_v40 = vunpack.c.l.b16 %v2211_v33  ;;  %v1144_v43 = vrot.slane %v2829_v29, 7 }
  0x58   : > { %v765_v10 = vsel %vm764_vm7, %v763_v8, %v762_v9  ;;  %v2215_v45 = vld.sshfl [vmem:[%s2825_s26 + $0x8] sm:$0x3 pattern:$0x76325410]  ;;  %v2839_v46 = vunpack.c.l.b16 %v2214_v38  ;;  %v1146_v49 = vrot.slane %v2832_v34, 6 }
  0x59   : > { %v766_v12 = vpack.c.b16 %v765_v10, %v765_v10  ;;  %v2216_v50 = vld.sshfl [vmem:[%s2825_s26 + $0xa] sm:$0x3 pattern:$0x76325410]  ;;  %v2843_v53 = vunpack.c.l.b16 %v2215_v45  ;;  %v1145_v54 = vsel %vm746_vm1, %v1144_v43, %v2835_v40 }
  0x5a   : > { %v2217_v55 = vld.sshfl [vmem:[%s2825_s26 + $0xc] sm:$0x3 pattern:$0x76325410]  ;;  %v2848_v56 = vunpack.c.l.b16 %v2216_v50  ;;  %v1147_v59 = vsel %vm749_vm2, %v1146_v49, %v1145_v54  ;;  %v1148_v60 = vrot.slane %v2839_v46, 5 }
  0x5b   : > { %2281 = vmatmul.mubr.msk.bf16.vlgmr.msra.gmra.mrb[0].mxu0 %vm940_vm8, %v766_v12  ;;  %v2218_v0 = vld.sshfl [vmem:[%s2825_s26 + $0xe] sm:$0x3 pattern:$0x76325410]  ;;  %v2853_v2 = vunpack.c.l.b16 %v2217_v55  ;;  %v1150_v3 = vrot.slane %v2843_v53, 4 }
  0x5c   : > { %2286 = vmatprep.mubr.msk.bf16.mxu0 %vm2510_vm0, %v3257_v32  ;;  %v2219_v5 = vld.sshfl [vmem:[%s2825_s26 + $0x10] sm:$0x3 pattern:$0x76325410]  ;;  %v1149_v6 = vsel %vm752_vm3, %v1148_v60, %v1147_v59  ;;  %v1152_v8 = vrot.slane %v2848_v56, 3 }
  0x5d   : > { %v2220_v9 = vld.sshfl [vmem:[%s2825_s26 + $0x12] sm:$0x3 pattern:$0x76325410]  ;;  %v1151_v10 = vsel %vm755_vm4, %v1150_v3, %v1149_v6 }
  0x5e   : > { %v2221_v12 = vld.sshfl [vmem:[%s2825_s26 + $0x14] sm:$0x3 pattern:$0x76325410] }
  0x5f   : > { %v2224_v27 = vld.sshfl [vmem:[%s2825_s26 + $0x1a] sm:$0x3 pattern:$0x76325410] }
  0x60   : > { %v2225_v38 = vld.sshfl [vmem:[%s2825_s26 + $0x1c] sm:$0x3 pattern:$0x76325410]  ;;  %v2882_v43 = vunpack.c.l.b16 %v2224_v27  ;;  %v1293_v27 = vrot.slane %v2679_v36, 1 }
  0x61   : > { %v2226_v54 = vld.sshfl [vmem:[%s2825_s26 + $0x1e] sm:$0x3 pattern:$0x76325410]  ;;  %v2889_v55 = vunpack.c.l.b16 %v2225_v38  ;;  %v1295_v38 = vrot.slane %v2684_v39, 7 }
  0x62   : > { %v2894_v3 = vunpack.c.l.b16 %v2226_v54  ;;  %v1166_v6 = vrot.slane %v2882_v43, 3  ;;  %v1297_v54 = vrot.slane %v2687_v41, 6 }
 0x12e   : > { %v981_v14 = vpop.f32.mrb[0].mxu0 }
 0x12f   : > { %v982_v15 = vadd.f32 %v981_v14, %v2816_v13  ;;  %v2282_v17 = vpop.f32.mrb[1].mxu0  ;;  %v2862_v14 = vunpack.c.l.b16 %v2218_v0 }
 0x130   : > { %v984_v18 = vpop.f32.mrb[2].mxu0  ;;  %v2866_v17 = vunpack.c.l.b16 %v2220_v9  ;;  %v1168_v9 = vrot.slane %v2889_v55, 2 }
 0x131   : > { %v2283_v20 = vpop.f32.mrb[3].mxu0  ;;  %v988_v21 = vsel %vm987_vm9, %v982_v15, -inf  ;;  %v2222_v18 = vld.sshfl [vmem:[%s2825_s26 + $0x16] sm:$0x3 pattern:$0x76325410] }
 0x132   : > { %989 = vmax.xlane.f32.xlu0 %v988_v21  ;;  %v2869_v20 = vunpack.c.l.b16 %v2221_v12  ;;  %v1154_v21 = vrot.slane %v2853_v2, 2  ;;  %v1156_v45 = vrot.slane %v2862_v14, 1 }
 0x134   : > { %v1160_v33 = vrot.slane %v2869_v20, 6 }
 0x1bf   : > { %v990_v22 = vpop.xlane.xlu0 %989 }
 0x1c0   : > { %v991_v23 = vsub.f32 %v982_v15, %v990_v22  ;;  %v2864_v15 = vunpack.c.l.b16 %v2219_v5  ;;  %v2223_v22 = vld.sshfl [vmem:[%s2825_s26 + $0x18] sm:$0x3 pattern:$0x76325410] }
 0x1c1   : > { %v2878_v28 = vunpack.c.l.b16 %v2223_v22 }
 0x1c2   : > { %v992_v24 = vmul.f32 1.442695, %v991_v23  ;;  %v2873_v23 = vunpack.c.l.b16 %v2222_v18  ;;  %v1170_v18 = vrot.slane %v2894_v3, 1 }
 0x1c3   : > { %v1164_v0 = vrot.slane %v2878_v28, 4 }
 0x1c4   : > { %2437 = vpow2.f32 %v992_v24  ;;  %v1153_v24 = vsel %vm758_vm5, %v1152_v8, %v1151_v10  ;;  %v1162_v50 = vrot.slane %v2873_v23, 5 }
 0x1c5   : > { %v1155_v59 = vsel %vm761_vm6, %v1154_v21, %v1153_v24 }
 0x1c6   : > { %v1157_v10 = vsel %vm764_vm7, %v1156_v45, %v1155_v59  ;;  %v1309_v45 = vrot.slane %v2723_v1, 7  ;;  %v1311_v59 = vrot.slane %v2727_v4, 6 }
 0x1ce   : > { %v2820_v25 = vpop.eup %2437 }
 0x1cf   : > { %v994_v26 = vsel %vm987_vm9, %v2820_v25, 0.0 }
 0x1d0   : > { %995 = vadd.xlane.f32.xlu0 %v994_v26  ;;  %v1158_v26 = vrot.slane %v2866_v17, 7 }
 0x1d2   : > { %v1159_v49 = vsel %vm746_vm1, %v1158_v26, %v2864_v15  ;;  %v2429_v26 = vld [vmem:[%s3253_s4] sm:$0xff]  }
 0x1d3   : > { %v1161_v60 = vsel %vm749_vm2, %v1160_v33, %v1159_v49  ;;  %2291 = vmatpush3.bf16.msra.mxu1 %v2429_v26  ;;  %v1307_v33 = vrot.slane %v2716_v61, 1  ;;  %v1294_v49 = vsel %vm746_vm1, %v2681_v37, %v1293_v27  ;;  %v1315_v26 = vrot.slane %v2736_v11, 4 }
 0x1d4   : > { %v1163_v5 = vsel %vm752_vm3, %v1162_v50, %v1161_v60  ;;  %2292 = vmatprep.subr.bf16.mxu1 %v3257_v32  ;;  %v1296_v60 = vsel %vm749_vm2, %v1295_v38, %v1294_v49  ;;  %v1280_v49 = vrot.slane %v2770_v35, 7 }
 0x1d5   : > { %v1165_v8 = vsel %vm755_vm4, %v1164_v0, %v1163_v5  ;;  %v1308_v50 = vsel %vm746_vm1, %v2718_v62, %v1307_v33  ;;  %v1529_v5 = vrot.slane %v2679_v36, 2 }
 0x1d6   : > { %v1167_v12 = vsel %vm758_vm5, %v1166_v6, %v1165_v8  ;;  %v1310_v0 = vsel %vm749_vm2, %v1309_v45, %v1308_v50  ;;  %v1530_v6 = vrot.slane %v2681_v37, 1  ;;  %v1543_v8 = vrot.slane %v2716_v61, 2 }
 0x1d7   : > { %v1169_v21 = vsel %vm761_vm6, %v1168_v9, %v1167_v12  ;;  %v1544_v9 = vrot.slane %v2718_v62, 1  ;;  %v1313_v12 = vrot.slane %v2731_v7, 5  ;;  %v1303_v50 = vrot.slane %v2702_v51, 3 }
 0x1d8   : > { %v1171_v22 = vsel %vm764_vm7, %v1170_v18, %v1169_v21  ;;  %v1298_v18 = vsel %vm752_vm3, %v1297_v54, %v1296_v60  ;;  %v1312_v21 = vsel %vm752_vm3, %v1311_v59, %v1310_v0  ;;  %v1531_v27 = vsel %vm746_vm1, %v1530_v6, %v1529_v5 }
 0x1d9   : > { %v1172_v24 = vpack.c.b16 %v1171_v22, %v1157_v10  ;;  %v1299_v10 = vrot.slane %v2692_v44, 5  ;;  %v1278_v22 = vrot.slane %v2764_v30, 1  ;;  %v1545_v33 = vsel %vm746_vm1, %v1544_v9, %v1543_v8 }
 0x1da   : > { %v1314_v45 = vsel %vm755_vm4, %v1313_v12, %v1312_v21  ;;  %v1533_v59 = vrot.slane %v2687_v41, 7  ;;  %v1547_v60 = vrot.slane %v2727_v4, 7  ;;  %v1305_v5 = vrot.slane %v2712_v58, 2 }
 0x1db   : > { %2285 = vmatpush3.bf16.msra.mxu0 %v1172_v24  ;;  %v1301_v24 = vrot.slane %v2696_v47, 4  ;;  %v1300_v38 = vsel %vm755_vm4, %v1299_v10, %v1298_v18  ;;  %v1279_v54 = vsel %vm746_vm1, %v2766_v31, %v1278_v22  ;;  %v1317_v6 = vrot.slane %v2748_v16, 3 }
 0x1dc   : > { %2298 = vmatprep.subr.bf16.mxu0 %v3257_v32  ;;  %v1532_v8 = vsel %vm749_vm2, %v2684_v39, %v1531_v27  ;;  %v1546_v9 = vsel %vm749_vm2, %v2723_v1, %v1545_v33  ;;  %v1316_v12 = vsel %vm758_vm5, %v1315_v26, %v1314_v45  ;;  %v1282_v18 = vrot.slane %v2774_v42, 6 }
 0x1dd   : > { %v1302_v10 = vsel %vm758_vm5, %v1301_v24, %v1300_v38  ;;  %v1319_v21 = vrot.slane %v2752_v19, 2  ;;  %v1281_v22 = vsel %vm749_vm2, %v1280_v49, %v1279_v54  ;;  %v1535_v32 = vrot.slane %v2692_v44, 6 }
 0x1de   : > { %v1549_v4 = vrot.slane %v2731_v7, 6  ;;  %v1534_v27 = vsel %vm752_vm3, %v1533_v59, %v1532_v8  ;;  %v1548_v41 = vsel %vm752_vm3, %v1547_v60, %v1546_v9  ;;  %v1514_v33 = vrot.slane %v2764_v30, 2 }
 0x1df   : > { %v1515_v24 = vrot.slane %v2766_v31, 1  ;;  %v1304_v26 = vsel %vm761_vm6, %v1303_v50, %v1302_v10  ;;  %v1318_v38 = vsel %vm761_vm6, %v1317_v6, %v1316_v12  ;;  %v1284_v45 = vrot.slane %v2778_v48, 5 }
 0x1e0   : > { %v1283_v49 = vsel %vm752_vm3, %v1282_v18, %v1281_v22  ;;  %v1537_v54 = vrot.slane %v2696_v47, 5  ;;  %v1536_v59 = vsel %vm755_vm4, %v1535_v32, %v1534_v27  ;;  %v1550_v60 = vsel %vm755_vm4, %v1549_v4, %v1548_v41 }
 0x1e1   : > { %v1306_v8 = vsel %vm764_vm7, %v1305_v5, %v1304_v26  ;;  %v1320_v9 = vsel %vm764_vm7, %v1319_v21, %v1318_v38  ;;  %v1286_v50 = vrot.slane %v2782_v52, 4  ;;  %v1516_v6 = vsel %vm746_vm1, %v1515_v24, %v1514_v33 }
 0x1e2   : > { %v1285_v10 = vsel %vm755_vm4, %v1284_v45, %v1283_v49  ;;  %v1539_v12 = vrot.slane %v2702_v51, 4  ;;  %v1553_v18 = vrot.slane %v2748_v16, 4  ;;  %v1538_v22 = vsel %vm758_vm5, %v1537_v54, %v1536_v59 }
 0x1e3   : > { %v1518_v41 = vrot.slane %v2774_v42, 7  ;;  %v1321_v4 = vpack.c.b16 %v1320_v9, %v1306_v8  ;;  %v1288_v5 = vrot.slane %v2789_v57, 3  ;;  %v1517_v21 = vsel %vm749_vm2, %v2770_v35, %v1516_v6 }
 0x1e4   : > { %v1287_v33 = vsel %vm758_vm5, %v1286_v50, %v1285_v10  ;;  %v1541_v24 = vrot.slane %v2712_v58, 3  ;;  %v1555_v26 = vrot.slane %v2752_v19, 3  ;;  %v1540_v45 = vsel %vm761_vm6, %v1539_v12, %v1538_v22 }
 0x1e5   : > { %v1520_v54 = vrot.slane %v2778_v48, 6  ;;  %v1519_v59 = vsel %vm752_vm3, %v1518_v41, %v1517_v21  ;;  %v1326_v8 = vsel %vm940_vm8, %v1321_v4, 0  ;;  %v1289_v9 = vsel %vm761_vm6, %v1288_v5, %v1287_v33 }
 0x1e6   : > { %v1542_v50 = vsel %vm764_vm7, %v1541_v24, %v1540_v45  ;;  %v3264_v12 = vmov 0.0   ;;  %v1526_v5 = vrot.slane %v2793_v63, 3 }
 0x1e7   : > { %v1521_v10 = vsel %vm755_vm4, %v1520_v54, %v1519_v59 }
 0x25d   : > { %v996_v0 = vpop.xlane.xlu0 %995 }
 0x25e   : > { %2439 = vrcp.f32 %v996_v0  ;;  %v1551_v0 = vrot.slane %v2736_v11, 5 }
 0x260   : > { %v1552_v32 = vsel %vm758_vm5, %v1551_v0, %v1550_v60  ;;  %v1290_v0 = vrot.slane %v2793_v63, 2 }
 0x261   : > { %v1554_v49 = vsel %vm761_vm6, %v1553_v18, %v1552_v32  ;;  %v1524_v32 = vrot.slane %v2789_v57, 4 }
 0x262   : > { %v1556_v6 = vsel %vm764_vm7, %v1555_v26, %v1554_v49  ;;  %v1291_v18 = vsel %vm764_vm7, %v1290_v0, %v1289_v9  ;;  %v2430_v26 = vld [vmem:[%s3253_s4 + $0x8] sm:$0xff]  }
 0x263   : > { %v1557_v22 = vpack.c.b16 %v1556_v6, %v1542_v50  ;;  %v1292_v4 = vpack.c.b16 %v1291_v18, %v1291_v18  ;;  %2293 = vmatpush3.bf16.msra.mxu1 %v2430_v26 }
 0x264   : > { %2304 = vmatprep.subr.bf16.mxu1 %v3264_v12 }
 0x265   : > { %v1562_v21 = vsel %vm940_vm8, %v1557_v22, 0 }
 0x268   : > { %v2440_v27 = vpop.eup %2439 }
 0x269   : > { %v998_v38 = vmul.f32 %v2440_v27, %v2820_v25  ;;  %v1522_v25 = vrot.slane %v2782_v52, 5 }
 0x26b   : > { %v999_v60 = vpack.c.bf16 %v998_v38, %v998_v38  ;;  %v1523_v41 = vsel %vm758_vm5, %v1522_v25, %v1521_v10 }
 0x26c   : > { %v1525_v27 = vsel %vm761_vm6, %v1524_v32, %v1523_v41 }
 0x26d   : > { %2287 = vmatmul.mubr.msk.bf16.vlgmr.msra.gmra.mrb[4].mxu0 %vm987_vm9, %v999_v60  ;;  %v1527_v33 = vsel %vm764_vm7, %v1526_v5, %v1525_v27 }
 0x26e   : > { %2299 = vmatpush3.bf16.xpose.msra.mxu0 %v1326_v8  ;;  %2300 = vmatprep.mubr.msk.bf16.mxu0 %vm2510_vm0, %v3264_v12  ;;  %v1528_v24 = vpack.c.b16 %v1527_v33, %v1527_v33 }
 0x26f   : > { %2318 = vmatprep.subr.bf16.mxu0 %v3264_v12 }
 0x275   : > { %2301 = vmatmul.mubr.msk.bf16.vlgmr.msra.gmra.mrb[8].mxu0 %vm940_vm8, %v1292_v4 }
 0x276   : > { %2319 = vmatpush3.bf16.xpose.msra.mxu0 %v1562_v21  ;;  %2320 = vmatprep.mubr.msk.bf16.mxu0 %vm2510_vm0, %v3264_v12 }
 0x277   : > { %2324 = vmatprep.subr.bf16.mxu0 %v3264_v12 }
 0x27d   : > { %2321 = vmatmul.mubr.msk.bf16.vlgmr.msra.gmra.mrb[12].mxu0 %vm940_vm8, %v1528_v24 }
 0x27e   : > { %2326 = vmatprep.mubr.msk.bf16.mxu0 %vm2510_vm0, %v3264_v12 }
 0x340   : > { %v1211_v38 = vpop.f32.mrb[4].mxu0 }
 0x341   : > { %v1221_v45 = vpack.c.bf16 %v1211_v38, %v1211_v38  ;;  %v2288_v49 = vpop.f32.mrb[5].mxu0 }
 0x342   : > { %v1214_v54 = vpop.f32.mrb[6].mxu0 }
 0x343   : > { %v2289_v0 = vpop.f32.mrb[7].mxu0  ;;  %2295 = vmatmul.mubr.msk.bf16.vlgmr.msra.gmra.mrb[0].mxu1 %vm940_vm8, %v1221_v45  ;;  %v1616_v54 = vrot.slane %v2835_v40, 2 }
 0x344   : > { %2306 = vmatprep.mubr.msk.bf16.mxu1 %vm2510_vm0, %v3264_v12  ;;  %v1617_v0 = vrot.slane %v2829_v29, 1 }
 0x348   : > { %v1362_v59 = vpop.f32.mrb[8].mxu0 }
 0x349   : > { %v1363_v60 = vadd.f32 %v1362_v59, %v2816_v13  ;;  %v2302_v8 = vpop.f32.mrb[9].mxu0  ;;  %v1630_v59 = vrot.slane %v2864_v15, 2 }
 0x34a   : > { %v1365_v9 = vpop.f32.mrb[10].mxu0  ;;  %v1618_v8 = vsel %vm746_vm1, %v1617_v0, %v1616_v54  ;;  %v1642_v0 = vrot.slane %v2894_v3, 3 }
 0x34b   : > { %v2303_v50 = vpop.f32.mrb[11].mxu0  ;;  %v1368_v6 = vsel %vm987_vm9, %v1363_v60, -inf  ;;  %v1620_v9 = vrot.slane %v2839_v46, 7 }
 0x34c   : > { %1369 = vmax.xlane.f32.xlu0 %v1368_v6  ;;  %v1634_v6 = vrot.slane %v2873_v23, 7 }
 0x350   : > { %v1598_v25 = vpop.f32.mrb[12].mxu0 }
 0x351   : > { %v1599_v10 = vadd.f32 %v1598_v25, %v2816_v13  ;;  %v2322_v18 = vpop.f32.mrb[13].mxu0  ;;  %v1619_v25 = vsel %vm749_vm2, %v2832_v34, %v1618_v8 }
 0x352   : > { %v1601_v22 = vpop.f32.mrb[14].mxu0 }
 0x353   : > { %v2323_v32 = vpop.f32.mrb[15].mxu0  ;;  %v1604_v41 = vsel %vm987_vm9, %v1599_v10, -inf  ;;  %v1636_v22 = vrot.slane %v2878_v28, 6 }
 0x354   : > { %1605 = vmax.xlane.f32.xlu1 %v1604_v41  ;;  %v1621_v32 = vsel %vm752_vm3, %v1620_v9, %v1619_v25  ;;  %v1624_v41 = vrot.slane %v2848_v56, 5  ;;  %v1382_v25 = vrot.slane %v2832_v34, 7 }
 0x3d9   : > { %v1370_v4 = vpop.xlane.xlu0 %1369 }
 0x3da   : > { %v1371_v5 = vsub.f32 %v1363_v60, %v1370_v4  ;;  %v1631_v60 = vrot.slane %v2866_v17, 1 }
 0x3dc   : > { %v1372_v33 = vmul.f32 1.442695, %v1371_v5  ;;  %v1632_v50 = vsel %vm746_vm1, %v1631_v60, %v1630_v59  ;;  %v1638_v5 = vrot.slane %v2882_v43, 5 }
 0x3dd   : > { %v1633_v18 = vsel %vm749_vm2, %v2869_v20, %v1632_v50 }
 0x3de   : > { %v1635_v4 = vsel %vm752_vm3, %v1634_v6, %v1633_v18  ;;  %v1380_v6 = vrot.slane %v2835_v40, 1  ;;  %v1384_v18 = vrot.slane %v2839_v46, 6 }
 0x3e1   : > { %v1606_v21 = vpop.xlane.xlu1 %1605 }
 0x3e2   : > { %v1607_v27 = vsub.f32 %v1599_v10, %v1606_v21  ;;  %v1622_v10 = vrot.slane %v2843_v53, 6 }
 0x3e4   : > { %v1608_v24 = vmul.f32 1.442695, %v1607_v27  ;;  %v1623_v21 = vsel %vm755_vm4, %v1622_v10, %v1621_v32  ;;  %v1626_v27 = vrot.slane %v2853_v2, 4  ;;  %v1381_v10 = vsel %vm746_vm1, %v2829_v29, %v1380_v6 }
 0x3e5   : > { %v1386_v32 = vrot.slane %v2843_v53, 5  ;;  %v1406_v6 = vrot.slane %v2894_v3, 2 }
 0x3e6   : > { %2441 = vpow2.f32 %v1608_v24  ;;  %v1640_v24 = vrot.slane %v2889_v55, 4 }
 0x3e7   : > { %2443 = vpow2.f32 %v1372_v33  ;;  %v1637_v33 = vsel %vm755_vm4, %v1636_v22, %v1635_v4  ;;  %v1383_v22 = vsel %vm749_vm2, %v1382_v25, %v1381_v10  ;;  %v1388_v4 = vrot.slane %v2848_v56, 4 }
 0x3e8   : > { %v1639_v54 = vsel %vm758_vm5, %v1638_v5, %v1637_v33  ;;  %v1390_v5 = vrot.slane %v2853_v2, 3 }
 0x3e9   : > { %v1641_v60 = vsel %vm761_vm6, %v1640_v24, %v1639_v54  ;;  %v1396_v24 = vrot.slane %v2869_v20, 7  ;;  %v1392_v54 = vrot.slane %v2862_v14, 2 }
 0x3ea   : > { %v1643_v9 = vsel %vm764_vm7, %v1642_v0, %v1641_v60 }
 0x3f0   : > { %v3025_v26 = vpop.eup %2441 }
 0x3f1   : > { %v1610_v38 = vsel %vm987_vm9, %v3025_v26, 0.0  ;;  %v3029_v45 = vpop.eup %2443 }
 0x3f2   : > { %1611 = vadd.xlane.f32.xlu1 %v1610_v38  ;;  %v1374_v49 = vsel %vm987_vm9, %v3029_v45, 0.0  ;;  %v1625_v38 = vsel %vm758_vm5, %v1624_v41, %v1623_v21  ;;  %v1385_v41 = vsel %vm752_vm3, %v1384_v18, %v1383_v22 }
 0x3f3   : > { %v1627_v59 = vsel %vm761_vm6, %v1626_v27, %v1625_v38  ;;  %v1387_v21 = vsel %vm755_vm4, %v1386_v32, %v1385_v41  ;;  %v1394_v27 = vrot.slane %v2864_v15, 1  ;;  %v1398_v38 = vrot.slane %v2873_v23, 6 }
 0x3f4   : > { %v1389_v33 = vsel %vm758_vm5, %v1388_v4, %v1387_v21  ;;  %v1765_v4 = vrot.slane %v2679_v36, 3  ;;  %v1779_v21 = vrot.slane %v2716_v61, 3  ;;  %v1771_v36 = vrot.slane %v2692_v44, 7 }
 0x3f5   : > { %v1395_v0 = vsel %vm746_vm1, %v2866_v17, %v1394_v27  ;;  %v1391_v60 = vsel %vm761_vm6, %v1390_v5, %v1389_v33  ;;  %v1766_v5 = vrot.slane %v2681_v37, 2  ;;  %v1780_v27 = vrot.slane %v2718_v62, 2  ;;  %v3266_v62 = vld [vmem:[#allocation5_spill] sm:$0xff] }
 0x3f6   : > { %1375 = vadd.xlane.f32.xlu1 %v1374_v49  ;;  %v1628_v49 = vrot.slane %v2862_v14, 3  ;;  %v1393_v10 = vsel %vm764_vm7, %v1392_v54, %v1391_v60  ;;  %v1768_v33 = vrot.slane %v2684_v39, 1  ;;  %v1785_v37 = vrot.slane %v2731_v7, 7 }
 0x3f7   : > { %v1751_v60 = vrot.slane %v2766_v31, 2  ;;  %v1753_v7 = vrot.slane %v2770_v35, 1  ;;  %v1777_v31 = vrot.slane %v2712_v58, 4 }
 0x3f8   : > { %v1629_v8 = vsel %vm764_vm7, %v1628_v49, %v1627_v59  ;;  %v1400_v49 = vrot.slane %v2878_v28, 5  ;;  %v1402_v59 = vrot.slane %v2882_v43, 4 }
 0x3f9   : > { %v1644_v50 = vpack.c.b16 %v1643_v9, %v1629_v8  ;;  %v1397_v8 = vsel %vm749_vm2, %v1396_v24, %v1395_v0  ;;  %v1404_v9 = vrot.slane %v2889_v55, 3  ;;  %v1782_v24 = vrot.slane %v2723_v1, 1 }
 0x3fa   : > { %v1750_v1 = vrot.slane %v2764_v30, 3 }
 0x3fb   : > { %2325 = vmatpush3.bf16.msra.mxu0 %v1644_v50  ;;  %v1399_v50 = vsel %vm752_vm3, %v1398_v38, %v1397_v8  ;;  %v1767_v38 = vsel %vm746_vm1, %v1766_v5, %v1765_v4  ;;  %v1773_v8 = vrot.slane %v2696_v47, 6 }
 0x3fc   : > { %2338 = vmatprep.subr.bf16.mxu0 %v3264_v12  ;;  %v1401_v25 = vsel %vm755_vm4, %v1400_v49, %v1399_v50  ;;  %v1781_v49 = vsel %vm746_vm1, %v1780_v27, %v1779_v21  ;;  %v1769_v54 = vsel %vm749_vm2, %v1768_v33, %v1767_v38  ;;  %v1758_v21 = vrot.slane %v2782_v52, 6 }
 0x3fd   : > { %v1403_v18 = vsel %vm758_vm5, %v1402_v59, %v1401_v25  ;;  %v1783_v0 = vsel %vm749_vm2, %v1782_v24, %v1781_v49  ;;  %v3265_v59 = vld [vmem:[#allocation4_spill] sm:$0xff]  ;;  %v1760_v27 = vrot.slane %v2789_v57, 5  ;;  %v1762_v38 = vrot.slane %v2793_v63, 4  ;;  %v2431_v63 = vld [vmem:[%s3253_s4 + $0x10] sm:$0xff]  }
 0x3fe   : > { %v1405_v22 = vsel %vm761_vm6, %v1404_v9, %v1403_v18  ;;  %v1770_v61 = vsel %vm752_vm3, %v3265_v59, %v1769_v54  ;;  %v1784_v39 = vsel %vm752_vm3, %v3266_v62, %v1783_v0  ;;  %v1787_v9 = vrot.slane %v2736_v11, 6 }
 0x3ff   : > { %v1407_v32 = vsel %vm764_vm7, %v1406_v6, %v1405_v22  ;;  %v1772_v50 = vsel %vm755_vm4, %v1771_v36, %v1770_v61  ;;  %v1786_v44 = vsel %vm755_vm4, %v1785_v37, %v1784_v39  ;;  %v1752_v6 = vsel %vm746_vm1, %v1751_v60, %v1750_v1  ;;  %v2433_v1 = vld [vmem:[%s3253_s4 + $0x20] sm:$0xff]  }
 0x400   : > { %v1408_v41 = vpack.c.b16 %v1407_v32, %v1393_v10  ;;  %v1775_v10 = vrot.slane %v2702_v51, 5  ;;  %v1789_v18 = vrot.slane %v2748_v16, 5  ;;  %v1774_v30 = vsel %vm758_vm5, %v1773_v8, %v1772_v50 }
 0x401   : > { %v1788_v47 = vsel %vm758_vm5, %v1787_v9, %v1786_v44  ;;  %v1754_v11 = vsel %vm749_vm2, %v1753_v7, %v1752_v6  ;;  %v1791_v22 = vrot.slane %v2752_v19, 4  ;;  %v1756_v51 = vrot.slane %v2778_v48, 7  ;;  %v2434_v7 = vld [vmem:[%s3253_s4 + $0x28] sm:$0xff]  }
 0x402   : > { %2305 = vmatpush3.bf16.msra.mxu1 %v1408_v41  ;;  %v1776_v35 = vsel %vm761_vm6, %v1775_v10, %v1774_v30  ;;  %v1790_v41 = vsel %vm761_vm6, %v1789_v18, %v1788_v47  ;;  %v1755_v16 = vsel %vm752_vm3, %v2774_v42, %v1754_v11 }
 0x403   : > { %2310 = vmatprep.subr.bf16.mxu1 %v3264_v12  ;;  %v1778_v4 = vsel %vm764_vm7, %v1777_v31, %v1776_v35  ;;  %v1792_v5 = vsel %vm764_vm7, %v1791_v22, %v1790_v41  ;;  %v1757_v58 = vsel %vm755_vm4, %v1756_v51, %v1755_v16  ;;  %v1852_v35 = vrot.slane %v2835_v40, 3 }
 0x404   : > { %v1793_v19 = vpack.c.b16 %v1792_v5, %v1778_v4  ;;  %v1759_v24 = vsel %vm758_vm5, %v1758_v21, %v1757_v58  ;;  %v1853_v41 = vrot.slane %v2829_v29, 2  ;;  %v1866_v51 = vrot.slane %v2864_v15, 3 }
 0x405   : > { %v1761_v54 = vsel %vm761_vm6, %v1760_v27, %v1759_v24  ;;  %v1867_v16 = vrot.slane %v2866_v17, 2  ;;  %v1855_v4 = vrot.slane %v2832_v34, 1  ;;  %v1869_v5 = vrot.slane %v2869_v20, 1 }
 0x406   : > { %v1798_v42 = vsel %vm940_vm8, %v1793_v19, 0  ;;  %v1763_v57 = vsel %vm764_vm7, %v1762_v38, %v1761_v54  ;;  %v1854_v21 = vsel %vm746_vm1, %v1853_v41, %v1852_v35  ;;  %v1858_v27 = vrot.slane %v2843_v53, 7 }
 0x407   : > { %v1764_v36 = vpack.c.b16 %v1763_v57, %v1763_v57  ;;  %v1868_v58 = vsel %vm746_vm1, %v1867_v16, %v1866_v51  ;;  %v1856_v19 = vsel %vm749_vm2, %v1855_v4, %v1854_v21  ;;  %v1872_v29 = vrot.slane %v2878_v28, 7 }
 0x408   : > { %v1870_v40 = vsel %vm749_vm2, %v1869_v5, %v1868_v58  ;;  %v1857_v15 = vsel %vm752_vm3, %v2839_v46, %v1856_v19  ;;  %v1860_v17 = vrot.slane %v2848_v56, 6  ;;  %v1874_v20 = vrot.slane %v2882_v43, 6 }
 0x409   : > { %v1871_v34 = vsel %vm752_vm3, %v2873_v23, %v1870_v40  ;;  %v1862_v24 = vrot.slane %v2853_v2, 5  ;;  %v1864_v38 = vrot.slane %v2862_v14, 4  ;;  %v1878_v56 = vrot.slane %v2894_v3, 4  ;;  %v2435_v3 = vld [vmem:[%s3253_s4 + $0x30] sm:$0xff]  }
 0x40a   : > { %v1873_v53 = vsel %vm755_vm4, %v1872_v29, %v1871_v34 }
 0x40b   : > { %v1875_v46 = vsel %vm758_vm5, %v1874_v20, %v1873_v53 }
 0x47f   : > { %v1612_v25 = vpop.xlane.xlu1 %1611 }
 0x480   : > { %2445 = vrcp.f32 %v1612_v25 }
 0x483   : > { %v1376_v32 = vpop.xlane.xlu1 %1375 }
 0x484   : > { %2447 = vrcp.f32 %v1376_v32 }
 0x48a   : > { %v2446_v33 = vpop.eup %2445 }
 0x48b   : > { %v1614_v48 = vmul.f32 %v2446_v33, %v3025_v26  ;;  %v1859_v33 = vsel %vm755_vm4, %v1858_v27, %v1857_v15 }
 0x48c   : > { %v1861_v28 = vsel %vm758_vm5, %v1860_v17, %v1859_v33 }
 0x48d   : > { %v1615_v49 = vpack.c.bf16 %v1614_v48, %v1614_v48  ;;  %v1876_v48 = vrot.slane %v2889_v55, 5  ;;  %v1863_v23 = vsel %vm761_vm6, %v1862_v24, %v1861_v28 }
 0x48e   : > { %v2448_v0 = vpop.eup %2447 }
 0x48f   : > { %v1378_v52 = vmul.f32 %v2448_v0, %v3029_v45  ;;  %2327 = vmatmul.mubr.msk.bf16.vlgmr.msra.gmra.mrb[16].mxu0 %vm987_vm9, %v1615_v49  ;;  %v2432_v45 = vld [vmem:[%s3253_s4 + $0x18] sm:$0xff]   ;;  %v1877_v43 = vsel %vm761_vm6, %v1876_v48, %v1875_v46  ;;  %v1865_v49 = vsel %vm764_vm7, %v1864_v38, %v1863_v23 }
 0x490   : > { %2339 = vmatpush3.bf16.xpose.msra.mxu0 %v1798_v42  ;;  %2340 = vmatprep.mubr.msk.bf16.mxu0 %vm2510_vm0, %v3264_v12  ;;  %v1879_v2 = vsel %vm764_vm7, %v1878_v56, %v1877_v43 }
 0x491   : > { %v1379_v26 = vpack.c.bf16 %v1378_v52, %v1378_v52  ;;  %v1880_v42 = vpack.c.b16 %v1879_v2, %v1865_v49  ;;  %v2436_v52 = vld [vmem:[%s3253_s4 + $0x38] sm:$0xff]  }
 0x493   : > { %2307 = vmatmul.mubr.msk.bf16.vlgmr.msra.gmra.mrb[4].mxu1 %vm987_vm9, %v1379_v26 }
 0x494   : > { %2311 = vmatpush3.bf16.msra.mxu1 %v2431_v63  ;;  %2314 = vmatprep.mubr.msk.bf16.mxu1 %vm2510_vm0, %v3264_v12 }
 0x495   : > { %2312 = vmatprep.subr.bf16.mxu1 %v3264_v12 }
 0x497   : > { %2341 = vmatmul.mubr.msk.bf16.vlgmr.msra.gmra.mrb[20].mxu0 %vm940_vm8, %v1764_v36 }
 0x498   : > { %2313 = vmatpush3.bf16.msra.mxu1 %v2432_v45 }
 0x499   : > { %2330 = vmatprep.subr.bf16.mxu1 %v3264_v12 }
 0x562   : > { %v1683_v37 = vpop.f32.mrb[16].mxu0 }
 0x563   : > { %v2328_v59 = vpop.f32.mrb[17].mxu0  ;;  %v1693_v47 = vpack.c.bf16 %v1683_v37, %v1683_v37  ;;  %v664_v37 = vld [vmem:[%s613_s24] sm:$0xff] }
 0x564   : > { %v1686_v61 = vpop.f32.mrb[18].mxu0  ;;  %v2185_v59 = vld [vmem:[%s3254_s5] ss:$0 sm:$0xff] }
 0x565   : > { %v2329_v62 = vpop.f32.mrb[19].mxu0  ;;  %v672_v61 = vadd.f32 %v2185_v59, %v664_v37 }
 0x566   : > { %v1447_v39 = vpop.f32.mrb[4].mxu1 }
 0x567   : > { %v1457_v60 = vpack.c.bf16 %v1447_v39, %v1447_v39  ;;  %v2308_v8 = vpop.f32.mrb[5].mxu1 }
 0x568   : > { %v1450_v9 = vpop.f32.mrb[6].mxu1 }
 0x569   : > { %v2309_v50 = vpop.f32.mrb[7].mxu1  ;;  %2315 = vmatmul.mubr.msk.bf16.vlgmr.msra.gmra.mrb[0].mxu1 %vm940_vm8, %v1457_v60 }
 0x56a   : > { %v1834_v44 = vpop.f32.mrb[20].mxu0  ;;  %2331 = vmatpush3.bf16.msra.mxu1 %v2433_v1  ;;  %2334 = vmatprep.mubr.msk.bf16.mxu1 %vm2510_vm0, %v3264_v12 }
 0x56b   : > { %v1835_v6 = vadd.f32 %v1834_v44, %v2816_v13  ;;  %v2342_v25 = vpop.f32.mrb[21].mxu0  ;;  %2332 = vmatprep.subr.bf16.mxu1 %v3264_v12 }
 0x56c   : > { %v1837_v10 = vpop.f32.mrb[22].mxu0 }
 0x56d   : > { %v2343_v18 = vpop.f32.mrb[23].mxu0  ;;  %v1840_v30 = vsel %vm987_vm9, %v1835_v6, -inf }
 0x56e   : > { %1841 = vmax.xlane.f32.xlu0 %v1840_v30  ;;  %2333 = vmatpush3.bf16.msra.mxu1 %v2434_v7 }
 0x56f   : > { %2344 = vmatprep.subr.bf16.mxu1 %v3264_v12 }
 0x575   : > { %2335 = vmatmul.mubr.msk.bf16.vlgmr.msra.gmra.mrb[0].mxu1 %vm940_vm8, %v1693_v47 }
 0x576   : > { %2346 = vmatprep.mubr.msk.bf16.mxu1 %vm2510_vm0, %v3264_v12  ;;  %2345 = vmatpush3.bf16.msra.mxu1 %v1880_v42 }
 0x577   : > { %2350 = vmatprep.subr.bf16.mxu1 %v3264_v12 }
 0x5fb   : > { %v1842_v11 = vpop.xlane.xlu0 %1841 }
 0x5fc   : > { %v1843_v31 = vsub.f32 %v1835_v6, %v1842_v11 }
 0x5fe   : > { %v1844_v13 = vmul.f32 1.442695, %v1843_v31 }
 0x600   : > { %2449 = vpow2.f32 %v1844_v13 }
 0x60a   : > { %v2450_v22 = vpop.eup %2449 }
 0x60b   : > { %v1846_v32 = vsel %vm987_vm9, %v2450_v22, 0.0 }
 0x60c   : > { %1847 = vadd.xlane.f32.xlu1 %v1846_v32 }
 0x699   : > { %v1848_v55 = vpop.xlane.xlu1 %1847 }
 0x69a   : > { %2451 = vrcp.f32 %v1848_v55 }
 0x6a4   : > { %v2452_v54 = vpop.eup %2451 }
 0x6a5   : > { %v1850_v14 = vmul.f32 %v2452_v54, %v2450_v22 }
 0x6a7   : > { %v1851_v0 = vpack.c.bf16 %v1850_v14, %v1850_v14 }
 0x6a9   : > { %2347 = vmatmul.mubr.msk.bf16.vlgmr.msra.gmra.mrb[8].mxu1 %vm987_vm9, %v1851_v0 }
 0x6aa   : > { %2351 = vmatpush3.bf16.msra.mxu1 %v2435_v3  ;;  %2354 = vmatprep.mubr.msk.bf16.mxu1 %vm2510_vm0, %v3264_v12 }
 0x6ab   : > { %2352 = vmatprep.subr.bf16.mxu1 %v3264_v12 }
 0x6ae   : > { %2353 = vmatpush3.bf16.msra.mxu1 %v2436_v52 }
 0x77c   : > { %v1919_v57 = vpop.f32.mrb[8].mxu1 }
 0x77d   : > { %v1929_v63 = vpack.c.bf16 %v1919_v57, %v1919_v57  ;;  %v2348_v26 = vpop.f32.mrb[9].mxu1 }
 0x77e   : > { %v1922_v36 = vpop.f32.mrb[10].mxu1 }
 0x77f   : > { %v2349_v45 = vpop.f32.mrb[11].mxu1  ;;  %2355 = vmatmul.mubr.msk.bf16.vlgmr.msra.gmra.mrb[0].mxu1 %vm940_vm8, %v1929_v63 }
 0x852   : > { %v1979_v12 = vpop.f32.mrb[0].mxu1 }
 0x853   : > { %v2358_v62 = vadd.f32 %v1979_v12, %v672_v61  ;;  %v2356_v39 = vpop.f32.mrb[1].mxu1 }
 0x854   : > { %v1982_v1 = vpop.f32.mrb[2].mxu1 }
 0x855   : > { %1986 = vst [vmem:[%s621_s23] sm:$0xff] %v2358_v62  ;;  %v2357_v60 = vpop.f32.mrb[3].mxu1 }
 0x856 PF: > { %s17_s30 = sadd.s32 1, %s2507_s30   ;;  %s3267_s24 = smov %s2487_s25 }
 0x857   : > { %p14_p13 = scmp.ge.s32.totalorder %s17_s30, 6   ;;  %s3268_s25 = smov %s2604_s13 }
 0x858   : > { %s3269_s26 = smov %s2499_s28  ;;  %s3270_s27 = smov %s2503_s29 }
 0x859   : > { %s3271_s28 = smov %s3274_s8  ;;  %s3272_s29 = smov %s3278_s9 }
 0x85a   :  { %16 = sbr.rel (!%p14_p13) target bundleno = 4 (0x4), region = 182 }

</bundles_post_ra>
